<compile_context>
chip_gen: v7x
topology: tpu7x:2x2x1
jax: 0.10.0
libtpu: 0.0.40
codegen_flags: <defaults>
</compile_context>

<pallas_src>
import functools

import jax
import jax.numpy as jnp
from jax.experimental import pallas as pl
from jax.experimental.pallas import tpu as pltpu

LANE = 128


def _rup(n, m=LANE):
    return ((n + m - 1) // m) * m


# --------------------------------- kernel -----------------------------------
def _gnn_kernel(num_layers, s_ref, r_ref, a_ref, x_ref, ea_ref, w_ref, b_ref,
                out_ref):
    """Fused GNN forward.  All graph / feature dims are pre-padded to 128."""

    def silu(v):
        # v * sigmoid(v) == 0.5 * v * (1 + tanh(v/2))  -> one EUP tanh/elem.
        return 0.5 * v * (1.0 + jnp.tanh(0.5 * v))

    def dot(a_bf16, wi):
        # bf16 MXU inputs, f32 accumulation.
        return jnp.dot(a_bf16, w_ref[wi], preferred_element_type=jnp.float32)

    def lin(v, wi, bi):
        return dot(v.astype(jnp.bfloat16), wi) + b_ref[bi]

    s_oh = s_ref[...]          # [Ep, Np] bf16 one-hot (send)
    r_oh = r_ref[...]          # [Ep, Np] bf16 one-hot (recv)
    a_sc = a_ref[...]          # [Np, Ep] bf16 scatter-mean matrix (1/deg folded)

    # ---- GNNLayer 0 (only_edge_attr=True, res = Linear(input, hidden)) -----
    m = silu(lin(silu(lin(ea_ref[...], 0, 0)), 1, 1))                  # [Ep, P]
    mb = m.astype(jnp.bfloat16)
    x = lin(x_ref[...], 2, 2) + jnp.dot(a_sc, mb,
                                        preferred_element_type=jnp.float32)
    x = x + lin(silu(lin(x, 3, 3)), 4, 4)
    ea_b = mb

    wi, bi = 5, 5
    # ---- GNNLayers 1 .. num_layers-1 (res = Identity) -----------------------
    for _ in range(num_layers - 1):
        xb = x.astype(jnp.bfloat16)
        xs = jnp.dot(s_oh, xb, preferred_element_type=jnp.float32
                     ).astype(jnp.bfloat16)                            # x[send]
        xr = jnp.dot(r_oh, xb, preferred_element_type=jnp.float32
                     ).astype(jnp.bfloat16)                            # x[recv]
        # cat([x_send, x_recv, ea]) @ W1  as split-K accumulation (no concat).
        h = dot(xs, wi) + dot(xr, wi + 1) + dot(ea_b, wi + 2) + b_ref[bi]
        m = silu(lin(silu(h), wi + 3, bi + 1))                         # [Ep, P]
        mb = m.astype(jnp.bfloat16)
        x = x + jnp.dot(a_sc, mb, preferred_element_type=jnp.float32)
        x = x + lin(silu(lin(x, wi + 4, bi + 2)), wi + 5, bi + 3)
        ea_b = mb
        wi += 6
        bi += 4

    # ---- out_mlp (Dropout == identity at inference) --------------------------
    h = silu(lin(x, wi, bi))
    h = silu(lin(h, wi + 1, bi + 1))
    out_ref[...] = lin(h, wi + 2, bi + 2)


# --------------------------- parameter construction --------------------------
def init_params(key, input_size, hidden, num_dims, num_layers=4):
    num_orient = num_dims * (num_dims - 1) // 2
    num_rel = 3 * num_dims + num_orient
    f_e0 = num_rel + input_size + 2          # first-layer edge feature width

    def lin(k, fin, fout):
        kw, kb = jax.random.split(k)
        w = jax.random.normal(kw, (fin, fout), jnp.float32) / jnp.sqrt(float(fin))
        b = jax.random.normal(kb, (1, fout), jnp.float32) * 0.01
        return [w, b]

    keys = iter(jax.random.split(key, 64))
    params = []
    # layer 0: message_fn, res, update_fn
    params += lin(next(keys), f_e0, hidden)
    params += lin(next(keys), hidden, hidden)
    params += lin(next(keys), input_size, hidden)        # res Linear
    params += lin(next(keys), hidden, 2 * hidden)
    params += lin(next(keys), 2 * hidden, hidden)
    # layers 1..num_layers-1: message_fn (3H -> H), update_fn
    for _ in range(num_layers - 1):
        params += lin(next(keys), 3 * hidden, hidden)
        params += lin(next(keys), hidden, hidden)
        params += lin(next(keys), hidden, 2 * hidden)
        params += lin(next(keys), 2 * hidden, hidden)
    # out_mlp
    params += lin(next(keys), hidden, hidden)
    params += lin(next(keys), hidden, hidden)
    params += lin(next(keys), hidden, num_dims)
    return params, f_e0


# ---------------------------------- wrapper -----------------------------------
def gnn_forward(x, edge_attr, send, recv, params, hidden, num_dims, num_layers=4):
    N, F_in = x.shape
    E, F_e0 = edge_attr.shape
    H = hidden
    # one common lane width covering every feature dim after padding
    P = max(_rup(H), _rup(2 * H), _rup(F_in), _rup(F_e0), _rup(num_dims))
    Np = _rup(N)     # node rows padded to 128 (fully tile-aligned operands)
    Ep = _rup(E)     # edge rows padded to 128

    # zero-padded activations (padded lanes / rows never affect real outputs)
    xp = jnp.zeros((Np, P), jnp.float32).at[:N, :F_in].set(x)
    eap = jnp.zeros((Ep, P), jnp.float32).at[:E, :F_e0].set(edge_attr)

    # one-hot gather matrices and scatter-mean matrix (1/deg folded in)
    er = jnp.arange(E)
    s_oh = jnp.zeros((Ep, Np), jnp.float32).at[er, send].set(1.0).astype(jnp.bfloat16)
    r_oh = jnp.zeros((Ep, Np), jnp.float32).at[er, recv].set(1.0).astype(jnp.bfloat16)
    counts = jnp.zeros((N,), jnp.float32).at[recv].add(1.0)
    inv = 1.0 / jnp.maximum(counts, 1.0)
    a_sc = (jnp.zeros((Np, Ep), jnp.float32).at[recv, er].set(inv[recv])
            .astype(jnp.bfloat16))

    # ---- pack all weights / biases into two arrays ---------------------------
    def padw(w):
        return (jnp.zeros((P, P), jnp.float32)
                .at[:w.shape[0], :w.shape[1]].set(w).astype(jnp.bfloat16))

    def padb(b):
        return jnp.zeros((1, P), jnp.float32).at[:, :b.shape[-1]].set(
            b.reshape(1, -1))

    it = iter(params)
    nxt = lambda: next(it)
    ws, bs = [], []

    def add_lin(w, b):
        ws.append(padw(w))
        bs.append(padb(b))

    # layer 0: message w1, w2 ; res ; update wu1, wu2
    for _ in range(5):
        w, b = nxt(), nxt()
        add_lin(w, b)
    # layers 1..num_layers-1
    for _ in range(num_layers - 1):
        w1, b1 = nxt(), nxt()
        ws.append(padw(w1[0:H]))            # W1a  (x[send] block)
        ws.append(padw(w1[H:2 * H]))        # W1b  (x[recv] block)
        ws.append(padw(w1[2 * H:3 * H]))    # W1c  (edge_attr block)
        bs.append(padb(b1))
        for _ in range(3):                  # message w2, update wu1, wu2
            w, b = nxt(), nxt()
            add_lin(w, b)
    # out_mlp
    for _ in range(3):
        w, b = nxt(), nxt()
        add_lin(w, b)

    w_all = jnp.stack(ws)                   # [n_w, P, P] bf16  (one DMA)
    b_all = jnp.stack(bs)                   # [n_b, 1, P] f32   (one DMA)

    # ---- advisory cost estimate ----------------------------------------------
    flops = 2 * (2 * Ep + 3 * Np) * P * P + 2 * Np * Ep * P            # layer 0
    flops += (num_layers - 1) * (2 * 2 * Ep * Np * P + 2 * 4 * Ep * P * P
                                 + 2 * Np * Ep * P + 2 * 2 * Np * P * P)
    flops += 2 * 3 * Np * P * P                                        # out_mlp
    trans = num_layers * (2 * Ep + Np) * P + 2 * Np * P
    bytes_acc = (int(w_all.size) * 2 + int(b_all.size) * 4
                 + int(xp.size + eap.size) * 4
                 + int(s_oh.size + r_oh.size + a_sc.size) * 2
                 + Np * P * 4)
    cost = pl.CostEstimate(flops=int(flops), transcendentals=int(trans),
                           bytes_accessed=int(bytes_acc))

    vmem = pl.BlockSpec(memory_space=pltpu.MemorySpace.VMEM)
    out_p = pl.pallas_call(
        functools.partial(_gnn_kernel, num_layers),
        out_shape=jax.ShapeDtypeStruct((Np, P), jnp.float32),
        in_specs=[vmem] * 7,
        out_specs=vmem,
        compiler_params=pltpu.CompilerParams(vmem_limit_bytes=16 * 1024 * 1024),
        cost_estimate=cost,
    )(s_oh, r_oh, a_sc, xp, eap, w_all, b_all)
    return out_p[:N, :num_dims]


# ----------------------------- pure-JAX reference -----------------------------
def gnn_ref(x, edge_attr, send, recv, params, hidden, num_dims, num_layers=4):
    it = iter(params)
    nxt = lambda: next(it)
    silu = jax.nn.silu
    N = x.shape[0]

    def lin(v, w, b):
        return v @ w + b

    def scatter_mean(m, recv, N):
        s = jax.ops.segment_sum(m, recv, num_segments=N)
        c = jax.ops.segment_sum(jnp.ones((m.shape[0], 1), m.dtype), recv,
                                num_segments=N)
        return s / jnp.maximum(c, 1.0)

    w1, b1, w2, b2 = nxt(), nxt(), nxt(), nxt()
    m = silu(lin(silu(lin(edge_attr, w1, b1)), w2, b2))
    wr, br = nxt(), nxt()
    x = lin(x, wr, br) + scatter_mean(m, recv, N)
    wu1, bu1, wu2, bu2 = nxt(), nxt(), nxt(), nxt()
    x = x + lin(silu(lin(x, wu1, bu1)), wu2, bu2)
    ea = m
    for _ in range(num_layers - 1):
        w1, b1, w2, b2 = nxt(), nxt(), nxt(), nxt()
        cat = jnp.concatenate([x[send], x[recv], ea], axis=-1)
        m = silu(lin(silu(lin(cat, w1, b1)), w2, b2))
        x = x + scatter_mean(m, recv, N)
        wu1, bu1, wu2, bu2 = nxt(), nxt(), nxt(), nxt()
        x = x + lin(silu(lin(x, wu1, bu1)), wu2, bu2)
        ea = m
    wo1, bo1, wo2, bo2, wo3, bo3 = nxt(), nxt(), nxt(), nxt(), nxt(), nxt()
    return lin(silu(lin(silu(lin(x, wo1, bo1)), wo2, bo2)), wo3, bo3)


# ------------------------------------ main -------------------------------------
if __name__ == "__main__":
    batch, num_obj = 2, 4
    input_size, hidden, num_dims, num_layers = 6, 32, 3, 4
    N = batch * num_obj

    # fully-connected directed edges within each sample (no self-loops)
    send_l, recv_l = [], []
    for b in range(batch):
        for i in range(num_obj):
            for j in range(num_obj):
                if i != j:
                    send_l.append(b * num_obj + i)
                    recv_l.append(b * num_obj + j)
    send = jnp.asarray(send_l, jnp.int32)
    recv = jnp.asarray(recv_l, jnp.int32)
    E = int(send.shape[0])

    key = jax.random.PRNGKey(0)
    kp, kx, ke = jax.random.split(key, 3)
    params, f_e0 = init_params(kp, input_size, hidden, num_dims, num_layers)
    x = jax.random.normal(kx, (N, input_size), jnp.float32)
    edge_attr = jax.random.normal(ke, (E, f_e0), jnp.float32)

    out = gnn_forward(x, edge_attr, send, recv, params, hidden, num_dims,
                      num_layers)
    out = jax.block_until_ready(out)

    ref = gnn_ref(x, edge_attr, send, recv, params, hidden, num_dims, num_layers)
    assert out.shape == (N, num_dims)
    # bf16 MXU inputs (f32 accumulation) => loose tolerance vs f32 reference.
    assert jnp.allclose(out, ref, atol=5e-2, rtol=5e-2), \
        float(jnp.max(jnp.abs(out - ref)))
    print("KERNEL_OK")
</pallas_src>

<mosaic_0001>
module attributes {stable_mosaic.version = 11 : i64} {
  func.func @_gnn_kernel(%arg0: memref<128x128xbf16, #tpu.memory_space<vmem>>, %arg1: memref<128x128xbf16, #tpu.memory_space<vmem>>, %arg2: memref<128x128xbf16, #tpu.memory_space<vmem>>, %arg3: memref<128x128xf32, #tpu.memory_space<vmem>>, %arg4: memref<128x128xf32, #tpu.memory_space<vmem>>, %arg5: memref<26x128x128xbf16, #tpu.memory_space<vmem>>, %arg6: memref<20x1x128xf32, #tpu.memory_space<vmem>>, %arg7: memref<128x128xf32, #tpu.memory_space<vmem>>) attributes {dimension_semantics = [], scalar_prefetch = 0 : i64, scratch_operands = 0 : i64, tpu.core_type = #tpu.core_type<tc>} {
    %c0 = arith.constant 0 : index
    %c0_0 = arith.constant 0 : index
    %0 = vector.load %arg0[%c0, %c0_0] : memref<128x128xbf16, #tpu.memory_space<vmem>>, vector<128x128xbf16>
    %c0_1 = arith.constant 0 : index
    %c0_2 = arith.constant 0 : index
    %1 = vector.load %arg1[%c0_1, %c0_2] : memref<128x128xbf16, #tpu.memory_space<vmem>>, vector<128x128xbf16>
    %c0_3 = arith.constant 0 : index
    %c0_4 = arith.constant 0 : index
    %2 = vector.load %arg2[%c0_3, %c0_4] : memref<128x128xbf16, #tpu.memory_space<vmem>>, vector<128x128xbf16>
    %c0_5 = arith.constant 0 : index
    %c0_6 = arith.constant 0 : index
    %3 = vector.load %arg4[%c0_5, %c0_6] : memref<128x128xf32, #tpu.memory_space<vmem>>, vector<128x128xf32>
    %4 = arith.truncf %3 : vector<128x128xf32> to vector<128x128xbf16>
    %c0_7 = arith.constant 0 : index
    %c0_8 = arith.constant 0 : index
    %c0_9 = arith.constant 0 : index
    %5 = vector.load %arg5[%c0_7, %c0_8, %c0_9] : memref<26x128x128xbf16, #tpu.memory_space<vmem>>, vector<1x128x128xbf16>
    %6 = vector.shape_cast %5 : vector<1x128x128xbf16> to vector<128x128xbf16>
    %cst = arith.constant dense<0.000000e+00> : vector<128x128xf32>
    %7 = tpu.matmul %4, %6, %cst {dimension_numbers = #tpu.dot_dimension_numbers<[1], [0], [0], [1], [0, 0, 1, 1], [], []>} : vector<128x128xbf16>, vector<128x128xbf16>, vector<128x128xf32> -> vector<128x128xf32>
    %c0_10 = arith.constant 0 : index
    %c0_11 = arith.constant 0 : index
    %c0_12 = arith.constant 0 : index
    %8 = vector.load %arg6[%c0_10, %c0_11, %c0_12] : memref<20x1x128xf32, #tpu.memory_space<vmem>>, vector<1x1x128xf32>
    %9 = vector.shape_cast %8 : vector<1x1x128xf32> to vector<1x128xf32>
    %10 = vector.broadcast %9 : vector<1x128xf32> to vector<128x128xf32>
    %11 = arith.addf %7, %10 : vector<128x128xf32>
    %cst_13 = arith.constant 5.000000e-01 : f32
    %12 = vector.broadcast %cst_13 : f32 to vector<128x128xf32>
    %13 = arith.mulf %12, %11 : vector<128x128xf32>
    %cst_14 = arith.constant 5.000000e-01 : f32
    %14 = vector.broadcast %cst_14 : f32 to vector<128x128xf32>
    %15 = arith.mulf %14, %11 : vector<128x128xf32>
    %16 = math.tanh %15 : vector<128x128xf32>
    %cst_15 = arith.constant 1.000000e+00 : f32
    %17 = vector.broadcast %cst_15 : f32 to vector<128x128xf32>
    %18 = arith.addf %17, %16 : vector<128x128xf32>
    %19 = arith.mulf %13, %18 : vector<128x128xf32>
    %20 = arith.truncf %19 : vector<128x128xf32> to vector<128x128xbf16>
    %c1 = arith.constant 1 : index
    %c0_16 = arith.constant 0 : index
    %c0_17 = arith.constant 0 : index
    %21 = vector.load %arg5[%c1, %c0_16, %c0_17] : memref<26x128x128xbf16, #tpu.memory_space<vmem>>, vector<1x128x128xbf16>
    %22 = vector.shape_cast %21 : vector<1x128x128xbf16> to vector<128x128xbf16>
    %cst_18 = arith.constant dense<0.000000e+00> : vector<128x128xf32>
    %23 = tpu.matmul %20, %22, %cst_18 {dimension_numbers = #tpu.dot_dimension_numbers<[1], [0], [0], [1], [0, 0, 1, 1], [], []>} : vector<128x128xbf16>, vector<128x128xbf16>, vector<128x128xf32> -> vector<128x128xf32>
    %c1_19 = arith.constant 1 : index
    %c0_20 = arith.constant 0 : index
    %c0_21 = arith.constant 0 : index
    %24 = vector.load %arg6[%c1_19, %c0_20, %c0_21] : memref<20x1x128xf32, #tpu.memory_space<vmem>>, vector<1x1x128xf32>
    %25 = vector.shape_cast %24 : vector<1x1x128xf32> to vector<1x128xf32>
    %26 = vector.broadcast %25 : vector<1x128xf32> to vector<128x128xf32>
    %27 = arith.addf %23, %26 : vector<128x128xf32>
    %cst_22 = arith.constant 5.000000e-01 : f32
    %28 = vector.broadcast %cst_22 : f32 to vector<128x128xf32>
    %29 = arith.mulf %28, %27 : vector<128x128xf32>
    %cst_23 = arith.constant 5.000000e-01 : f32
    %30 = vector.broadcast %cst_23 : f32 to vector<128x128xf32>
    %31 = arith.mulf %30, %27 : vector<128x128xf32>
    %32 = math.tanh %31 : vector<128x128xf32>
    %cst_24 = arith.constant 1.000000e+00 : f32
    %33 = vector.broadcast %cst_24 : f32 to vector<128x128xf32>
    %34 = arith.addf %33, %32 : vector<128x128xf32>
    %35 = arith.mulf %29, %34 : vector<128x128xf32>
    %36 = arith.truncf %35 : vector<128x128xf32> to vector<128x128xbf16>
    %c0_25 = arith.constant 0 : index
    %c0_26 = arith.constant 0 : index
    %37 = vector.load %arg3[%c0_25, %c0_26] : memref<128x128xf32, #tpu.memory_space<vmem>>, vector<128x128xf32>
    %38 = arith.truncf %37 : vector<128x128xf32> to vector<128x128xbf16>
    %c2 = arith.constant 2 : index
    %c0_27 = arith.constant 0 : index
    %c0_28 = arith.constant 0 : index
    %39 = vector.load %arg5[%c2, %c0_27, %c0_28] : memref<26x128x128xbf16, #tpu.memory_space<vmem>>, vector<1x128x128xbf16>
    %40 = vector.shape_cast %39 : vector<1x128x128xbf16> to vector<128x128xbf16>
    %cst_29 = arith.constant dense<0.000000e+00> : vector<128x128xf32>
    %41 = tpu.matmul %38, %40, %cst_29 {dimension_numbers = #tpu.dot_dimension_numbers<[1], [0], [0], [1], [0, 0, 1, 1], [], []>} : vector<128x128xbf16>, vector<128x128xbf16>, vector<128x128xf32> -> vector<128x128xf32>
    %c2_30 = arith.constant 2 : index
    %c0_31 = arith.constant 0 : index
    %c0_32 = arith.constant 0 : index
    %42 = vector.load %arg6[%c2_30, %c0_31, %c0_32] : memref<20x1x128xf32, #tpu.memory_space<vmem>>, vector<1x1x128xf32>
    %43 = vector.shape_cast %42 : vector<1x1x128xf32> to vector<1x128xf32>
    %44 = vector.broadcast %43 : vector<1x128xf32> to vector<128x128xf32>
    %45 = arith.addf %41, %44 : vector<128x128xf32>
    %cst_33 = arith.constant dense<0.000000e+00> : vector<128x128xf32>
    %46 = tpu.matmul %2, %36, %cst_33 {dimension_numbers = #tpu.dot_dimension_numbers<[1], [0], [0], [1], [0, 0, 1, 1], [], []>} : vector<128x128xbf16>, vector<128x128xbf16>, vector<128x128xf32> -> vector<128x128xf32>
    %47 = arith.addf %45, %46 : vector<128x128xf32>
    %48 = arith.truncf %47 : vector<128x128xf32> to vector<128x128xbf16>
    %c3 = arith.constant 3 : index
    %c0_34 = arith.constant 0 : index
    %c0_35 = arith.constant 0 : index
    %49 = vector.load %arg5[%c3, %c0_34, %c0_35] : memref<26x128x128xbf16, #tpu.memory_space<vmem>>, vector<1x128x128xbf16>
    %50 = vector.shape_cast %49 : vector<1x128x128xbf16> to vector<128x128xbf16>
    %cst_36 = arith.constant dense<0.000000e+00> : vector<128x128xf32>
    %51 = tpu.matmul %48, %50, %cst_36 {dimension_numbers = #tpu.dot_dimension_numbers<[1], [0], [0], [1], [0, 0, 1, 1], [], []>} : vector<128x128xbf16>, vector<128x128xbf16>, vector<128x128xf32> -> vector<128x128xf32>
    %c3_37 = arith.constant 3 : index
    %c0_38 = arith.constant 0 : index
    %c0_39 = arith.constant 0 : index
    %52 = vector.load %arg6[%c3_37, %c0_38, %c0_39] : memref<20x1x128xf32, #tpu.memory_space<vmem>>, vector<1x1x128xf32>
    %53 = vector.shape_cast %52 : vector<1x1x128xf32> to vector<1x128xf32>
    %54 = vector.broadcast %53 : vector<1x128xf32> to vector<128x128xf32>
    %55 = arith.addf %51, %54 : vector<128x128xf32>
    %cst_40 = arith.constant 5.000000e-01 : f32
    %56 = vector.broadcast %cst_40 : f32 to vector<128x128xf32>
    %57 = arith.mulf %56, %55 : vector<128x128xf32>
    %cst_41 = arith.constant 5.000000e-01 : f32
    %58 = vector.broadcast %cst_41 : f32 to vector<128x128xf32>
    %59 = arith.mulf %58, %55 : vector<128x128xf32>
    %60 = math.tanh %59 : vector<128x128xf32>
    %cst_42 = arith.constant 1.000000e+00 : f32
    %61 = vector.broadcast %cst_42 : f32 to vector<128x128xf32>
    %62 = arith.addf %61, %60 : vector<128x128xf32>
    %63 = arith.mulf %57, %62 : vector<128x128xf32>
    %64 = arith.truncf %63 : vector<128x128xf32> to vector<128x128xbf16>
    %c4 = arith.constant 4 : index
    %c0_43 = arith.constant 0 : index
    %c0_44 = arith.constant 0 : index
    %65 = vector.load %arg5[%c4, %c0_43, %c0_44] : memref<26x128x128xbf16, #tpu.memory_space<vmem>>, vector<1x128x128xbf16>
    %66 = vector.shape_cast %65 : vector<1x128x128xbf16> to vector<128x128xbf16>
    %cst_45 = arith.constant dense<0.000000e+00> : vector<128x128xf32>
    %67 = tpu.matmul %64, %66, %cst_45 {dimension_numbers = #tpu.dot_dimension_numbers<[1], [0], [0], [1], [0, 0, 1, 1], [], []>} : vector<128x128xbf16>, vector<128x128xbf16>, vector<128x128xf32> -> vector<128x128xf32>
    %c4_46 = arith.constant 4 : index
    %c0_47 = arith.constant 0 : index
    %c0_48 = arith.constant 0 : index
    %68 = vector.load %arg6[%c4_46, %c0_47, %c0_48] : memref<20x1x128xf32, #tpu.memory_space<vmem>>, vector<1x1x128xf32>
    %69 = vector.shape_cast %68 : vector<1x1x128xf32> to vector<1x128xf32>
    %70 = vector.broadcast %69 : vector<1x128xf32> to vector<128x128xf32>
    %71 = arith.addf %67, %70 : vector<128x128xf32>
    %72 = arith.addf %47, %71 : vector<128x128xf32>
    %73 = arith.truncf %72 : vector<128x128xf32> to vector<128x128xbf16>
    %cst_49 = arith.constant dense<0.000000e+00> : vector<128x128xf32>
    %74 = tpu.matmul %0, %73, %cst_49 {dimension_numbers = #tpu.dot_dimension_numbers<[1], [0], [0], [1], [0, 0, 1, 1], [], []>} : vector<128x128xbf16>, vector<128x128xbf16>, vector<128x128xf32> -> vector<128x128xf32>
    %75 = arith.truncf %74 : vector<128x128xf32> to vector<128x128xbf16>
    %cst_50 = arith.constant dense<0.000000e+00> : vector<128x128xf32>
    %76 = tpu.matmul %1, %73, %cst_50 {dimension_numbers = #tpu.dot_dimension_numbers<[1], [0], [0], [1], [0, 0, 1, 1], [], []>} : vector<128x128xbf16>, vector<128x128xbf16>, vector<128x128xf32> -> vector<128x128xf32>
    %77 = arith.truncf %76 : vector<128x128xf32> to vector<128x128xbf16>
    %c5 = arith.constant 5 : index
    %c0_51 = arith.constant 0 : index
    %c0_52 = arith.constant 0 : index
    %78 = vector.load %arg5[%c5, %c0_51, %c0_52] : memref<26x128x128xbf16, #tpu.memory_space<vmem>>, vector<1x128x128xbf16>
    %79 = vector.shape_cast %78 : vector<1x128x128xbf16> to vector<128x128xbf16>
    %cst_53 = arith.constant dense<0.000000e+00> : vector<128x128xf32>
    %80 = tpu.matmul %75, %79, %cst_53 {dimension_numbers = #tpu.dot_dimension_numbers<[1], [0], [0], [1], [0, 0, 1, 1], [], []>} : vector<128x128xbf16>, vector<128x128xbf16>, vector<128x128xf32> -> vector<128x128xf32>
    %c6 = arith.constant 6 : index
    %c0_54 = arith.constant 0 : index
    %c0_55 = arith.constant 0 : index
    %81 = vector.load %arg5[%c6, %c0_54, %c0_55] : memref<26x128x128xbf16, #tpu.memory_space<vmem>>, vector<1x128x128xbf16>
    %82 = vector.shape_cast %81 : vector<1x128x128xbf16> to vector<128x128xbf16>
    %cst_56 = arith.constant dense<0.000000e+00> : vector<128x128xf32>
    %83 = tpu.matmul %77, %82, %cst_56 {dimension_numbers = #tpu.dot_dimension_numbers<[1], [0], [0], [1], [0, 0, 1, 1], [], []>} : vector<128x128xbf16>, vector<128x128xbf16>, vector<128x128xf32> -> vector<128x128xf32>
    %84 = arith.addf %80, %83 : vector<128x128xf32>
    %c7 = arith.constant 7 : index
    %c0_57 = arith.constant 0 : index
    %c0_58 = arith.constant 0 : index
    %85 = vector.load %arg5[%c7, %c0_57, %c0_58] : memref<26x128x128xbf16, #tpu.memory_space<vmem>>, vector<1x128x128xbf16>
    %86 = vector.shape_cast %85 : vector<1x128x128xbf16> to vector<128x128xbf16>
    %cst_59 = arith.constant dense<0.000000e+00> : vector<128x128xf32>
    %87 = tpu.matmul %36, %86, %cst_59 {dimension_numbers = #tpu.dot_dimension_numbers<[1], [0], [0], [1], [0, 0, 1, 1], [], []>} : vector<128x128xbf16>, vector<128x128xbf16>, vector<128x128xf32> -> vector<128x128xf32>
    %88 = arith.addf %84, %87 : vector<128x128xf32>
    %c5_60 = arith.constant 5 : index
    %c0_61 = arith.constant 0 : index
    %c0_62 = arith.constant 0 : index
    %89 = vector.load %arg6[%c5_60, %c0_61, %c0_62] : memref<20x1x128xf32, #tpu.memory_space<vmem>>, vector<1x1x128xf32>
    %90 = vector.shape_cast %89 : vector<1x1x128xf32> to vector<1x128xf32>
    %91 = vector.broadcast %90 : vector<1x128xf32> to vector<128x128xf32>
    %92 = arith.addf %88, %91 : vector<128x128xf32>
    %cst_63 = arith.constant 5.000000e-01 : f32
    %93 = vector.broadcast %cst_63 : f32 to vector<128x128xf32>
    %94 = arith.mulf %93, %92 : vector<128x128xf32>
    %cst_64 = arith.constant 5.000000e-01 : f32
    %95 = vector.broadcast %cst_64 : f32 to vector<128x128xf32>
    %96 = arith.mulf %95, %92 : vector<128x128xf32>
    %97 = math.tanh %96 : vector<128x128xf32>
    %cst_65 = arith.constant 1.000000e+00 : f32
    %98 = vector.broadcast %cst_65 : f32 to vector<128x128xf32>
    %99 = arith.addf %98, %97 : vector<128x128xf32>
    %100 = arith.mulf %94, %99 : vector<128x128xf32>
    %101 = arith.truncf %100 : vector<128x128xf32> to vector<128x128xbf16>
    %c8 = arith.constant 8 : index
    %c0_66 = arith.constant 0 : index
    %c0_67 = arith.constant 0 : index
    %102 = vector.load %arg5[%c8, %c0_66, %c0_67] : memref<26x128x128xbf16, #tpu.memory_space<vmem>>, vector<1x128x128xbf16>
    %103 = vector.shape_cast %102 : vector<1x128x128xbf16> to vector<128x128xbf16>
    %cst_68 = arith.constant dense<0.000000e+00> : vector<128x128xf32>
    %104 = tpu.matmul %101, %103, %cst_68 {dimension_numbers = #tpu.dot_dimension_numbers<[1], [0], [0], [1], [0, 0, 1, 1], [], []>} : vector<128x128xbf16>, vector<128x128xbf16>, vector<128x128xf32> -> vector<128x128xf32>
    %c6_69 = arith.constant 6 : index
    %c0_70 = arith.constant 0 : index
    %c0_71 = arith.constant 0 : index
    %105 = vector.load %arg6[%c6_69, %c0_70, %c0_71] : memref<20x1x128xf32, #tpu.memory_space<vmem>>, vector<1x1x128xf32>
    %106 = vector.shape_cast %105 : vector<1x1x128xf32> to vector<1x128xf32>
    %107 = vector.broadcast %106 : vector<1x128xf32> to vector<128x128xf32>
    %108 = arith.addf %104, %107 : vector<128x128xf32>
    %cst_72 = arith.constant 5.000000e-01 : f32
    %109 = vector.broadcast %cst_72 : f32 to vector<128x128xf32>
    %110 = arith.mulf %109, %108 : vector<128x128xf32>
    %cst_73 = arith.constant 5.000000e-01 : f32
    %111 = vector.broadcast %cst_73 : f32 to vector<128x128xf32>
    %112 = arith.mulf %111, %108 : vector<128x128xf32>
    %113 = math.tanh %112 : vector<128x128xf32>
    %cst_74 = arith.constant 1.000000e+00 : f32
    %114 = vector.broadcast %cst_74 : f32 to vector<128x128xf32>
    %115 = arith.addf %114, %113 : vector<128x128xf32>
    %116 = arith.mulf %110, %115 : vector<128x128xf32>
    %117 = arith.truncf %116 : vector<128x128xf32> to vector<128x128xbf16>
    %cst_75 = arith.constant dense<0.000000e+00> : vector<128x128xf32>
    %118 = tpu.matmul %2, %117, %cst_75 {dimension_numbers = #tpu.dot_dimension_numbers<[1], [0], [0], [1], [0, 0, 1, 1], [], []>} : vector<128x128xbf16>, vector<128x128xbf16>, vector<128x128xf32> -> vector<128x128xf32>
    %119 = arith.addf %72, %118 : vector<128x128xf32>
    %120 = arith.truncf %119 : vector<128x128xf32> to vector<128x128xbf16>
    %c9 = arith.constant 9 : index
    %c0_76 = arith.constant 0 : index
    %c0_77 = arith.constant 0 : index
    %121 = vector.load %arg5[%c9, %c0_76, %c0_77] : memref<26x128x128xbf16, #tpu.memory_space<vmem>>, vector<1x128x128xbf16>
    %122 = vector.shape_cast %121 : vector<1x128x128xbf16> to vector<128x128xbf16>
    %cst_78 = arith.constant dense<0.000000e+00> : vector<128x128xf32>
    %123 = tpu.matmul %120, %122, %cst_78 {dimension_numbers = #tpu.dot_dimension_numbers<[1], [0], [0], [1], [0, 0, 1, 1], [], []>} : vector<128x128xbf16>, vector<128x128xbf16>, vector<128x128xf32> -> vector<128x128xf32>
    %c7_79 = arith.constant 7 : index
    %c0_80 = arith.constant 0 : index
    %c0_81 = arith.constant 0 : index
    %124 = vector.load %arg6[%c7_79, %c0_80, %c0_81] : memref<20x1x128xf32, #tpu.memory_space<vmem>>, vector<1x1x128xf32>
    %125 = vector.shape_cast %124 : vector<1x1x128xf32> to vector<1x128xf32>
    %126 = vector.broadcast %125 : vector<1x128xf32> to vector<128x128xf32>
    %127 = arith.addf %123, %126 : vector<128x128xf32>
    %cst_82 = arith.constant 5.000000e-01 : f32
    %128 = vector.broadcast %cst_82 : f32 to vector<128x128xf32>
    %129 = arith.mulf %128, %127 : vector<128x128xf32>
    %cst_83 = arith.constant 5.000000e-01 : f32
    %130 = vector.broadcast %cst_83 : f32 to vector<128x128xf32>
    %131 = arith.mulf %130, %127 : vector<128x128xf32>
    %132 = math.tanh %131 : vector<128x128xf32>
    %cst_84 = arith.constant 1.000000e+00 : f32
    %133 = vector.broadcast %cst_84 : f32 to vector<128x128xf32>
    %134 = arith.addf %133, %132 : vector<128x128xf32>
    %135 = arith.mulf %129, %134 : vector<128x128xf32>
    %136 = arith.truncf %135 : vector<128x128xf32> to vector<128x128xbf16>
    %c10 = arith.constant 10 : index
    %c0_85 = arith.constant 0 : index
    %c0_86 = arith.constant 0 : index
    %137 = vector.load %arg5[%c10, %c0_85, %c0_86] : memref<26x128x128xbf16, #tpu.memory_space<vmem>>, vector<1x128x128xbf16>
    %138 = vector.shape_cast %137 : vector<1x128x128xbf16> to vector<128x128xbf16>
    %cst_87 = arith.constant dense<0.000000e+00> : vector<128x128xf32>
    %139 = tpu.matmul %136, %138, %cst_87 {dimension_numbers = #tpu.dot_dimension_numbers<[1], [0], [0], [1], [0, 0, 1, 1], [], []>} : vector<128x128xbf16>, vector<128x128xbf16>, vector<128x128xf32> -> vector<128x128xf32>
    %c8_88 = arith.constant 8 : index
    %c0_89 = arith.constant 0 : index
    %c0_90 = arith.constant 0 : index
    %140 = vector.load %arg6[%c8_88, %c0_89, %c0_90] : memref<20x1x128xf32, #tpu.memory_space<vmem>>, vector<1x1x128xf32>
    %141 = vector.shape_cast %140 : vector<1x1x128xf32> to vector<1x128xf32>
    %142 = vector.broadcast %141 : vector<1x128xf32> to vector<128x128xf32>
    %143 = arith.addf %139, %142 : vector<128x128xf32>
    %144 = arith.addf %119, %143 : vector<128x128xf32>
    %145 = arith.truncf %144 : vector<128x128xf32> to vector<128x128xbf16>
    %cst_91 = arith.constant dense<0.000000e+00> : vector<128x128xf32>
    %146 = tpu.matmul %0, %145, %cst_91 {dimension_numbers = #tpu.dot_dimension_numbers<[1], [0], [0], [1], [0, 0, 1, 1], [], []>} : vector<128x128xbf16>, vector<128x128xbf16>, vector<128x128xf32> -> vector<128x128xf32>
    %147 = arith.truncf %146 : vector<128x128xf32> to vector<128x128xbf16>
    %cst_92 = arith.constant dense<0.000000e+00> : vector<128x128xf32>
    %148 = tpu.matmul %1, %145, %cst_92 {dimension_numbers = #tpu.dot_dimension_numbers<[1], [0], [0], [1], [0, 0, 1, 1], [], []>} : vector<128x128xbf16>, vector<128x128xbf16>, vector<128x128xf32> -> vector<128x128xf32>
    %149 = arith.truncf %148 : vector<128x128xf32> to vector<128x128xbf16>
    %c11 = arith.constant 11 : index
    %c0_93 = arith.constant 0 : index
    %c0_94 = arith.constant 0 : index
    %150 = vector.load %arg5[%c11, %c0_93, %c0_94] : memref<26x128x128xbf16, #tpu.memory_space<vmem>>, vector<1x128x128xbf16>
    %151 = vector.shape_cast %150 : vector<1x128x128xbf16> to vector<128x128xbf16>
    %cst_95 = arith.constant dense<0.000000e+00> : vector<128x128xf32>
    %152 = tpu.matmul %147, %151, %cst_95 {dimension_numbers = #tpu.dot_dimension_numbers<[1], [0], [0], [1], [0, 0, 1, 1], [], []>} : vector<128x128xbf16>, vector<128x128xbf16>, vector<128x128xf32> -> vector<128x128xf32>
    %c12 = arith.constant 12 : index
    %c0_96 = arith.constant 0 : index
    %c0_97 = arith.constant 0 : index
    %153 = vector.load %arg5[%c12, %c0_96, %c0_97] : memref<26x128x128xbf16, #tpu.memory_space<vmem>>, vector<1x128x128xbf16>
    %154 = vector.shape_cast %153 : vector<1x128x128xbf16> to vector<128x128xbf16>
    %cst_98 = arith.constant dense<0.000000e+00> : vector<128x128xf32>
    %155 = tpu.matmul %149, %154, %cst_98 {dimension_numbers = #tpu.dot_dimension_numbers<[1], [0], [0], [1], [0, 0, 1, 1], [], []>} : vector<128x128xbf16>, vector<128x128xbf16>, vector<128x128xf32> -> vector<128x128xf32>
    %156 = arith.addf %152, %155 : vector<128x128xf32>
    %c13 = arith.constant 13 : index
    %c0_99 = arith.constant 0 : index
    %c0_100 = arith.constant 0 : index
    %157 = vector.load %arg5[%c13, %c0_99, %c0_100] : memref<26x128x128xbf16, #tpu.memory_space<vmem>>, vector<1x128x128xbf16>
    %158 = vector.shape_cast %157 : vector<1x128x128xbf16> to vector<128x128xbf16>
    %cst_101 = arith.constant dense<0.000000e+00> : vector<128x128xf32>
    %159 = tpu.matmul %117, %158, %cst_101 {dimension_numbers = #tpu.dot_dimension_numbers<[1], [0], [0], [1], [0, 0, 1, 1], [], []>} : vector<128x128xbf16>, vector<128x128xbf16>, vector<128x128xf32> -> vector<128x128xf32>
    %160 = arith.addf %156, %159 : vector<128x128xf32>
    %c9_102 = arith.constant 9 : index
    %c0_103 = arith.constant 0 : index
    %c0_104 = arith.constant 0 : index
    %161 = vector.load %arg6[%c9_102, %c0_103, %c0_104] : memref<20x1x128xf32, #tpu.memory_space<vmem>>, vector<1x1x128xf32>
    %162 = vector.shape_cast %161 : vector<1x1x128xf32> to vector<1x128xf32>
    %163 = vector.broadcast %162 : vector<1x128xf32> to vector<128x128xf32>
    %164 = arith.addf %160, %163 : vector<128x128xf32>
    %cst_105 = arith.constant 5.000000e-01 : f32
    %165 = vector.broadcast %cst_105 : f32 to vector<128x128xf32>
    %166 = arith.mulf %165, %164 : vector<128x128xf32>
    %cst_106 = arith.constant 5.000000e-01 : f32
    %167 = vector.broadcast %cst_106 : f32 to vector<128x128xf32>
    %168 = arith.mulf %167, %164 : vector<128x128xf32>
    %169 = math.tanh %168 : vector<128x128xf32>
    %cst_107 = arith.constant 1.000000e+00 : f32
    %170 = vector.broadcast %cst_107 : f32 to vector<128x128xf32>
    %171 = arith.addf %170, %169 : vector<128x128xf32>
    %172 = arith.mulf %166, %171 : vector<128x128xf32>
    %173 = arith.truncf %172 : vector<128x128xf32> to vector<128x128xbf16>
    %c14 = arith.constant 14 : index
    %c0_108 = arith.constant 0 : index
    %c0_109 = arith.constant 0 : index
    %174 = vector.load %arg5[%c14, %c0_108, %c0_109] : memref<26x128x128xbf16, #tpu.memory_space<vmem>>, vector<1x128x128xbf16>
    %175 = vector.shape_cast %174 : vector<1x128x128xbf16> to vector<128x128xbf16>
    %cst_110 = arith.constant dense<0.000000e+00> : vector<128x128xf32>
    %176 = tpu.matmul %173, %175, %cst_110 {dimension_numbers = #tpu.dot_dimension_numbers<[1], [0], [0], [1], [0, 0, 1, 1], [], []>} : vector<128x128xbf16>, vector<128x128xbf16>, vector<128x128xf32> -> vector<128x128xf32>
    %c10_111 = arith.constant 10 : index
    %c0_112 = arith.constant 0 : index
    %c0_113 = arith.constant 0 : index
    %177 = vector.load %arg6[%c10_111, %c0_112, %c0_113] : memref<20x1x128xf32, #tpu.memory_space<vmem>>, vector<1x1x128xf32>
    %178 = vector.shape_cast %177 : vector<1x1x128xf32> to vector<1x128xf32>
    %179 = vector.broadcast %178 : vector<1x128xf32> to vector<128x128xf32>
    %180 = arith.addf %176, %179 : vector<128x128xf32>
    %cst_114 = arith.constant 5.000000e-01 : f32
    %181 = vector.broadcast %cst_114 : f32 to vector<128x128xf32>
    %182 = arith.mulf %181, %180 : vector<128x128xf32>
    %cst_115 = arith.constant 5.000000e-01 : f32
    %183 = vector.broadcast %cst_115 : f32 to vector<128x128xf32>
    %184 = arith.mulf %183, %180 : vector<128x128xf32>
    %185 = math.tanh %184 : vector<128x128xf32>
    %cst_116 = arith.constant 1.000000e+00 : f32
    %186 = vector.broadcast %cst_116 : f32 to vector<128x128xf32>
    %187 = arith.addf %186, %185 : vector<128x128xf32>
    %188 = arith.mulf %182, %187 : vector<128x128xf32>
    %189 = arith.truncf %188 : vector<128x128xf32> to vector<128x128xbf16>
    %cst_117 = arith.constant dense<0.000000e+00> : vector<128x128xf32>
    %190 = tpu.matmul %2, %189, %cst_117 {dimension_numbers = #tpu.dot_dimension_numbers<[1], [0], [0], [1], [0, 0, 1, 1], [], []>} : vector<128x128xbf16>, vector<128x128xbf16>, vector<128x128xf32> -> vector<128x128xf32>
    %191 = arith.addf %144, %190 : vector<128x128xf32>
    %192 = arith.truncf %191 : vector<128x128xf32> to vector<128x128xbf16>
    %c15 = arith.constant 15 : index
    %c0_118 = arith.constant 0 : index
    %c0_119 = arith.constant 0 : index
    %193 = vector.load %arg5[%c15, %c0_118, %c0_119] : memref<26x128x128xbf16, #tpu.memory_space<vmem>>, vector<1x128x128xbf16>
    %194 = vector.shape_cast %193 : vector<1x128x128xbf16> to vector<128x128xbf16>
    %cst_120 = arith.constant dense<0.000000e+00> : vector<128x128xf32>
    %195 = tpu.matmul %192, %194, %cst_120 {dimension_numbers = #tpu.dot_dimension_numbers<[1], [0], [0], [1], [0, 0, 1, 1], [], []>} : vector<128x128xbf16>, vector<128x128xbf16>, vector<128x128xf32> -> vector<128x128xf32>
    %c11_121 = arith.constant 11 : index
    %c0_122 = arith.constant 0 : index
    %c0_123 = arith.constant 0 : index
    %196 = vector.load %arg6[%c11_121, %c0_122, %c0_123] : memref<20x1x128xf32, #tpu.memory_space<vmem>>, vector<1x1x128xf32>
    %197 = vector.shape_cast %196 : vector<1x1x128xf32> to vector<1x128xf32>
    %198 = vector.broadcast %197 : vector<1x128xf32> to vector<128x128xf32>
    %199 = arith.addf %195, %198 : vector<128x128xf32>
    %cst_124 = arith.constant 5.000000e-01 : f32
    %200 = vector.broadcast %cst_124 : f32 to vector<128x128xf32>
    %201 = arith.mulf %200, %199 : vector<128x128xf32>
    %cst_125 = arith.constant 5.000000e-01 : f32
    %202 = vector.broadcast %cst_125 : f32 to vector<128x128xf32>
    %203 = arith.mulf %202, %199 : vector<128x128xf32>
    %204 = math.tanh %203 : vector<128x128xf32>
    %cst_126 = arith.constant 1.000000e+00 : f32
    %205 = vector.broadcast %cst_126 : f32 to vector<128x128xf32>
    %206 = arith.addf %205, %204 : vector<128x128xf32>
    %207 = arith.mulf %201, %206 : vector<128x128xf32>
    %208 = arith.truncf %207 : vector<128x128xf32> to vector<128x128xbf16>
    %c16 = arith.constant 16 : index
    %c0_127 = arith.constant 0 : index
    %c0_128 = arith.constant 0 : index
    %209 = vector.load %arg5[%c16, %c0_127, %c0_128] : memref<26x128x128xbf16, #tpu.memory_space<vmem>>, vector<1x128x128xbf16>
    %210 = vector.shape_cast %209 : vector<1x128x128xbf16> to vector<128x128xbf16>
    %cst_129 = arith.constant dense<0.000000e+00> : vector<128x128xf32>
    %211 = tpu.matmul %208, %210, %cst_129 {dimension_numbers = #tpu.dot_dimension_numbers<[1], [0], [0], [1], [0, 0, 1, 1], [], []>} : vector<128x128xbf16>, vector<128x128xbf16>, vector<128x128xf32> -> vector<128x128xf32>
    %c12_130 = arith.constant 12 : index
    %c0_131 = arith.constant 0 : index
    %c0_132 = arith.constant 0 : index
    %212 = vector.load %arg6[%c12_130, %c0_131, %c0_132] : memref<20x1x128xf32, #tpu.memory_space<vmem>>, vector<1x1x128xf32>
    %213 = vector.shape_cast %212 : vector<1x1x128xf32> to vector<1x128xf32>
    %214 = vector.broadcast %213 : vector<1x128xf32> to vector<128x128xf32>
    %215 = arith.addf %211, %214 : vector<128x128xf32>
    %216 = arith.addf %191, %215 : vector<128x128xf32>
    %217 = arith.truncf %216 : vector<128x128xf32> to vector<128x128xbf16>
    %cst_133 = arith.constant dense<0.000000e+00> : vector<128x128xf32>
    %218 = tpu.matmul %0, %217, %cst_133 {dimension_numbers = #tpu.dot_dimension_numbers<[1], [0], [0], [1], [0, 0, 1, 1], [], []>} : vector<128x128xbf16>, vector<128x128xbf16>, vector<128x128xf32> -> vector<128x128xf32>
    %219 = arith.truncf %218 : vector<128x128xf32> to vector<128x128xbf16>
    %cst_134 = arith.constant dense<0.000000e+00> : vector<128x128xf32>
    %220 = tpu.matmul %1, %217, %cst_134 {dimension_numbers = #tpu.dot_dimension_numbers<[1], [0], [0], [1], [0, 0, 1, 1], [], []>} : vector<128x128xbf16>, vector<128x128xbf16>, vector<128x128xf32> -> vector<128x128xf32>
    %221 = arith.truncf %220 : vector<128x128xf32> to vector<128x128xbf16>
    %c17 = arith.constant 17 : index
    %c0_135 = arith.constant 0 : index
    %c0_136 = arith.constant 0 : index
    %222 = vector.load %arg5[%c17, %c0_135, %c0_136] : memref<26x128x128xbf16, #tpu.memory_space<vmem>>, vector<1x128x128xbf16>
    %223 = vector.shape_cast %222 : vector<1x128x128xbf16> to vector<128x128xbf16>
    %cst_137 = arith.constant dense<0.000000e+00> : vector<128x128xf32>
    %224 = tpu.matmul %219, %223, %cst_137 {dimension_numbers = #tpu.dot_dimension_numbers<[1], [0], [0], [1], [0, 0, 1, 1], [], []>} : vector<128x128xbf16>, vector<128x128xbf16>, vector<128x128xf32> -> vector<128x128xf32>
    %c18 = arith.constant 18 : index
    %c0_138 = arith.constant 0 : index
    %c0_139 = arith.constant 0 : index
    %225 = vector.load %arg5[%c18, %c0_138, %c0_139] : memref<26x128x128xbf16, #tpu.memory_space<vmem>>, vector<1x128x128xbf16>
    %226 = vector.shape_cast %225 : vector<1x128x128xbf16> to vector<128x128xbf16>
    %cst_140 = arith.constant dense<0.000000e+00> : vector<128x128xf32>
    %227 = tpu.matmul %221, %226, %cst_140 {dimension_numbers = #tpu.dot_dimension_numbers<[1], [0], [0], [1], [0, 0, 1, 1], [], []>} : vector<128x128xbf16>, vector<128x128xbf16>, vector<128x128xf32> -> vector<128x128xf32>
    %228 = arith.addf %224, %227 : vector<128x128xf32>
    %c19 = arith.constant 19 : index
    %c0_141 = arith.constant 0 : index
    %c0_142 = arith.constant 0 : index
    %229 = vector.load %arg5[%c19, %c0_141, %c0_142] : memref<26x128x128xbf16, #tpu.memory_space<vmem>>, vector<1x128x128xbf16>
    %230 = vector.shape_cast %229 : vector<1x128x128xbf16> to vector<128x128xbf16>
    %cst_143 = arith.constant dense<0.000000e+00> : vector<128x128xf32>
    %231 = tpu.matmul %189, %230, %cst_143 {dimension_numbers = #tpu.dot_dimension_numbers<[1], [0], [0], [1], [0, 0, 1, 1], [], []>} : vector<128x128xbf16>, vector<128x128xbf16>, vector<128x128xf32> -> vector<128x128xf32>
    %232 = arith.addf %228, %231 : vector<128x128xf32>
    %c13_144 = arith.constant 13 : index
    %c0_145 = arith.constant 0 : index
    %c0_146 = arith.constant 0 : index
    %233 = vector.load %arg6[%c13_144, %c0_145, %c0_146] : memref<20x1x128xf32, #tpu.memory_space<vmem>>, vector<1x1x128xf32>
    %234 = vector.shape_cast %233 : vector<1x1x128xf32> to vector<1x128xf32>
    %235 = vector.broadcast %234 : vector<1x128xf32> to vector<128x128xf32>
    %236 = arith.addf %232, %235 : vector<128x128xf32>
    %cst_147 = arith.constant 5.000000e-01 : f32
    %237 = vector.broadcast %cst_147 : f32 to vector<128x128xf32>
    %238 = arith.mulf %237, %236 : vector<128x128xf32>
    %cst_148 = arith.constant 5.000000e-01 : f32
    %239 = vector.broadcast %cst_148 : f32 to vector<128x128xf32>
    %240 = arith.mulf %239, %236 : vector<128x128xf32>
    %241 = math.tanh %240 : vector<128x128xf32>
    %cst_149 = arith.constant 1.000000e+00 : f32
    %242 = vector.broadcast %cst_149 : f32 to vector<128x128xf32>
    %243 = arith.addf %242, %241 : vector<128x128xf32>
    %244 = arith.mulf %238, %243 : vector<128x128xf32>
    %245 = arith.truncf %244 : vector<128x128xf32> to vector<128x128xbf16>
    %c20 = arith.constant 20 : index
    %c0_150 = arith.constant 0 : index
    %c0_151 = arith.constant 0 : index
    %246 = vector.load %arg5[%c20, %c0_150, %c0_151] : memref<26x128x128xbf16, #tpu.memory_space<vmem>>, vector<1x128x128xbf16>
    %247 = vector.shape_cast %246 : vector<1x128x128xbf16> to vector<128x128xbf16>
    %cst_152 = arith.constant dense<0.000000e+00> : vector<128x128xf32>
    %248 = tpu.matmul %245, %247, %cst_152 {dimension_numbers = #tpu.dot_dimension_numbers<[1], [0], [0], [1], [0, 0, 1, 1], [], []>} : vector<128x128xbf16>, vector<128x128xbf16>, vector<128x128xf32> -> vector<128x128xf32>
    %c14_153 = arith.constant 14 : index
    %c0_154 = arith.constant 0 : index
    %c0_155 = arith.constant 0 : index
    %249 = vector.load %arg6[%c14_153, %c0_154, %c0_155] : memref<20x1x128xf32, #tpu.memory_space<vmem>>, vector<1x1x128xf32>
    %250 = vector.shape_cast %249 : vector<1x1x128xf32> to vector<1x128xf32>
    %251 = vector.broadcast %250 : vector<1x128xf32> to vector<128x128xf32>
    %252 = arith.addf %248, %251 : vector<128x128xf32>
    %cst_156 = arith.constant 5.000000e-01 : f32
    %253 = vector.broadcast %cst_156 : f32 to vector<128x128xf32>
    %254 = arith.mulf %253, %252 : vector<128x128xf32>
    %cst_157 = arith.constant 5.000000e-01 : f32
    %255 = vector.broadcast %cst_157 : f32 to vector<128x128xf32>
    %256 = arith.mulf %255, %252 : vector<128x128xf32>
    %257 = math.tanh %256 : vector<128x128xf32>
    %cst_158 = arith.constant 1.000000e+00 : f32
    %258 = vector.broadcast %cst_158 : f32 to vector<128x128xf32>
    %259 = arith.addf %258, %257 : vector<128x128xf32>
    %260 = arith.mulf %254, %259 : vector<128x128xf32>
    %261 = arith.truncf %260 : vector<128x128xf32> to vector<128x128xbf16>
    %cst_159 = arith.constant dense<0.000000e+00> : vector<128x128xf32>
    %262 = tpu.matmul %2, %261, %cst_159 {dimension_numbers = #tpu.dot_dimension_numbers<[1], [0], [0], [1], [0, 0, 1, 1], [], []>} : vector<128x128xbf16>, vector<128x128xbf16>, vector<128x128xf32> -> vector<128x128xf32>
    %263 = arith.addf %216, %262 : vector<128x128xf32>
    %264 = arith.truncf %263 : vector<128x128xf32> to vector<128x128xbf16>
    %c21 = arith.constant 21 : index
    %c0_160 = arith.constant 0 : index
    %c0_161 = arith.constant 0 : index
    %265 = vector.load %arg5[%c21, %c0_160, %c0_161] : memref<26x128x128xbf16, #tpu.memory_space<vmem>>, vector<1x128x128xbf16>
    %266 = vector.shape_cast %265 : vector<1x128x128xbf16> to vector<128x128xbf16>
    %cst_162 = arith.constant dense<0.000000e+00> : vector<128x128xf32>
    %267 = tpu.matmul %264, %266, %cst_162 {dimension_numbers = #tpu.dot_dimension_numbers<[1], [0], [0], [1], [0, 0, 1, 1], [], []>} : vector<128x128xbf16>, vector<128x128xbf16>, vector<128x128xf32> -> vector<128x128xf32>
    %c15_163 = arith.constant 15 : index
    %c0_164 = arith.constant 0 : index
    %c0_165 = arith.constant 0 : index
    %268 = vector.load %arg6[%c15_163, %c0_164, %c0_165] : memref<20x1x128xf32, #tpu.memory_space<vmem>>, vector<1x1x128xf32>
    %269 = vector.shape_cast %268 : vector<1x1x128xf32> to vector<1x128xf32>
    %270 = vector.broadcast %269 : vector<1x128xf32> to vector<128x128xf32>
    %271 = arith.addf %267, %270 : vector<128x128xf32>
    %cst_166 = arith.constant 5.000000e-01 : f32
    %272 = vector.broadcast %cst_166 : f32 to vector<128x128xf32>
    %273 = arith.mulf %272, %271 : vector<128x128xf32>
    %cst_167 = arith.constant 5.000000e-01 : f32
    %274 = vector.broadcast %cst_167 : f32 to vector<128x128xf32>
    %275 = arith.mulf %274, %271 : vector<128x128xf32>
    %276 = math.tanh %275 : vector<128x128xf32>
    %cst_168 = arith.constant 1.000000e+00 : f32
    %277 = vector.broadcast %cst_168 : f32 to vector<128x128xf32>
    %278 = arith.addf %277, %276 : vector<128x128xf32>
    %279 = arith.mulf %273, %278 : vector<128x128xf32>
    %280 = arith.truncf %279 : vector<128x128xf32> to vector<128x128xbf16>
    %c22 = arith.constant 22 : index
    %c0_169 = arith.constant 0 : index
    %c0_170 = arith.constant 0 : index
    %281 = vector.load %arg5[%c22, %c0_169, %c0_170] : memref<26x128x128xbf16, #tpu.memory_space<vmem>>, vector<1x128x128xbf16>
    %282 = vector.shape_cast %281 : vector<1x128x128xbf16> to vector<128x128xbf16>
    %cst_171 = arith.constant dense<0.000000e+00> : vector<128x128xf32>
    %283 = tpu.matmul %280, %282, %cst_171 {dimension_numbers = #tpu.dot_dimension_numbers<[1], [0], [0], [1], [0, 0, 1, 1], [], []>} : vector<128x128xbf16>, vector<128x128xbf16>, vector<128x128xf32> -> vector<128x128xf32>
    %c16_172 = arith.constant 16 : index
    %c0_173 = arith.constant 0 : index
    %c0_174 = arith.constant 0 : index
    %284 = vector.load %arg6[%c16_172, %c0_173, %c0_174] : memref<20x1x128xf32, #tpu.memory_space<vmem>>, vector<1x1x128xf32>
    %285 = vector.shape_cast %284 : vector<1x1x128xf32> to vector<1x128xf32>
    %286 = vector.broadcast %285 : vector<1x128xf32> to vector<128x128xf32>
    %287 = arith.addf %283, %286 : vector<128x128xf32>
    %288 = arith.addf %263, %287 : vector<128x128xf32>
    %289 = arith.truncf %288 : vector<128x128xf32> to vector<128x128xbf16>
    %c23 = arith.constant 23 : index
    %c0_175 = arith.constant 0 : index
    %c0_176 = arith.constant 0 : index
    %290 = vector.load %arg5[%c23, %c0_175, %c0_176] : memref<26x128x128xbf16, #tpu.memory_space<vmem>>, vector<1x128x128xbf16>
    %291 = vector.shape_cast %290 : vector<1x128x128xbf16> to vector<128x128xbf16>
    %cst_177 = arith.constant dense<0.000000e+00> : vector<128x128xf32>
    %292 = tpu.matmul %289, %291, %cst_177 {dimension_numbers = #tpu.dot_dimension_numbers<[1], [0], [0], [1], [0, 0, 1, 1], [], []>} : vector<128x128xbf16>, vector<128x128xbf16>, vector<128x128xf32> -> vector<128x128xf32>
    %c17_178 = arith.constant 17 : index
    %c0_179 = arith.constant 0 : index
    %c0_180 = arith.constant 0 : index
    %293 = vector.load %arg6[%c17_178, %c0_179, %c0_180] : memref<20x1x128xf32, #tpu.memory_space<vmem>>, vector<1x1x128xf32>
    %294 = vector.shape_cast %293 : vector<1x1x128xf32> to vector<1x128xf32>
    %295 = vector.broadcast %294 : vector<1x128xf32> to vector<128x128xf32>
    %296 = arith.addf %292, %295 : vector<128x128xf32>
    %cst_181 = arith.constant 5.000000e-01 : f32
    %297 = vector.broadcast %cst_181 : f32 to vector<128x128xf32>
    %298 = arith.mulf %297, %296 : vector<128x128xf32>
    %cst_182 = arith.constant 5.000000e-01 : f32
    %299 = vector.broadcast %cst_182 : f32 to vector<128x128xf32>
    %300 = arith.mulf %299, %296 : vector<128x128xf32>
    %301 = math.tanh %300 : vector<128x128xf32>
    %cst_183 = arith.constant 1.000000e+00 : f32
    %302 = vector.broadcast %cst_183 : f32 to vector<128x128xf32>
    %303 = arith.addf %302, %301 : vector<128x128xf32>
    %304 = arith.mulf %298, %303 : vector<128x128xf32>
    %305 = arith.truncf %304 : vector<128x128xf32> to vector<128x128xbf16>
    %c24 = arith.constant 24 : index
    %c0_184 = arith.constant 0 : index
    %c0_185 = arith.constant 0 : index
    %306 = vector.load %arg5[%c24, %c0_184, %c0_185] : memref<26x128x128xbf16, #tpu.memory_space<vmem>>, vector<1x128x128xbf16>
    %307 = vector.shape_cast %306 : vector<1x128x128xbf16> to vector<128x128xbf16>
    %cst_186 = arith.constant dense<0.000000e+00> : vector<128x128xf32>
    %308 = tpu.matmul %305, %307, %cst_186 {dimension_numbers = #tpu.dot_dimension_numbers<[1], [0], [0], [1], [0, 0, 1, 1], [], []>} : vector<128x128xbf16>, vector<128x128xbf16>, vector<128x128xf32> -> vector<128x128xf32>
    %c18_187 = arith.constant 18 : index
    %c0_188 = arith.constant 0 : index
    %c0_189 = arith.constant 0 : index
    %309 = vector.load %arg6[%c18_187, %c0_188, %c0_189] : memref<20x1x128xf32, #tpu.memory_space<vmem>>, vector<1x1x128xf32>
    %310 = vector.shape_cast %309 : vector<1x1x128xf32> to vector<1x128xf32>
    %311 = vector.broadcast %310 : vector<1x128xf32> to vector<128x128xf32>
    %312 = arith.addf %308, %311 : vector<128x128xf32>
    %cst_190 = arith.constant 5.000000e-01 : f32
    %313 = vector.broadcast %cst_190 : f32 to vector<128x128xf32>
    %314 = arith.mulf %313, %312 : vector<128x128xf32>
    %cst_191 = arith.constant 5.000000e-01 : f32
    %315 = vector.broadcast %cst_191 : f32 to vector<128x128xf32>
    %316 = arith.mulf %315, %312 : vector<128x128xf32>
    %317 = math.tanh %316 : vector<128x128xf32>
    %cst_192 = arith.constant 1.000000e+00 : f32
    %318 = vector.broadcast %cst_192 : f32 to vector<128x128xf32>
    %319 = arith.addf %318, %317 : vector<128x128xf32>
    %320 = arith.mulf %314, %319 : vector<128x128xf32>
    %321 = arith.truncf %320 : vector<128x128xf32> to vector<128x128xbf16>
    %c25 = arith.constant 25 : index
    %c0_193 = arith.constant 0 : index
    %c0_194 = arith.constant 0 : index
    %322 = vector.load %arg5[%c25, %c0_193, %c0_194] : memref<26x128x128xbf16, #tpu.memory_space<vmem>>, vector<1x128x128xbf16>
    %323 = vector.shape_cast %322 : vector<1x128x128xbf16> to vector<128x128xbf16>
    %cst_195 = arith.constant dense<0.000000e+00> : vector<128x128xf32>
    %324 = tpu.matmul %321, %323, %cst_195 {dimension_numbers = #tpu.dot_dimension_numbers<[1], [0], [0], [1], [0, 0, 1, 1], [], []>} : vector<128x128xbf16>, vector<128x128xbf16>, vector<128x128xf32> -> vector<128x128xf32>
    %c19_196 = arith.constant 19 : index
    %c0_197 = arith.constant 0 : index
    %c0_198 = arith.constant 0 : index
    %325 = vector.load %arg6[%c19_196, %c0_197, %c0_198] : memref<20x1x128xf32, #tpu.memory_space<vmem>>, vector<1x1x128xf32>
    %326 = vector.shape_cast %325 : vector<1x1x128xf32> to vector<1x128xf32>
    %327 = vector.broadcast %326 : vector<1x128xf32> to vector<128x128xf32>
    %328 = arith.addf %324, %327 : vector<128x128xf32>
    %c0_199 = arith.constant 0 : index
    %c0_200 = arith.constant 0 : index
    %329 = vector.load %arg7[%c0_199, %c0_200] : memref<128x128xf32, #tpu.memory_space<vmem>>, vector<128x128xf32>
    tpu.vector_store %arg7[%c0_199, %c0_200], %328 {strides = array<i32>} : memref<128x128xf32, #tpu.memory_space<vmem>>, vector<128x128xf32>,
    return
  }
}

</mosaic_0001>

<bundles_post_ra>
// kernel: tpu_custom_call.1
= control target key start
LH: loop header
LB: loop body
LE: loop exit
PB: predicated region body
PF: predicated region fallthrough
CT: control target
= control target key end

     0   :  { %12 = vsyncpa [#allocation3], 0  ;;  %s11309_s0 = inlined_call_operand.hbm [shape: bf16[128,128], index: 0, kind: input, shape index: {}]   ;;  %s11310_s1 = inlined_call_operand.hbm [shape: bf16[128,128], index: 1, kind: input, shape index: {}]   ;;  %s11311_s2 = inlined_call_operand.hbm [shape: bf16[128,128], index: 2, kind: input, shape index: {}]   ;;  %s11312_s3 = inlined_call_operand.hbm [shape: f32[128,128], index: 3, kind: input, shape index: {}]   ;;  %s11313_s4 = inlined_call_operand.hbm [shape: f32[128,128], index: 4, kind: input, shape index: {}]   ;;  %s11314_s5 = inlined_call_operand.hbm [shape: bf16[26,128,128], index: 5, kind: input, shape index: {}]   ;;  %s11315_s6 = inlined_call_operand.vmem [shape: f32[20,1,128], index: 6, kind: input, shape index: {}]   ;;  %s11316_s7 = inlined_call_operand.hbm [shape: f32[128,128], index: 7, kind: output, shape index: {}]  }
   0x1   :  { %13 = vsyncpa [#allocation6], 0 }
   0x2   :  { %14 = vsyncpa [#allocation9], 0 }
   0x3   :  { %15 = vsyncpa [#allocation12], 0 }
   0x4   :  { %16 = vsyncpa [#allocation4], 0  ;;  %s10108_s24 = smov [#allocation5]   ;;  %s10109_s26 = smov [#allocation8]  }
   0x5   :  { %s34_s25 = sshll.u32 %s10108_s24, 4  ;;  %s58_s27 = sshll.u32 %s10109_s26, 4  ;;  %s35_s25 = int_to_ptr.vmem [resolvable:$true] %s34_s25  ;;  %s10159_s27 = int_to_ptr.vmem [resolvable:$true] %s58_s27 }
   0x6   :  { %s9944_s30 = scalar_lea.hbm %s11310_s1, 1024 }
   0x7   :  { %p9945_p0 = scmp.ne.s32.totalorder %s11310_s1, %s9944_s30  ;;  %p9948_p1 = scmp.lt.u32.totalorder %s9944_s30, %s11310_s1 }
   0x9   :  { %p9950_p2 = pnand %p9948_p1, %p9945_p0 }
   0xb   :  { %9953 = shalt.err (!%p9950_p2)
}
   0xc   :  { %s9954_s12 = scalar_lea.vmem %s35_s25, 1024  ;;  %p9959_p4 = scmp.lt.s32.totalorder %s35_s25, %s35_s25 }
   0xd   :  { %p9955_p3 = scmp.ne.s32.totalorder %s35_s25, %s9954_s12  ;;  %p9960_p5 = scmp.lt.s32.totalorder %s9954_s12, %s9954_s12 }
   0xf   :  { %p9961_p6 = por %p9960_p5, %p9959_p4 }
  0x11   :  { %p9962_p7 = pnand %p9961_p6, %p9955_p3 }
  0x13   :  { %9965 = shalt.err (!%p9962_p7)
}
  0x14   :  { %s10110_s13 = smov 64   ;;  %s10111_s14 = smov 4  }
  0x15   :  { %40 = dma.hbm_to_vmem [thread:$0]  %s11310_s1, 1024, %s35_s25, [#allocation6], %s10110_s13, %s10110_s13, %s10111_s14  }
  0x16   :  { %s9966_s19 = scalar_lea.hbm %s11312_s3, 2048 }
  0x17   :  { %p9967_p8 = scmp.ne.s32.totalorder %s11312_s3, %s9966_s19  ;;  %p9970_p9 = scmp.lt.u32.totalorder %s9966_s19, %s11312_s3 }
  0x19   :  { %p9972_p10 = pnand %p9970_p9, %p9967_p8 }
  0x1b   :  { %9975 = shalt.err (!%p9972_p10)
}
  0x1c   :  { %s9976_s24 = scalar_lea.vmem %s10159_s27, 2048  ;;  %p9981_p12 = scmp.lt.s32.totalorder %s10159_s27, %s10159_s27 }
  0x1d   :  { %p9977_p11 = scmp.ne.s32.totalorder %s10159_s27, %s9976_s24  ;;  %p9982_p13 = scmp.lt.s32.totalorder %s9976_s24, %s9976_s24 }
  0x1f   :  { %p9983_p0 = por %p9982_p13, %p9981_p12 }
  0x21   :  { %p9984_p1 = pnand %p9983_p0, %p9977_p11 }
  0x23   :  { %9987 = shalt.err (!%p9984_p1)
}
  0x24   :  { %s10112_s1 = smov 128   ;;  %s10113_s25 = smov 8  }
  0x25   :  { %64 = dma.hbm_to_vmem [thread:$0]  %s11312_s3, 2048, %s10159_s27, [#allocation9], %s10112_s1, %s10112_s1, %s10113_s25  }
  0x26   :  { %s10114_s29 = smov [#allocation2]   ;;  %s10115_s8 = smov [#allocation7]  }
  0x27   :  { %s22_s30 = sshll.u32 %s10114_s29, 4  ;;  %s46_s9 = sshll.u32 %s10115_s8, 4  ;;  %s23_s30 = int_to_ptr.vmem [resolvable:$true] %s22_s30  ;;  %s10196_s9 = int_to_ptr.vmem [resolvable:$true] %s46_s9 }
  0x28   :  { %s9988_s12 = scalar_lea.hbm %s11309_s0, 1024 }
  0x29   :  { %p9989_p2 = scmp.ne.s32.totalorder %s11309_s0, %s9988_s12  ;;  %p9992_p3 = scmp.lt.u32.totalorder %s9988_s12, %s11309_s0 }
  0x2b   :  { %p9994_p4 = pnand %p9992_p3, %p9989_p2 }
  0x2d   :  { %9997 = shalt.err (!%p9994_p4)
}
  0x2e   :  { %s9998_s3 = scalar_lea.vmem %s23_s30, 1024  ;;  %p10003_p6 = scmp.lt.s32.totalorder %s23_s30, %s23_s30 }
  0x2f   :  { %p9999_p5 = scmp.ne.s32.totalorder %s23_s30, %s9998_s3  ;;  %p10004_p7 = scmp.lt.s32.totalorder %s9998_s3, %s9998_s3 }
  0x31   :  { %p10005_p8 = por %p10004_p7, %p10003_p6 }
  0x33   :  { %p10006_p9 = pnand %p10005_p8, %p9999_p5 }
  0x35   :  { %10009 = shalt.err (!%p10006_p9)
}
  0x36   :  { %28 = dma.hbm_to_vmem [thread:$0]  %s11309_s0, 1024, %s23_s30, [#allocation3], %s10110_s13, %s10110_s13, %s10111_s14  }
  0x37   :  { %s10010_s22 = scalar_lea.hbm %s11311_s2, 1024 }
  0x38   :  { %p10011_p10 = scmp.ne.s32.totalorder %s11311_s2, %s10010_s22  ;;  %p10014_p11 = scmp.lt.u32.totalorder %s10010_s22, %s11311_s2 }
  0x3a   :  { %p10016_p12 = pnand %p10014_p11, %p10011_p10 }
  0x3c   :  { %10019 = shalt.err (!%p10016_p12)
}
  0x3d   :  { %s10020_s29 = scalar_lea.vmem %s10196_s9, 1024  ;;  %p10025_p0 = scmp.lt.s32.totalorder %s10196_s9, %s10196_s9 }
  0x3e   :  { %p10021_p13 = scmp.ne.s32.totalorder %s10196_s9, %s10020_s29  ;;  %p10026_p1 = scmp.lt.s32.totalorder %s10020_s29, %s10020_s29 }
  0x40   :  { %p10027_p2 = por %p10026_p1, %p10025_p0 }
  0x42   :  { %p10028_p3 = pnand %p10027_p2, %p10021_p13 }
  0x44   :  { %10031 = shalt.err (!%p10028_p3)
}
  0x45   :  { %52 = dma.hbm_to_vmem [thread:$0]  %s11311_s2, 1024, %s10196_s9, [#allocation6], %s10110_s13, %s10110_s13, %s10111_s14  }
  0x46   :  { %s10116_s8 = smov [#allocation10]   ;;  %s10117_s11 = smov [#allocation11]  }
  0x47   :  { %s70_s10 = sshll.u32 %s10116_s8, 4  ;;  %s82_s12 = sshll.u32 %s10117_s11, 4  ;;  %s71_s10 = int_to_ptr.vmem [resolvable:$true] %s70_s10  ;;  %s10233_s12 = int_to_ptr.vmem [resolvable:$true] %s82_s12 }
  0x48   :  { %s10032_s17 = scalar_lea.hbm %s11313_s4, 2048 }
  0x49   :  { %p10033_p4 = scmp.ne.s32.totalorder %s11313_s4, %s10032_s17  ;;  %p10036_p5 = scmp.lt.u32.totalorder %s10032_s17, %s11313_s4 }
  0x4b   :  { %p10038_p6 = pnand %p10036_p5, %p10033_p4 }
  0x4d   :  { %10041 = shalt.err (!%p10038_p6)
}
  0x4e   :  { %s10042_s2 = scalar_lea.vmem %s71_s10, 2048  ;;  %p10047_p8 = scmp.lt.s32.totalorder %s71_s10, %s71_s10 }
  0x4f   :  { %p10043_p7 = scmp.ne.s32.totalorder %s71_s10, %s10042_s2  ;;  %p10048_p9 = scmp.lt.s32.totalorder %s10042_s2, %s10042_s2 }
  0x51   :  { %p10049_p10 = por %p10048_p9, %p10047_p8 }
  0x53   :  { %p10050_p11 = pnand %p10049_p10, %p10043_p7 }
  0x55   :  { %10053 = shalt.err (!%p10050_p11)
}
  0x56   :  { %76 = dma.hbm_to_vmem [thread:$0]  %s11313_s4, 2048, %s71_s10, [#allocation9], %s10112_s1, %s10112_s1, %s10113_s25  }
  0x57   :  { %s10054_s23 = scalar_lea.hbm %s11314_s5, 26624 }
  0x58   :  { %p10055_p12 = scmp.ne.s32.totalorder %s11314_s5, %s10054_s23  ;;  %p10058_p13 = scmp.lt.u32.totalorder %s10054_s23, %s11314_s5 }
  0x5a   :  { %p10060_p0 = pnand %p10058_p13, %p10055_p12 }
  0x5c   :  { %10063 = shalt.err (!%p10060_p0)
}
  0x5d   :  { %s10064_s0 = scalar_lea.vmem %s10233_s12, 26624  ;;  %p10069_p2 = scmp.lt.s32.totalorder %s10233_s12, %s10233_s12 }
  0x5e   :  { %p10065_p1 = scmp.ne.s32.totalorder %s10233_s12, %s10064_s0  ;;  %p10070_p3 = scmp.lt.s32.totalorder %s10064_s0, %s10064_s0 }
  0x60   :  { %p10071_p4 = por %p10070_p3, %p10069_p2 }
  0x62   :  { %p10072_p5 = pnand %p10071_p4, %p10065_p1 }
  0x64   :  { %10075 = shalt.err (!%p10072_p5)
}
  0x65   :  { %88 = dma.hbm_to_vmem [thread:$0]  %s11314_s5, 26624, %s10233_s12, [#allocation12], %s10110_s13, %s10110_s13, %s10111_s14  }
  0x66   :  { %10098 = dma.done.wait [#allocation3], 1024  }
  0x67   :  { %10099 = vsyncadd [#allocation3], 4294966272 }
  0x68   :  { %10100 = dma.done.wait [#allocation6], 2048  }
  0x69   :  { %10101 = vsyncadd [#allocation6], 4294965248 }
  0x6a   :  { %10102 = dma.done.wait [#allocation9], 4096  }
  0x6b   :  { %10103 = vsyncadd [#allocation9], 4294963200 }
  0x6c   :  { %10104 = dma.done.wait [#allocation12], 26624  }
  0x6d   :  { %10105 = vsyncadd [#allocation12], 4294940672  ;;  %v9208_v0 = vld [vmem:[#allocation11] sm:$0xff]   ;;  %v9209_v1 = vld [vmem:[#allocation11 + $0x8] sm:$0xff]  }
  0x6e   :  { %7917 = vmatprep.subr.bf16.mxu0 %v9208_v0  ;;  %v9210_v2 = vld [vmem:[#allocation11 + $0x10] sm:$0xff]   ;;  %v9211_v3 = vld [vmem:[#allocation11 + $0x18] sm:$0xff]   ;;  %v158_v4 = vld [vmem:[#allocation10] sm:$0xff] }
  0x6f   :  { %7918 = vmatpush3.bf16.msra.mxu0 %v9208_v0  ;;  %v159_v5 = vld [vmem:[#allocation10 + $0x8] sm:$0xff]  ;;  %v9212_v7 = vld [vmem:[#allocation11 + $0x20] sm:$0xff]   ;;  %v9214_v11 = vld [vmem:[#allocation11 + $0x30] sm:$0xff]  }
  0x70   :  { %7919 = vmatprep.subr.bf16.mxu0 %v9209_v1  ;;  %v174_v6 = vpack.c.bf16 %v159_v5, %v158_v4  ;;  %v9213_v8 = vld [vmem:[#allocation11 + $0x28] sm:$0xff]   ;;  %v9216_v9 = vld [vmem:[#allocation11 + $0x40] sm:$0xff]   ;;  %v9215_v12 = vld [vmem:[#allocation11 + $0x38] sm:$0xff]  }
  0x71   :  { %v9217_v10 = vld [vmem:[#allocation11 + $0x48] sm:$0xff]   ;;  %7949 = vmatprep.subr.bf16.mxu1 %v9216_v9  ;;  %v160_v13 = vld [vmem:[#allocation10 + $0x10] sm:$0xff]  ;;  %v161_v14 = vld [vmem:[#allocation10 + $0x18] sm:$0xff] }
  0x72   :  { %7933 = vmatprep.mubr.bf16.mxu0 %v174_v6  ;;  %7950 = vmatpush3.bf16.msra.mxu1 %v9216_v9  ;;  %v162_v15 = vld [vmem:[#allocation10 + $0x20] sm:$0xff]  ;;  %v163_v16 = vld [vmem:[#allocation10 + $0x28] sm:$0xff]  ;;  %v175_v17 = vpack.c.bf16 %v161_v14, %v160_v13  ;;  %v164_v19 = vld [vmem:[#allocation10 + $0x30] sm:$0xff] }
  0x73   :  { %7920 = vmatpush3.bf16.msra.mxu0 %v9209_v1  ;;  %7951 = vmatprep.subr.bf16.mxu1 %v9217_v10  ;;  %v176_v18 = vpack.c.bf16 %v163_v16, %v162_v15  ;;  %v165_v20 = vld [vmem:[#allocation10 + $0x38] sm:$0xff]  ;;  %v166_v21 = vld [vmem:[#allocation10 + $0x40] sm:$0xff]  ;;  %v167_v22 = vld [vmem:[#allocation10 + $0x48] sm:$0xff] }
  0x74   :  { %7921 = vmatprep.subr.bf16.mxu0 %v9210_v2  ;;  %v177_v23 = vpack.c.bf16 %v165_v20, %v164_v19  ;;  %v178_v24 = vpack.c.bf16 %v167_v22, %v166_v21  ;;  %v168_v25 = vld [vmem:[#allocation10 + $0x50] sm:$0xff]  ;;  %v169_v26 = vld [vmem:[#allocation10 + $0x58] sm:$0xff]  ;;  %v170_v27 = vld [vmem:[#allocation10 + $0x60] sm:$0xff] }
  0x75   :  { %v171_v28 = vld [vmem:[#allocation10 + $0x68] sm:$0xff]  ;;  %v179_v29 = vpack.c.bf16 %v169_v26, %v168_v25  ;;  %v172_v31 = vld [vmem:[#allocation10 + $0x70] sm:$0xff]  ;;  %v173_v32 = vld [vmem:[#allocation10 + $0x78] sm:$0xff] }
  0x76   :  { %7952 = vmatpush3.bf16.msra.mxu1 %v9217_v10  ;;  %v180_v30 = vpack.c.bf16 %v171_v28, %v170_v27  ;;  %v181_v33 = vpack.c.bf16 %v173_v32, %v172_v31  ;;  %v9218_v34 = vld [vmem:[#allocation11 + $0x50] sm:$0xff]   ;;  %v9219_v35 = vld [vmem:[#allocation11 + $0x58] sm:$0xff]   ;;  %v9220_v36 = vld [vmem:[#allocation11 + $0x60] sm:$0xff]  }
  0x77   :  { %7922 = vmatpush3.bf16.msra.mxu0 %v9210_v2  ;;  %7953 = vmatprep.subr.bf16.mxu1 %v9218_v34  ;;  %v9221_v37 = vld [vmem:[#allocation11 + $0x68] sm:$0xff]   ;;  %v9222_v38 = vld [vmem:[#allocation11 + $0x70] sm:$0xff]   ;;  %v9223_v39 = vld [vmem:[#allocation11 + $0x78] sm:$0xff]  }
  0x78   :  { %7923 = vmatprep.subr.bf16.mxu0 %v9211_v3  ;;  %v9224_v40 = vld [vmem:[#allocation11 + $0x80] sm:$0xff]   ;;  %v9225_v41 = vld [vmem:[#allocation11 + $0x88] sm:$0xff]  }
  0x79   :  { %v10273_v42 = vld [vmem:[%s11315_s6] ss:$0 sm:$0xff] }
  0x7a   :  { %7954 = vmatpush3.bf16.msra.mxu1 %v9218_v34 }
  0x7b   :  { %7924 = vmatpush3.bf16.msra.mxu0 %v9211_v3  ;;  %7955 = vmatprep.subr.bf16.mxu1 %v9219_v35 }
  0x7c   :  { %7925 = vmatprep.subr.bf16.mxu0 %v9212_v7 }
  0x7e   :  { %7956 = vmatpush3.bf16.msra.mxu1 %v9219_v35 }
  0x7f   :  { %7926 = vmatpush3.bf16.msra.mxu0 %v9212_v7  ;;  %7957 = vmatprep.subr.bf16.mxu1 %v9220_v36 }
  0x80   :  { %7927 = vmatprep.subr.bf16.mxu0 %v9213_v8 }
  0x82   :  { %7958 = vmatpush3.bf16.msra.mxu1 %v9220_v36 }
  0x83   :  { %7928 = vmatpush3.bf16.msra.mxu0 %v9213_v8  ;;  %7959 = vmatprep.subr.bf16.mxu1 %v9221_v37 }
  0x84   :  { %7929 = vmatprep.subr.bf16.mxu0 %v9214_v11 }
  0x86   :  { %7960 = vmatpush3.bf16.msra.mxu1 %v9221_v37 }
  0x87   :  { %7930 = vmatpush3.bf16.msra.mxu0 %v9214_v11  ;;  %7961 = vmatprep.subr.bf16.mxu1 %v9222_v38 }
  0x88   :  { %7931 = vmatprep.subr.bf16.mxu0 %v9215_v12 }
  0x8a   :  { %7962 = vmatpush3.bf16.msra.mxu1 %v9222_v38 }
  0x8b   :  { %7932 = vmatpush3.bf16.msra.mxu0 %v9215_v12  ;;  %7963 = vmatprep.subr.bf16.mxu1 %v9223_v39 }
  0x8c   :  { %7981 = vmatprep.subr.bf16.mxu0 %v9224_v40 }
  0x8e   :  { %7934 = vmatmul.mubr.bf16.vlgmr.msra.gmra.mrb[0].mxu0 %v175_v17  ;;  %7964 = vmatpush3.bf16.msra.mxu1 %v9223_v39 }
  0x8f   :  { %7937 = vmatprep.mubr.bf16.mxu0 %v176_v18  ;;  %7982 = vmatpush3.bf16.msra.mxu0 %v9224_v40 }
  0x90   :  { %7983 = vmatprep.subr.bf16.mxu0 %v9225_v41 }
  0x93   :  { %7984 = vmatpush3.bf16.msra.mxu0 %v9225_v41 }
  0x96   :  { %7938 = vmatmul.mubr.bf16.gmra.mrb[4].mxu0 %v177_v23 }
  0x97   :  { %7941 = vmatprep.mubr.bf16.mxu0 %v178_v24 }
  0x9e   :  { %7942 = vmatmul.mubr.bf16.gmra.mrb[8].mxu0 %v179_v29 }
  0x9f   :  { %7945 = vmatprep.mubr.bf16.mxu0 %v180_v30 }
  0xa6   :  { %7946 = vmatmul.mubr.bf16.gmra.mrb[12].mxu0 %v181_v33 }
 0x161   :  { %v7935_v43 = vpop.f32.mrb[0].mxu0 }
 0x162   :  { %v296_v44 = vadd.f32 %v7935_v43, %v10273_v42  ;;  %v287_v45 = vpop.f32.mrb[1].mxu0 }
 0x163   :  { %v288_v46 = vadd.f32 %v10273_v42, %v287_v45  ;;  %v7936_v47 = vpop.f32.mrb[2].mxu0 }
 0x164   :  { %v352_v48 = vmul.f32 0.5, %v296_v44  ;;  %v299_v49 = vadd.f32 %v7936_v47, %v10273_v42  ;;  %v290_v50 = vpop.f32.mrb[3].mxu0 }
 0x165   :  { %v350_v51 = vmul.f32 0.5, %v288_v46  ;;  %v291_v52 = vadd.f32 %v10273_v42, %v290_v50 }
 0x166   :  { %9440 = vtanh.f32 %v352_v48  ;;  %v353_v53 = vmul.f32 0.5, %v299_v49 }
 0x167   :  { %9442 = vtanh.f32 %v350_v51  ;;  %v351_v54 = vmul.f32 0.5, %v291_v52 }
 0x168   :  { %9444 = vtanh.f32 %v353_v53 }
 0x169   :  { %9446 = vtanh.f32 %v351_v54  ;;  %v7939_v55 = vpop.f32.mrb[4].mxu0 }
 0x16a   :  { %v312_v56 = vadd.f32 %v7939_v55, %v10273_v42  ;;  %v303_v57 = vpop.f32.mrb[5].mxu0 }
 0x16b   :  { %v304_v58 = vadd.f32 %v10273_v42, %v303_v57  ;;  %v7940_v59 = vpop.f32.mrb[6].mxu0 }
 0x16c   :  { %v356_v60 = vmul.f32 0.5, %v312_v56  ;;  %v315_v61 = vadd.f32 %v7940_v59, %v10273_v42  ;;  %v306_v62 = vpop.f32.mrb[7].mxu0 }
 0x16d   :  { %v354_v63 = vmul.f32 0.5, %v304_v58  ;;  %v307_v0 = vadd.f32 %v10273_v42, %v306_v62 }
 0x16e   :  { %9448 = vtanh.f32 %v356_v60  ;;  %v357_v1 = vmul.f32 0.5, %v315_v61 }
 0x16f   :  { %9450 = vtanh.f32 %v354_v63  ;;  %v355_v2 = vmul.f32 0.5, %v307_v0 }
 0x170   :  { %v9441_v3 = vpop.eup %9440  ;;  %9452 = vtanh.f32 %v357_v1 }
 0x171   :  { %v9443_v4 = vpop.eup %9442  ;;  %v384_v5 = vadd.f32 1.0, %v9441_v3  ;;  %9454 = vtanh.f32 %v355_v2  ;;  %v7943_v6 = vpop.f32.mrb[8].mxu0 }
 0x172   :  { %v9445_v7 = vpop.eup %9444  ;;  %v328_v8 = vadd.f32 %v7943_v6, %v10273_v42  ;;  %v319_v9 = vpop.f32.mrb[9].mxu0  ;;  %v382_v10 = vadd.f32 1.0, %v9443_v4 }
 0x173   :  { %v9447_v11 = vpop.eup %9446  ;;  %v385_v12 = vadd.f32 1.0, %v9445_v7  ;;  %v320_v13 = vadd.f32 %v10273_v42, %v319_v9  ;;  %v7944_v14 = vpop.f32.mrb[10].mxu0  ;;  %v400_v19 = vmul.f32 %v384_v5, %v352_v48 }
 0x174   :  { %v360_v15 = vmul.f32 0.5, %v328_v8  ;;  %v331_v16 = vadd.f32 %v7944_v14, %v10273_v42  ;;  %v322_v17 = vpop.f32.mrb[11].mxu0  ;;  %v383_v18 = vadd.f32 1.0, %v9447_v11  ;;  %v398_v24 = vmul.f32 %v382_v10, %v350_v51 }
 0x175   :  { %v401_v20 = vmul.f32 %v385_v12, %v353_v53  ;;  %v358_v21 = vmul.f32 0.5, %v320_v13  ;;  %v323_v22 = vadd.f32 %v10273_v42, %v322_v17 }
 0x176   :  { %9456 = vtanh.f32 %v360_v15  ;;  %v361_v23 = vmul.f32 0.5, %v331_v16  ;;  %v399_v25 = vmul.f32 %v383_v18, %v351_v54 }
 0x177   :  { %9458 = vtanh.f32 %v358_v21  ;;  %v359_v26 = vmul.f32 0.5, %v323_v22  ;;  %v415_v27 = vpack.c.bf16 %v401_v20, %v400_v19  ;;  %v9226_v19 = vld [vmem:[#allocation11 + $0x90] sm:$0xff]   ;;  %v9227_v20 = vld [vmem:[#allocation11 + $0x98] sm:$0xff]   ;;  %v9229_v22 = vld [vmem:[#allocation11 + $0xa8] sm:$0xff]  }
 0x178   :  { %v9449_v28 = vpop.eup %9448  ;;  %9460 = vtanh.f32 %v361_v23  ;;  %v414_v29 = vpack.c.bf16 %v399_v25, %v398_v24  ;;  %7985 = vmatprep.subr.bf16.mxu0 %v9226_v19  ;;  %v9231_v24 = vld [vmem:[#allocation11 + $0xb8] sm:$0xff]   ;;  %v664_v25 = vld [vmem:[#allocation8] sm:$0xff] }
 0x179   :  { %v9451_v30 = vpop.eup %9450  ;;  %v388_v31 = vadd.f32 1.0, %v9449_v28  ;;  %9462 = vtanh.f32 %v359_v26  ;;  %v7947_v32 = vpop.f32.mrb[12].mxu0  ;;  %7986 = vmatpush3.bf16.msra.mxu0 %v9226_v19  ;;  %v666_v28 = vld [vmem:[#allocation8 + $0x10] sm:$0xff] }
 0x17a   :  { %v9453_v33 = vpop.eup %9452  ;;  %v386_v34 = vadd.f32 1.0, %v9451_v30  ;;  %v344_v35 = vadd.f32 %v7947_v32, %v10273_v42  ;;  %v335_v36 = vpop.f32.mrb[13].mxu0  ;;  %7965 = vmatprep.mubr.bf16.mxu1 %v414_v29  ;;  %7987 = vmatprep.subr.bf16.mxu0 %v9227_v20  ;;  %v667_v29 = vld [vmem:[#allocation8 + $0x18] sm:$0xff]  ;;  %v669_v32 = vld [vmem:[#allocation8 + $0x28] sm:$0xff] }
 0x17b   :  { %v9455_v37 = vpop.eup %9454  ;;  %v389_v38 = vadd.f32 1.0, %v9453_v33  ;;  %v336_v39 = vadd.f32 %v10273_v42, %v335_v36  ;;  %v7948_v40 = vpop.f32.mrb[14].mxu0  ;;  %7966 = vmatmul.mubr.bf16.vlgmr.msra.gmra.mrb[0].mxu1 %v415_v27  ;;  %v404_v46 = vmul.f32 %v388_v31, %v356_v60  ;;  %v681_v30 = vpack.c.bf16 %v667_v29, %v666_v28  ;;  %v668_v31 = vld [vmem:[#allocation8 + $0x20] sm:$0xff] }
 0x17c   :  { %v387_v41 = vadd.f32 1.0, %v9455_v37  ;;  %v364_v43 = vmul.f32 0.5, %v344_v35  ;;  %v347_v44 = vadd.f32 %v7948_v40, %v10273_v42  ;;  %v338_v45 = vpop.f32.mrb[15].mxu0  ;;  %v402_v50 = vmul.f32 %v386_v34, %v354_v63  ;;  %v670_v34 = vld [vmem:[#allocation8 + $0x30] sm:$0xff]  ;;  %v671_v35 = vld [vmem:[#allocation8 + $0x38] sm:$0xff]  ;;  %v672_v37 = vld [vmem:[#allocation8 + $0x40] sm:$0xff] }
 0x17d   :  { %v405_v47 = vmul.f32 %v389_v38, %v357_v1  ;;  %v362_v48 = vmul.f32 0.5, %v336_v39  ;;  %v339_v49 = vadd.f32 %v10273_v42, %v338_v45  ;;  %7988 = vmatpush3.bf16.msra.mxu0 %v9227_v20  ;;  %v682_v33 = vpack.c.bf16 %v669_v32, %v668_v31  ;;  %v673_v38 = vld [vmem:[#allocation8 + $0x48] sm:$0xff]  ;;  %v674_v40 = vld [vmem:[#allocation8 + $0x50] sm:$0xff] }
 0x17e   :  { %v403_v51 = vmul.f32 %v387_v41, %v355_v2  ;;  %9464 = vtanh.f32 %v364_v43  ;;  %v365_v52 = vmul.f32 0.5, %v347_v44  ;;  %v683_v36 = vpack.c.bf16 %v671_v35, %v670_v34  ;;  %v675_v41 = vld [vmem:[#allocation8 + $0x58] sm:$0xff]  ;;  %v676_v44 = vld [vmem:[#allocation8 + $0x60] sm:$0xff]  ;;  %v677_v45 = vld [vmem:[#allocation8 + $0x68] sm:$0xff] }
 0x17f   :  { %9466 = vtanh.f32 %v362_v48  ;;  %v363_v53 = vmul.f32 0.5, %v339_v49  ;;  %v417_v54 = vpack.c.bf16 %v405_v47, %v404_v46  ;;  %v684_v39 = vpack.c.bf16 %v673_v38, %v672_v37  ;;  %v678_v47 = vld [vmem:[#allocation8 + $0x70] sm:$0xff] }
 0x180   :  { %v9457_v55 = vpop.eup %9456  ;;  %9468 = vtanh.f32 %v365_v52  ;;  %v416_v56 = vpack.c.bf16 %v403_v51, %v402_v50  ;;  %v686_v46 = vpack.c.bf16 %v677_v45, %v676_v44  ;;  %v9232_v50 = vld [vmem:[#allocation7] sm:$0xff]  }
 0x181   :  { %v9459_v57 = vpop.eup %9458  ;;  %v392_v58 = vadd.f32 1.0, %v9457_v55  ;;  %9470 = vtanh.f32 %v363_v53  ;;  %v9240_v51 = vld [vmem:[#allocation11 + $0xc0] sm:$0xff]  }
 0x182   :  { %v9461_v59 = vpop.eup %9460  ;;  %v390_v61 = vadd.f32 1.0, %v9459_v57  ;;  %7969 = vmatprep.mubr.bf16.mxu1 %v416_v56  ;;  %8045 = vmatprep.subr.bf16.mxu1 %v9240_v51  ;;  %v9244_v55 = vld [vmem:[#allocation11 + $0xe0] sm:$0xff]   ;;  %v9245_v56 = vld [vmem:[#allocation11 + $0xe8] sm:$0xff]  }
 0x183   :  { %v9463_v60 = vpop.eup %9462  ;;  %v393_v62 = vadd.f32 1.0, %v9461_v59  ;;  %7970 = vmatmul.mubr.bf16.gmra.mrb[4].mxu1 %v417_v54  ;;  %v408_v63 = vmul.f32 %v392_v58, %v360_v15  ;;  %v9243_v54 = vld [vmem:[#allocation11 + $0xd8] sm:$0xff]   ;;  %v10294_v57 = vld [vmem:[%s11315_s6 + $0x1] ss:$0 sm:$0xff] }
 0x184   :  { %v391_v42 = vadd.f32 1.0, %v9463_v60  ;;  %v406_v1 = vmul.f32 %v390_v61, %v358_v21  ;;  %v9228_v21 = vld [vmem:[#allocation11 + $0xa0] sm:$0xff]   ;;  %8046 = vmatpush3.bf16.msra.mxu1 %v9240_v51 }
 0x185   :  { %v409_v0 = vmul.f32 %v393_v62, %v361_v23  ;;  %7989 = vmatprep.subr.bf16.mxu0 %v9228_v21  ;;  %v9230_v23 = vld [vmem:[#allocation11 + $0xb0] sm:$0xff]  }
 0x186   :  { %v407_v2 = vmul.f32 %v391_v42, %v359_v26  ;;  %7990 = vmatpush3.bf16.msra.mxu0 %v9228_v21  ;;  %v665_v26 = vld [vmem:[#allocation8 + $0x8] sm:$0xff] }
 0x187   :  { %v419_v3 = vpack.c.bf16 %v409_v0, %v408_v63  ;;  %7991 = vmatprep.subr.bf16.mxu0 %v9229_v22  ;;  %v680_v27 = vpack.c.bf16 %v665_v26, %v664_v25 }
 0x188   :  { %v9465_v4 = vpop.eup %9464  ;;  %v418_v5 = vpack.c.bf16 %v407_v2, %v406_v1 }
 0x189   :  { %v9467_v6 = vpop.eup %9466  ;;  %v396_v7 = vadd.f32 1.0, %v9465_v4  ;;  %7997 = vmatprep.mubr.bf16.mxu0 %v680_v27 }
 0x18a   :  { %v9469_v8 = vpop.eup %9468  ;;  %v394_v9 = vadd.f32 1.0, %v9467_v6  ;;  %7973 = vmatprep.mubr.bf16.mxu1 %v418_v5  ;;  %7992 = vmatpush3.bf16.msra.mxu0 %v9229_v22 }
 0x18b   :  { %v9471_v10 = vpop.eup %9470  ;;  %v397_v11 = vadd.f32 1.0, %v9469_v8  ;;  %7974 = vmatmul.mubr.bf16.gmra.mrb[8].mxu1 %v419_v3  ;;  %v412_v13 = vmul.f32 %v396_v7, %v364_v43  ;;  %7993 = vmatprep.subr.bf16.mxu0 %v9230_v23  ;;  %v685_v43 = vpack.c.bf16 %v675_v41, %v674_v40 }
 0x18c   :  { %v395_v12 = vadd.f32 1.0, %v9471_v10  ;;  %v410_v16 = vmul.f32 %v394_v9, %v362_v48  ;;  %v679_v48 = vld [vmem:[#allocation8 + $0x78] sm:$0xff] }
 0x18d   :  { %v413_v14 = vmul.f32 %v397_v11, %v365_v52  ;;  %v687_v49 = vpack.c.bf16 %v679_v48, %v678_v47  ;;  %v9241_v52 = vld [vmem:[#allocation11 + $0xc8] sm:$0xff]  }
 0x18e   :  { %v411_v17 = vmul.f32 %v395_v12, %v363_v53  ;;  %7994 = vmatpush3.bf16.msra.mxu0 %v9230_v23  ;;  %8047 = vmatprep.subr.bf16.mxu1 %v9241_v52  ;;  %v9242_v53 = vld [vmem:[#allocation11 + $0xd0] sm:$0xff]  }
 0x18f   :  { %v421_v15 = vpack.c.bf16 %v413_v14, %v412_v13  ;;  %7995 = vmatprep.subr.bf16.mxu0 %v9231_v24  ;;  %8048 = vmatpush3.bf16.msra.mxu1 %v9241_v52 }
 0x190   :  { %v420_v18 = vpack.c.bf16 %v411_v17, %v410_v16  ;;  %8049 = vmatprep.subr.bf16.mxu1 %v9242_v53 }
 0x192   :  { %7977 = vmatprep.mubr.bf16.mxu1 %v420_v18  ;;  %7996 = vmatpush3.bf16.msra.mxu0 %v9231_v24 }
 0x193   :  { %7978 = vmatmul.mubr.bf16.gmra.mrb[12].mxu1 %v421_v15 }
 0x194   :  { %8050 = vmatpush3.bf16.msra.mxu1 %v9242_v53 }
 0x195   :  { %7998 = vmatmul.mubr.bf16.vlgmr.msra.gmra.mrb[16].mxu0 %v681_v30  ;;  %8051 = vmatprep.subr.bf16.mxu1 %v9243_v54 }
 0x196   :  { %8001 = vmatprep.mubr.bf16.mxu0 %v682_v33 }
 0x198   :  { %8052 = vmatpush3.bf16.msra.mxu1 %v9243_v54 }
 0x199   :  { %8053 = vmatprep.subr.bf16.mxu1 %v9244_v55 }
 0x19c   :  { %8054 = vmatpush3.bf16.msra.mxu1 %v9244_v55 }
 0x19d   :  { %8002 = vmatmul.mubr.bf16.gmra.mrb[20].mxu0 %v683_v36  ;;  %8055 = vmatprep.subr.bf16.mxu1 %v9245_v56 }
 0x19e   :  { %8005 = vmatprep.mubr.bf16.mxu0 %v684_v39 }
 0x1a0   :  { %8056 = vmatpush3.bf16.msra.mxu1 %v9245_v56 }
 0x1a5   :  { %8006 = vmatmul.mubr.bf16.gmra.mrb[24].mxu0 %v685_v43 }
 0x1a6   :  { %8009 = vmatprep.mubr.bf16.mxu0 %v686_v46 }
 0x1ad   :  { %8010 = vmatmul.mubr.bf16.gmra.mrb[28].mxu0 %v687_v49 }
 0x1ae   :  { %8029 = vmatprep.mubr.bf16.mxu0 %v9232_v50 }
 0x24e   :  { %v7967_v58 = vpop.f32.mrb[0].mxu1 }
 0x24f   :  { %v538_v59 = vadd.f32 %v7967_v58, %v10294_v57  ;;  %v529_v61 = vpop.f32.mrb[1].mxu1 }
 0x250   :  { %v530_v60 = vadd.f32 %v10294_v57, %v529_v61  ;;  %v7968_v62 = vpop.f32.mrb[2].mxu1 }
 0x251   :  { %v594_v42 = vmul.f32 0.5, %v538_v59  ;;  %v541_v63 = vadd.f32 %v7968_v62, %v10294_v57  ;;  %v532_v0 = vpop.f32.mrb[3].mxu1 }
 0x252   :  { %v592_v1 = vmul.f32 0.5, %v530_v60  ;;  %v533_v2 = vadd.f32 %v10294_v57, %v532_v0 }
 0x253   :  { %9472 = vtanh.f32 %v594_v42  ;;  %v595_v3 = vmul.f32 0.5, %v541_v63 }
 0x254   :  { %9474 = vtanh.f32 %v592_v1  ;;  %v593_v4 = vmul.f32 0.5, %v533_v2 }
 0x255   :  { %9476 = vtanh.f32 %v595_v3 }
 0x256   :  { %9478 = vtanh.f32 %v593_v4  ;;  %v7971_v5 = vpop.f32.mrb[4].mxu1 }
 0x257   :  { %v554_v6 = vadd.f32 %v7971_v5, %v10294_v57  ;;  %v545_v7 = vpop.f32.mrb[5].mxu1 }
 0x258   :  { %v546_v8 = vadd.f32 %v10294_v57, %v545_v7  ;;  %v7972_v9 = vpop.f32.mrb[6].mxu1 }
 0x259   :  { %v598_v10 = vmul.f32 0.5, %v554_v6  ;;  %v557_v11 = vadd.f32 %v7972_v9, %v10294_v57  ;;  %v548_v12 = vpop.f32.mrb[7].mxu1 }
 0x25a   :  { %v596_v13 = vmul.f32 0.5, %v546_v8  ;;  %v549_v14 = vadd.f32 %v10294_v57, %v548_v12 }
 0x25b   :  { %9480 = vtanh.f32 %v598_v10  ;;  %v599_v16 = vmul.f32 0.5, %v557_v11 }
 0x25c   :  { %9482 = vtanh.f32 %v596_v13  ;;  %v597_v17 = vmul.f32 0.5, %v549_v14 }
 0x25d   :  { %v9473_v15 = vpop.eup %9472  ;;  %9484 = vtanh.f32 %v599_v16 }
 0x25e   :  { %v9475_v18 = vpop.eup %9474  ;;  %v626_v19 = vadd.f32 1.0, %v9473_v15  ;;  %9486 = vtanh.f32 %v597_v17  ;;  %v7975_v20 = vpop.f32.mrb[8].mxu1 }
 0x25f   :  { %v9477_v21 = vpop.eup %9476  ;;  %v624_v22 = vadd.f32 1.0, %v9475_v18  ;;  %v570_v23 = vadd.f32 %v7975_v20, %v10294_v57  ;;  %v561_v24 = vpop.f32.mrb[9].mxu1 }
 0x260   :  { %v9479_v25 = vpop.eup %9478  ;;  %v627_v26 = vadd.f32 1.0, %v9477_v21  ;;  %v562_v27 = vadd.f32 %v10294_v57, %v561_v24  ;;  %v7976_v28 = vpop.f32.mrb[10].mxu1  ;;  %v642_v33 = vmul.f32 %v626_v19, %v594_v42 }
 0x261   :  { %v625_v29 = vadd.f32 1.0, %v9479_v25  ;;  %v602_v30 = vmul.f32 0.5, %v570_v23  ;;  %v573_v31 = vadd.f32 %v7976_v28, %v10294_v57  ;;  %v564_v32 = vpop.f32.mrb[11].mxu1  ;;  %v640_v37 = vmul.f32 %v624_v22, %v592_v1 }
 0x262   :  { %v643_v34 = vmul.f32 %v627_v26, %v595_v3  ;;  %v600_v35 = vmul.f32 0.5, %v562_v27  ;;  %v565_v36 = vadd.f32 %v10294_v57, %v564_v32 }
 0x263   :  { %v641_v38 = vmul.f32 %v625_v29, %v593_v4  ;;  %9488 = vtanh.f32 %v602_v30  ;;  %v603_v39 = vmul.f32 0.5, %v573_v31 }
 0x264   :  { %9490 = vtanh.f32 %v600_v35  ;;  %v601_v40 = vmul.f32 0.5, %v565_v36  ;;  %v10308_v41 = vpack.c.bf16 %v643_v34, %v642_v33  ;;  %v9233_v33 = vld [vmem:[#allocation7 + $0x8] sm:$0xff]   ;;  %v9234_v34 = vld [vmem:[#allocation7 + $0x10] sm:$0xff]   ;;  %v9236_v36 = vld [vmem:[#allocation7 + $0x20] sm:$0xff]  }
 0x265   :  { %v9481_v43 = vpop.eup %9480  ;;  %9492 = vtanh.f32 %v603_v39  ;;  %v10310_v44 = vpack.c.bf16 %v641_v38, %v640_v37  ;;  %v9237_v37 = vld [vmem:[#allocation7 + $0x28] sm:$0xff]   ;;  %v9238_v38 = vld [vmem:[#allocation7 + $0x30] sm:$0xff]  }
 0x266   :  { %v9483_v45 = vpop.eup %9482  ;;  %v630_v46 = vadd.f32 1.0, %v9481_v43  ;;  %9494 = vtanh.f32 %v601_v40  ;;  %v7979_v47 = vpop.f32.mrb[12].mxu1  ;;  %v9247_v43 = vld [vmem:[#allocation11 + $0xf8] sm:$0xff]  }
 0x267   :  { %v9485_v48 = vpop.eup %9484  ;;  %v628_v49 = vadd.f32 1.0, %v9483_v45  ;;  %v586_v50 = vadd.f32 %v7979_v47, %v10294_v57  ;;  %v577_v51 = vpop.f32.mrb[13].mxu1  ;;  %8013 = vmatprep.subr.bf16.mxu0 %v10310_v44  ;;  %v9248_v45 = vld [vmem:[#allocation11 + $0x100] sm:$0xff]  }
 0x268   :  { %v9487_v52 = vpop.eup %9486  ;;  %v631_v53 = vadd.f32 1.0, %v9485_v48  ;;  %v578_v54 = vadd.f32 %v10294_v57, %v577_v51  ;;  %v7980_v55 = vpop.f32.mrb[14].mxu1  ;;  %8014 = vmatpush3.bf16.msra.mxu0 %v10310_v44  ;;  %v646_v60 = vmul.f32 %v630_v46, %v598_v10  ;;  %v7090_v47 = vld [vmem:[%s11315_s6 + $0x2] ss:$0 sm:$0xff] }
 0x269   :  { %v629_v56 = vadd.f32 1.0, %v9487_v52  ;;  %v606_v58 = vmul.f32 0.5, %v586_v50  ;;  %v589_v59 = vadd.f32 %v7980_v55, %v10294_v57  ;;  %v580_v61 = vpop.f32.mrb[15].mxu1  ;;  %8015 = vmatprep.subr.bf16.mxu0 %v10308_v41  ;;  %v644_v0 = vmul.f32 %v628_v49, %v596_v13 }
 0x26a   :  { %v647_v62 = vmul.f32 %v631_v53, %v599_v16  ;;  %v604_v42 = vmul.f32 0.5, %v578_v54  ;;  %v581_v63 = vadd.f32 %v10294_v57, %v580_v61 }
 0x26b   :  { %v645_v1 = vmul.f32 %v629_v56, %v597_v17  ;;  %9496 = vtanh.f32 %v606_v58  ;;  %v607_v2 = vmul.f32 0.5, %v589_v59 }
 0x26c   :  { %9498 = vtanh.f32 %v604_v42  ;;  %v605_v3 = vmul.f32 0.5, %v581_v63  ;;  %8016 = vmatpush3.bf16.msra.mxu0 %v10308_v41  ;;  %v10320_v4 = vpack.c.bf16 %v647_v62, %v646_v60 }
 0x26d   :  { %v9489_v5 = vpop.eup %9488  ;;  %9500 = vtanh.f32 %v607_v2  ;;  %v10322_v6 = vpack.c.bf16 %v645_v1, %v644_v0 }
 0x26e   :  { %v9491_v7 = vpop.eup %9490  ;;  %v634_v8 = vadd.f32 1.0, %v9489_v5  ;;  %9502 = vtanh.f32 %v605_v3 }
 0x26f   :  { %v9493_v9 = vpop.eup %9492  ;;  %v632_v10 = vadd.f32 1.0, %v9491_v7  ;;  %8017 = vmatprep.subr.bf16.mxu0 %v10322_v6 }
 0x270   :  { %v9495_v57 = vpop.eup %9494  ;;  %v635_v11 = vadd.f32 1.0, %v9493_v9  ;;  %8018 = vmatpush3.bf16.msra.mxu0 %v10322_v6  ;;  %v650_v13 = vmul.f32 %v634_v8, %v602_v30 }
 0x271   :  { %v633_v12 = vadd.f32 1.0, %v9495_v57  ;;  %8019 = vmatprep.subr.bf16.mxu0 %v10320_v4  ;;  %v648_v16 = vmul.f32 %v632_v10, %v600_v35  ;;  %v9235_v35 = vld [vmem:[#allocation7 + $0x18] sm:$0xff]  }
 0x272   :  { %v651_v14 = vmul.f32 %v635_v11, %v603_v39  ;;  %v9239_v39 = vld [vmem:[#allocation7 + $0x38] sm:$0xff]  }
 0x273   :  { %v649_v17 = vmul.f32 %v633_v12, %v601_v40  ;;  %v9246_v40 = vld [vmem:[#allocation11 + $0xf0] sm:$0xff]  }
 0x274   :  { %8020 = vmatpush3.bf16.msra.mxu0 %v10320_v4  ;;  %v10328_v15 = vpack.c.bf16 %v651_v14, %v650_v13  ;;  %8057 = vmatprep.subr.bf16.mxu1 %v9246_v40 }
 0x275   :  { %v9497_v18 = vpop.eup %9496  ;;  %v10330_v19 = vpack.c.bf16 %v649_v17, %v648_v16  ;;  %8058 = vmatpush3.bf16.msra.mxu1 %v9246_v40 }
 0x276   :  { %v9499_v20 = vpop.eup %9498  ;;  %v638_v21 = vadd.f32 1.0, %v9497_v18  ;;  %8059 = vmatprep.subr.bf16.mxu1 %v9247_v43 }
 0x277   :  { %v9501_v22 = vpop.eup %9500  ;;  %v636_v23 = vadd.f32 1.0, %v9499_v20  ;;  %8021 = vmatprep.subr.bf16.mxu0 %v10330_v19 }
 0x278   :  { %v9503_v24 = vpop.eup %9502  ;;  %v639_v25 = vadd.f32 1.0, %v9501_v22  ;;  %8022 = vmatpush3.bf16.msra.mxu0 %v10330_v19  ;;  %v654_v27 = vmul.f32 %v638_v21, %v606_v58  ;;  %v9249_v58 = vld [vmem:[#allocation11 + $0x108] sm:$0xff]  }
 0x279   :  { %v637_v26 = vadd.f32 1.0, %v9503_v24  ;;  %8023 = vmatprep.subr.bf16.mxu0 %v10328_v15  ;;  %v652_v29 = vmul.f32 %v636_v23, %v604_v42  ;;  %8060 = vmatpush3.bf16.msra.mxu1 %v9247_v43 }
 0x27a   :  { %v655_v28 = vmul.f32 %v639_v25, %v607_v2  ;;  %8077 = vmatprep.subr.bf16.mxu1 %v9248_v45 }
 0x27b   :  { %v653_v30 = vmul.f32 %v637_v26, %v605_v3 }
 0x27c   :  { %8024 = vmatpush3.bf16.msra.mxu0 %v10328_v15  ;;  %v10336_v31 = vpack.c.bf16 %v655_v28, %v654_v27  ;;  %v9250_v27 = vld [vmem:[#allocation11 + $0x110] sm:$0xff]   ;;  %v9251_v28 = vld [vmem:[#allocation11 + $0x118] sm:$0xff]  }
 0x27d   :  { %v10338_v32 = vpack.c.bf16 %v653_v30, %v652_v29  ;;  %v9252_v29 = vld [vmem:[#allocation11 + $0x120] sm:$0xff]   ;;  %v9253_v30 = vld [vmem:[#allocation11 + $0x128] sm:$0xff]  }
 0x27f   :  { %8025 = vmatprep.subr.bf16.mxu0 %v10338_v32 }
 0x280   :  { %8026 = vmatpush3.bf16.msra.mxu0 %v10338_v32 }
 0x281   :  { %8027 = vmatprep.subr.bf16.mxu0 %v10336_v31 }
 0x284   :  { %8028 = vmatpush3.bf16.msra.mxu0 %v10336_v31 }
 0x287   :  { %8030 = vmatmul.mubr.bf16.vlgmr.msra.gmra.mrb[16].mxu0 %v9233_v33  ;;  %v9254_v33 = vld [vmem:[#allocation11 + $0x130] sm:$0xff]  }
 0x288   :  { %8033 = vmatprep.mubr.bf16.mxu0 %v9234_v34  ;;  %v9255_v34 = vld [vmem:[#allocation11 + $0x138] sm:$0xff]  }
 0x28f   :  { %8034 = vmatmul.mubr.bf16.gmra.mrb[20].mxu0 %v9235_v35  ;;  %v10398_v35 = vld [vmem:[%s11315_s6 + $0x3] ss:$0 sm:$0xff] }
 0x290   :  { %8037 = vmatprep.mubr.bf16.mxu0 %v9236_v36 }
 0x297   :  { %8038 = vmatmul.mubr.bf16.gmra.mrb[24].mxu0 %v9237_v37 }
 0x298   :  { %8041 = vmatprep.mubr.bf16.mxu0 %v9238_v38 }
 0x29f   :  { %8042 = vmatmul.mubr.bf16.gmra.mrb[28].mxu0 %v9239_v39 }
 0x35a   :  { %v8031_v46 = vpop.f32.mrb[16].mxu0 }
 0x35b   :  { %v940_v48 = vpop.f32.mrb[17].mxu0  ;;  %v10353_v54 = vadd.f32 %v8031_v46, %v7090_v47 }
 0x35c   :  { %v8032_v49 = vpop.f32.mrb[18].mxu0  ;;  %v10349_v52 = vadd.f32 %v7090_v47, %v940_v48 }
 0x35d   :  { %v10347_v50 = vadd.f32 %v8032_v49, %v7090_v47  ;;  %v943_v51 = vpop.f32.mrb[19].mxu0 }
 0x35e   :  { %v10351_v53 = vadd.f32 %v7090_v47, %v943_v51 }
 0x35f   :  { %v1020_v56 = vpack.c.bf16 %v10347_v50, %v10353_v54 }
 0x360   :  { %v1019_v55 = vpack.c.bf16 %v10351_v53, %v10349_v52 }
 0x362   :  { %v8035_v59 = vpop.f32.mrb[20].mxu0  ;;  %8061 = vmatprep.mubr.bf16.mxu1 %v1019_v55 }
 0x363   :  { %v956_v61 = vpop.f32.mrb[21].mxu0  ;;  %8062 = vmatmul.mubr.bf16.vlgmr.msra.gmra.mrb[16].mxu1 %v1020_v56  ;;  %v10365_v1 = vadd.f32 %v8035_v59, %v7090_v47 }
 0x364   :  { %v8036_v60 = vpop.f32.mrb[22].mxu0  ;;  %8078 = vmatpush3.bf16.msra.mxu1 %v9248_v45  ;;  %v10361_v63 = vadd.f32 %v7090_v47, %v956_v61 }
 0x365   :  { %v10359_v62 = vadd.f32 %v8036_v60, %v7090_v47  ;;  %v959_v42 = vpop.f32.mrb[23].mxu0  ;;  %8079 = vmatprep.subr.bf16.mxu1 %v9249_v58 }
 0x366   :  { %v10363_v0 = vadd.f32 %v7090_v47, %v959_v42 }
 0x367   :  { %v1022_v3 = vpack.c.bf16 %v10359_v62, %v10365_v1 }
 0x368   :  { %v1021_v2 = vpack.c.bf16 %v10363_v0, %v10361_v63  ;;  %8080 = vmatpush3.bf16.msra.mxu1 %v9249_v58 }
 0x369   :  { %8081 = vmatprep.subr.bf16.mxu1 %v9250_v27 }
 0x36a   :  { %v8039_v5 = vpop.f32.mrb[24].mxu0  ;;  %8065 = vmatprep.mubr.bf16.mxu1 %v1021_v2 }
 0x36b   :  { %v972_v7 = vpop.f32.mrb[25].mxu0  ;;  %8066 = vmatmul.mubr.bf16.gmra.mrb[20].mxu1 %v1022_v3  ;;  %v10377_v12 = vadd.f32 %v8039_v5, %v7090_v47 }
 0x36c   :  { %v8040_v8 = vpop.f32.mrb[26].mxu0  ;;  %v10373_v57 = vadd.f32 %v7090_v47, %v972_v7  ;;  %8082 = vmatpush3.bf16.msra.mxu1 %v9250_v27 }
 0x36d   :  { %v10371_v9 = vadd.f32 %v8040_v8, %v7090_v47  ;;  %v975_v10 = vpop.f32.mrb[27].mxu0  ;;  %8083 = vmatprep.subr.bf16.mxu1 %v9251_v28 }
 0x36e   :  { %v10375_v11 = vadd.f32 %v7090_v47, %v975_v10 }
 0x36f   :  { %v1024_v14 = vpack.c.bf16 %v10371_v9, %v10377_v12 }
 0x370   :  { %v1023_v13 = vpack.c.bf16 %v10375_v11, %v10373_v57  ;;  %8084 = vmatpush3.bf16.msra.mxu1 %v9251_v28 }
 0x371   :  { %8085 = vmatprep.subr.bf16.mxu1 %v9252_v29 }
 0x372   :  { %v8043_v16 = vpop.f32.mrb[28].mxu0  ;;  %8069 = vmatprep.mubr.bf16.mxu1 %v1023_v13 }
 0x373   :  { %v988_v17 = vpop.f32.mrb[29].mxu0  ;;  %8070 = vmatmul.mubr.bf16.gmra.mrb[24].mxu1 %v1024_v14  ;;  %v10389_v24 = vadd.f32 %v8043_v16, %v7090_v47 }
 0x374   :  { %v8044_v18 = vpop.f32.mrb[30].mxu0  ;;  %v10385_v22 = vadd.f32 %v7090_v47, %v988_v17  ;;  %8086 = vmatpush3.bf16.msra.mxu1 %v9252_v29 }
 0x375   :  { %v10383_v20 = vadd.f32 %v8044_v18, %v7090_v47  ;;  %v991_v21 = vpop.f32.mrb[31].mxu0  ;;  %8087 = vmatprep.subr.bf16.mxu1 %v9253_v30 }
 0x376   :  { %v10387_v23 = vadd.f32 %v7090_v47, %v991_v21 }
 0x377   :  { %v1026_v26 = vpack.c.bf16 %v10383_v20, %v10389_v24 }
 0x378   :  { %v1025_v25 = vpack.c.bf16 %v10387_v23, %v10385_v22  ;;  %8088 = vmatpush3.bf16.msra.mxu1 %v9253_v30 }
 0x379   :  { %8089 = vmatprep.subr.bf16.mxu1 %v9254_v33 }
 0x37a   :  { %8073 = vmatprep.mubr.bf16.mxu1 %v1025_v25 }
 0x37b   :  { %8074 = vmatmul.mubr.bf16.gmra.mrb[28].mxu1 %v1026_v26 }
 0x37c   :  { %8090 = vmatpush3.bf16.msra.mxu1 %v9254_v33 }
 0x37d   :  { %8091 = vmatprep.subr.bf16.mxu1 %v9255_v34 }
 0x380   :  { %8092 = vmatpush3.bf16.msra.mxu1 %v9255_v34 }
 0x436   :  { %v8063_v36 = vpop.f32.mrb[16].mxu1 }
 0x437   :  { %v1143_v37 = vadd.f32 %v8063_v36, %v10398_v35  ;;  %v1134_v38 = vpop.f32.mrb[17].mxu1 }
 0x438   :  { %v1135_v39 = vadd.f32 %v10398_v35, %v1134_v38  ;;  %v8064_v40 = vpop.f32.mrb[18].mxu1 }
 0x439   :  { %v1199_v43 = vmul.f32 0.5, %v1143_v37  ;;  %v1146_v45 = vadd.f32 %v8064_v40, %v10398_v35  ;;  %v1137_v46 = vpop.f32.mrb[19].mxu1 }
 0x43a   :  { %v1197_v47 = vmul.f32 0.5, %v1135_v39  ;;  %v1138_v48 = vadd.f32 %v10398_v35, %v1137_v46 }
 0x43b   :  { %9504 = vtanh.f32 %v1199_v43  ;;  %v1200_v49 = vmul.f32 0.5, %v1146_v45 }
 0x43c   :  { %9506 = vtanh.f32 %v1197_v47  ;;  %v1198_v51 = vmul.f32 0.5, %v1138_v48 }
 0x43d   :  { %9508 = vtanh.f32 %v1200_v49 }
 0x43e   :  { %9510 = vtanh.f32 %v1198_v51  ;;  %v8067_v55 = vpop.f32.mrb[20].mxu1 }
 0x43f   :  { %v1159_v56 = vadd.f32 %v8067_v55, %v10398_v35  ;;  %v1150_v58 = vpop.f32.mrb[21].mxu1 }
 0x440   :  { %v1151_v59 = vadd.f32 %v10398_v35, %v1150_v58  ;;  %v8068_v61 = vpop.f32.mrb[22].mxu1 }
 0x441   :  { %v1203_v60 = vmul.f32 0.5, %v1159_v56  ;;  %v1162_v42 = vadd.f32 %v8068_v61, %v10398_v35  ;;  %v1153_v2 = vpop.f32.mrb[23].mxu1 }
 0x442   :  { %v1201_v3 = vmul.f32 0.5, %v1151_v59  ;;  %v1154_v5 = vadd.f32 %v10398_v35, %v1153_v2 }
 0x443   :  { %9512 = vtanh.f32 %v1203_v60  ;;  %v1204_v7 = vmul.f32 0.5, %v1162_v42 }
 0x444   :  { %9514 = vtanh.f32 %v1201_v3  ;;  %v1202_v8 = vmul.f32 0.5, %v1154_v5 }
 0x445   :  { %v9505_v10 = vpop.eup %9504  ;;  %9516 = vtanh.f32 %v1204_v7 }
 0x446   :  { %v9507_v13 = vpop.eup %9506  ;;  %v1231_v14 = vadd.f32 1.0, %v9505_v10  ;;  %9518 = vtanh.f32 %v1202_v8  ;;  %v8071_v16 = vpop.f32.mrb[24].mxu1 }
 0x447   :  { %v9509_v17 = vpop.eup %9508  ;;  %v1229_v18 = vadd.f32 1.0, %v9507_v13  ;;  %v1175_v21 = vadd.f32 %v8071_v16, %v10398_v35  ;;  %v1166_v25 = vpop.f32.mrb[25].mxu1 }
 0x448   :  { %v9511_v26 = vpop.eup %9510  ;;  %v1232_v27 = vadd.f32 1.0, %v9509_v17  ;;  %v1167_v28 = vadd.f32 %v10398_v35, %v1166_v25  ;;  %v8072_v29 = vpop.f32.mrb[26].mxu1  ;;  %v1247_v37 = vmul.f32 %v1231_v14, %v1199_v43 }
 0x449   :  { %v1230_v30 = vadd.f32 1.0, %v9511_v26  ;;  %v1207_v33 = vmul.f32 0.5, %v1175_v21  ;;  %v1178_v34 = vadd.f32 %v8072_v29, %v10398_v35  ;;  %v1169_v36 = vpop.f32.mrb[27].mxu1  ;;  %v1245_v45 = vmul.f32 %v1229_v18, %v1197_v47 }
 0x44a   :  { %v1248_v38 = vmul.f32 %v1232_v27, %v1200_v49  ;;  %v1205_v39 = vmul.f32 0.5, %v1167_v28  ;;  %v1170_v40 = vadd.f32 %v10398_v35, %v1169_v36 }
 0x44b   :  { %v1246_v46 = vmul.f32 %v1230_v30, %v1198_v51  ;;  %9520 = vtanh.f32 %v1207_v33  ;;  %v1208_v48 = vmul.f32 0.5, %v1178_v34 }
 0x44c   :  { %v1262_v55 = vpack.c.bf16 %v1248_v38, %v1247_v37  ;;  %9522 = vtanh.f32 %v1205_v39  ;;  %v1206_v56 = vmul.f32 0.5, %v1170_v40 }
 0x44d   :  { %v9513_v58 = vpop.eup %9512  ;;  %9524 = vtanh.f32 %v1208_v48  ;;  %v1261_v59 = vpack.c.bf16 %v1246_v46, %v1245_v45 }
 0x44e   :  { %v9515_v61 = vpop.eup %9514  ;;  %v1235_v42 = vadd.f32 1.0, %v9513_v58  ;;  %9526 = vtanh.f32 %v1206_v56  ;;  %v8075_v2 = vpop.f32.mrb[28].mxu1 }
 0x44f   :  { %v9517_v5 = vpop.eup %9516  ;;  %v1233_v43 = vadd.f32 1.0, %v9515_v61  ;;  %v1191_v49 = vadd.f32 %v8075_v2, %v10398_v35  ;;  %v1182_v10 = vpop.f32.mrb[29].mxu1  ;;  %8093 = vmatprep.mubr.bf16.mxu1 %v1261_v59 }
 0x450   :  { %v9519_v47 = vpop.eup %9518  ;;  %v1236_v51 = vadd.f32 1.0, %v9517_v5  ;;  %v1183_v13 = vadd.f32 %v10398_v35, %v1182_v10  ;;  %v8076_v14 = vpop.f32.mrb[30].mxu1  ;;  %8094 = vmatmul.mubr.bf16.vlgmr.msra.gmra.mrb[32].mxu1 %v1262_v55  ;;  %v1251_v25 = vmul.f32 %v1235_v42, %v1203_v60 }
 0x451   :  { %v1234_v16 = vadd.f32 1.0, %v9519_v47  ;;  %v1211_v17 = vmul.f32 0.5, %v1191_v49  ;;  %v1194_v18 = vadd.f32 %v8076_v14, %v10398_v35  ;;  %v1185_v21 = vpop.f32.mrb[31].mxu1  ;;  %v1249_v29 = vmul.f32 %v1233_v43, %v1201_v3 }
 0x452   :  { %v1252_v26 = vmul.f32 %v1236_v51, %v1204_v7  ;;  %v1209_v27 = vmul.f32 0.5, %v1183_v13  ;;  %v1186_v28 = vadd.f32 %v10398_v35, %v1185_v21 }
 0x453   :  { %v1250_v30 = vmul.f32 %v1234_v16, %v1202_v8  ;;  %9528 = vtanh.f32 %v1211_v17  ;;  %v1212_v34 = vmul.f32 0.5, %v1194_v18 }
 0x454   :  { %9530 = vtanh.f32 %v1209_v27  ;;  %v1210_v36 = vmul.f32 0.5, %v1186_v28  ;;  %v1264_v37 = vpack.c.bf16 %v1252_v26, %v1251_v25  ;;  %v10419_v26 = vld [vmem:[%s11315_s6 + $0x4] ss:$0 sm:$0xff] }
 0x455   :  { %v9521_v38 = vpop.eup %9520  ;;  %9532 = vtanh.f32 %v1212_v34  ;;  %v1263_v40 = vpack.c.bf16 %v1250_v30, %v1249_v29 }
 0x456   :  { %v9523_v45 = vpop.eup %9522  ;;  %v1239_v46 = vadd.f32 1.0, %v9521_v38  ;;  %9534 = vtanh.f32 %v1210_v36 }
 0x457   :  { %v9525_v55 = vpop.eup %9524  ;;  %v1237_v58 = vadd.f32 1.0, %v9523_v45  ;;  %8097 = vmatprep.mubr.bf16.mxu1 %v1263_v40 }
 0x458   :  { %v9527_v60 = vpop.eup %9526  ;;  %v1240_v7 = vadd.f32 1.0, %v9525_v55  ;;  %8098 = vmatmul.mubr.bf16.gmra.mrb[36].mxu1 %v1264_v37  ;;  %v1255_v3 = vmul.f32 %v1239_v46, %v1207_v33 }
 0x459   :  { %v1238_v35 = vadd.f32 1.0, %v9527_v60  ;;  %v1253_v59 = vmul.f32 %v1237_v58, %v1205_v39  ;;  %v9256_v39 = vld [vmem:[#allocation5] sm:$0xff]  }
 0x45a   :  { %v1256_v8 = vmul.f32 %v1240_v7, %v1208_v48 }
 0x45b   :  { %v1254_v61 = vmul.f32 %v1238_v35, %v1206_v56  ;;  %v9264_v56 = vld [vmem:[#allocation2] sm:$0xff]  }
 0x45c   :  { %v1266_v42 = vpack.c.bf16 %v1256_v8, %v1255_v3  ;;  %8125 = vmatprep.mubr.bf16.mxu0 %v9264_v56 }
 0x45d   :  { %v9529_v2 = vpop.eup %9528  ;;  %v1265_v5 = vpack.c.bf16 %v1254_v61, %v1253_v59 }
 0x45e   :  { %v9531_v43 = vpop.eup %9530  ;;  %v1243_v49 = vadd.f32 1.0, %v9529_v2 }
 0x45f   :  { %v9533_v10 = vpop.eup %9532  ;;  %v1241_v47 = vadd.f32 1.0, %v9531_v43  ;;  %8101 = vmatprep.mubr.bf16.mxu1 %v1265_v5 }
 0x460   :  { %v9535_v51 = vpop.eup %9534  ;;  %v1244_v13 = vadd.f32 1.0, %v9533_v10  ;;  %8102 = vmatmul.mubr.bf16.gmra.mrb[40].mxu1 %v1266_v42  ;;  %v1259_v16 = vmul.f32 %v1243_v49, %v1211_v17 }
 0x461   :  { %v1242_v14 = vadd.f32 1.0, %v9535_v51  ;;  %v1257_v21 = vmul.f32 %v1241_v47, %v1209_v27 }
 0x462   :  { %v1260_v18 = vmul.f32 %v1244_v13, %v1212_v34 }
 0x463   :  { %v1258_v25 = vmul.f32 %v1242_v14, %v1210_v36 }
 0x464   :  { %v1268_v33 = vpack.c.bf16 %v1260_v18, %v1259_v16 }
 0x465   :  { %v1267_v48 = vpack.c.bf16 %v1258_v25, %v1257_v21 }
 0x467   :  { %8105 = vmatprep.mubr.bf16.mxu1 %v1267_v48 }
 0x468   :  { %8106 = vmatmul.mubr.bf16.gmra.mrb[44].mxu1 %v1268_v33 }
 0x469   :  { %8157 = vmatprep.mubr.bf16.mxu1 %v9256_v39 }
 0x523   :  { %v8095_v28 = vpop.f32.mrb[32].mxu1 }
 0x524   :  { %v1376_v29 = vpop.f32.mrb[33].mxu1  ;;  %v1385_v36 = vadd.f32 %v8095_v28, %v10419_v26 }
 0x525   :  { %v1377_v17 = vadd.f32 %v10419_v26, %v1376_v29  ;;  %v8096_v30 = vpop.f32.mrb[34].mxu1 }
 0x526   :  { %v1388_v27 = vadd.f32 %v8096_v30, %v10419_v26  ;;  %v1379_v34 = vpop.f32.mrb[35].mxu1  ;;  %v10435_v46 = vadd.f32 %v10353_v54, %v1385_v36  ;;  %v9274_v36 = vld [vmem:[#allocation11 + $0x190] sm:$0xff]  }
 0x527   :  { %v1380_v37 = vadd.f32 %v10419_v26, %v1379_v34  ;;  %v10426_v38 = vadd.f32 %v10349_v52, %v1377_v17  ;;  %v9273_v34 = vld [vmem:[#allocation11 + $0x188] sm:$0xff]  }
 0x528   :  { %v10429_v40 = vadd.f32 %v10347_v50, %v1388_v27  ;;  %v9258_v27 = vld [vmem:[#allocation5 + $0x10] sm:$0xff]  }
 0x529   :  { %v10432_v45 = vadd.f32 %v10351_v53, %v1380_v37  ;;  %v9259_v37 = vld [vmem:[#allocation5 + $0x18] sm:$0xff]  }
 0x52a   :  { %v1456_v7 = vpack.c.bf16 %v10429_v40, %v10435_v46 }
 0x52b   :  { %v1455_v55 = vpack.c.bf16 %v10432_v45, %v10426_v38  ;;  %v8099_v58 = vpop.f32.mrb[36].mxu1 }
 0x52c   :  { %v1392_v60 = vpop.f32.mrb[37].mxu1  ;;  %v1401_v54 = vadd.f32 %v8099_v58, %v10419_v26  ;;  %v9260_v58 = vld [vmem:[#allocation5 + $0x20] sm:$0xff]  }
 0x52d   :  { %v1393_v52 = vadd.f32 %v10419_v26, %v1392_v60  ;;  %v8100_v35 = vpop.f32.mrb[38].mxu1  ;;  %8109 = vmatprep.subr.bf16.mxu0 %v1455_v55  ;;  %8141 = vmatprep.subr.bf16.mxu1 %v1455_v55  ;;  %v9268_v60 = vld [vmem:[#allocation2 + $0x20] sm:$0xff]  }
 0x52e   :  { %v1404_v50 = vadd.f32 %v8100_v35, %v10419_v26  ;;  %v1395_v53 = vpop.f32.mrb[39].mxu1  ;;  %8110 = vmatpush3.bf16.msra.mxu0 %v1455_v55  ;;  %8142 = vmatpush3.bf16.msra.mxu1 %v1455_v55  ;;  %v10455_v42 = vadd.f32 %v10365_v1, %v1401_v54  ;;  %v9267_v55 = vld [vmem:[#allocation2 + $0x18] sm:$0xff]   ;;  %v9261_v35 = vld [vmem:[#allocation5 + $0x28] sm:$0xff]   ;;  %v9270_v54 = vld [vmem:[#allocation2 + $0x30] sm:$0xff]  }
 0x52f   :  { %v1396_v3 = vadd.f32 %v10419_v26, %v1395_v53  ;;  %8111 = vmatprep.subr.bf16.mxu0 %v1456_v7  ;;  %8143 = vmatprep.subr.bf16.mxu1 %v1456_v7  ;;  %v10446_v8 = vadd.f32 %v10361_v63, %v1393_v52  ;;  %v9276_v52 = vld [vmem:[#allocation11 + $0x1a0] sm:$0xff]   ;;  %v9262_v53 = vld [vmem:[#allocation5 + $0x30] sm:$0xff]  }
 0x530   :  { %v10449_v59 = vadd.f32 %v10359_v62, %v1404_v50  ;;  %v9269_v50 = vld [vmem:[#allocation2 + $0x28] sm:$0xff]  }
 0x531   :  { %v10452_v61 = vadd.f32 %v10363_v0, %v1396_v3  ;;  %v9277_v3 = vld [vmem:[#allocation11 + $0x1a8] sm:$0xff]  }
 0x532   :  { %8112 = vmatpush3.bf16.msra.mxu0 %v1456_v7  ;;  %8144 = vmatpush3.bf16.msra.mxu1 %v1456_v7  ;;  %v1458_v63 = vpack.c.bf16 %v10449_v59, %v10455_v42  ;;  %v9275_v7 = vld [vmem:[#allocation11 + $0x198] sm:$0xff]  }
 0x533   :  { %v1457_v2 = vpack.c.bf16 %v10452_v61, %v10446_v8  ;;  %v8103_v5 = vpop.f32.mrb[40].mxu1 }
 0x534   :  { %v1408_v43 = vpop.f32.mrb[41].mxu1  ;;  %v1417_v1 = vadd.f32 %v8103_v5, %v10419_v26  ;;  %v9263_v5 = vld [vmem:[#allocation5 + $0x38] sm:$0xff]  }
 0x535   :  { %v1409_v49 = vadd.f32 %v10419_v26, %v1408_v43  ;;  %v8104_v62 = vpop.f32.mrb[42].mxu1  ;;  %8113 = vmatprep.subr.bf16.mxu0 %v1457_v2  ;;  %8145 = vmatprep.subr.bf16.mxu1 %v1457_v2  ;;  %v9271_v43 = vld [vmem:[#allocation2 + $0x38] sm:$0xff]  }
 0x536   :  { %v1420_v0 = vadd.f32 %v8104_v62, %v10419_v26  ;;  %v1411_v10 = vpop.f32.mrb[43].mxu1  ;;  %8114 = vmatpush3.bf16.msra.mxu0 %v1457_v2  ;;  %8146 = vmatpush3.bf16.msra.mxu1 %v1457_v2  ;;  %v10475_v16 = vadd.f32 %v10377_v12, %v1417_v1  ;;  %v9278_v2 = vld [vmem:[#allocation11 + $0x1b0] sm:$0xff]   ;;  %v9296_v62 = vld [vmem:[#allocation11 + $0x200] sm:$0xff]  }
 0x537   :  { %v1412_v47 = vadd.f32 %v10419_v26, %v1411_v10  ;;  %8115 = vmatprep.subr.bf16.mxu0 %v1458_v63  ;;  %8147 = vmatprep.subr.bf16.mxu1 %v1458_v63  ;;  %v10466_v51 = vadd.f32 %v10373_v57, %v1409_v49  ;;  %v9280_v49 = vld [vmem:[#allocation11 + $0x140] sm:$0xff]  }
 0x538   :  { %v10469_v13 = vadd.f32 %v10371_v9, %v1420_v0  ;;  %v9297_v0 = vld [vmem:[#allocation11 + $0x208] sm:$0xff]  }
 0x539   :  { %v10472_v14 = vadd.f32 %v10375_v11, %v1412_v47 }
 0x53a   :  { %8116 = vmatpush3.bf16.msra.mxu0 %v1458_v63  ;;  %8148 = vmatpush3.bf16.msra.mxu1 %v1458_v63  ;;  %v1460_v57 = vpack.c.bf16 %v10469_v13, %v10475_v16  ;;  %v9279_v63 = vld [vmem:[#allocation11 + $0x1b8] sm:$0xff]  }
 0x53b   :  { %v1459_v18 = vpack.c.bf16 %v10472_v14, %v10466_v51  ;;  %v8107_v21 = vpop.f32.mrb[44].mxu1 }
 0x53c   :  { %v1424_v25 = vpop.f32.mrb[45].mxu1  ;;  %v1433_v12 = vadd.f32 %v8107_v21, %v10419_v26 }
 0x53d   :  { %v1425_v33 = vadd.f32 %v10419_v26, %v1424_v25  ;;  %v8108_v9 = vpop.f32.mrb[46].mxu1  ;;  %8117 = vmatprep.subr.bf16.mxu0 %v1459_v18  ;;  %8149 = vmatprep.subr.bf16.mxu1 %v1459_v18 }
 0x53e   :  { %v1436_v11 = vadd.f32 %v8108_v9, %v10419_v26  ;;  %v1427_v48 = vpop.f32.mrb[47].mxu1  ;;  %8118 = vmatpush3.bf16.msra.mxu0 %v1459_v18  ;;  %8150 = vmatpush3.bf16.msra.mxu1 %v1459_v18  ;;  %v10495_v17 = vadd.f32 %v10389_v24, %v1433_v12  ;;  %v9266_v24 = vld [vmem:[#allocation2 + $0x10] sm:$0xff]  }
 0x53f   :  { %v1428_v39 = vadd.f32 %v10419_v26, %v1427_v48  ;;  %8119 = vmatprep.subr.bf16.mxu0 %v1460_v57  ;;  %8151 = vmatprep.subr.bf16.mxu1 %v1460_v57  ;;  %v10486_v56 = vadd.f32 %v10385_v22, %v1425_v33  ;;  %v9257_v22 = vld [vmem:[#allocation5 + $0x8] sm:$0xff]  }
 0x540   :  { %v10489_v28 = vadd.f32 %v10383_v20, %v1436_v11  ;;  %v9272_v20 = vld [vmem:[#allocation11 + $0x180] sm:$0xff]  }
 0x541   :  { %v10492_v29 = vadd.f32 %v10387_v23, %v1428_v39  ;;  %v9265_v23 = vld [vmem:[#allocation2 + $0x8] sm:$0xff]  }
 0x542   :  { %8120 = vmatpush3.bf16.msra.mxu0 %v1460_v57  ;;  %8152 = vmatpush3.bf16.msra.mxu1 %v1460_v57  ;;  %v1462_v26 = vpack.c.bf16 %v10489_v28, %v10495_v17  ;;  %v9281_v39 = vld [vmem:[#allocation11 + $0x148] sm:$0xff]  }
 0x543   :  { %v1461_v30 = vpack.c.bf16 %v10492_v29, %v10486_v56 }
 0x545   :  { %8121 = vmatprep.subr.bf16.mxu0 %v1461_v30  ;;  %8153 = vmatprep.subr.bf16.mxu1 %v1461_v30 }
 0x546   :  { %8122 = vmatpush3.bf16.msra.mxu0 %v1461_v30  ;;  %8154 = vmatpush3.bf16.msra.mxu1 %v1461_v30 }
 0x547   :  { %8123 = vmatprep.subr.bf16.mxu0 %v1462_v26  ;;  %8155 = vmatprep.subr.bf16.mxu1 %v1462_v26 }
 0x54a   :  { %8124 = vmatpush3.bf16.msra.mxu0 %v1462_v26  ;;  %8156 = vmatpush3.bf16.msra.mxu1 %v1462_v26 }
 0x54b   :  { %8173 = vmatprep.subr.bf16.mxu0 %v9272_v20  ;;  %8269 = vmatprep.subr.bf16.mxu1 %v9296_v62 }
 0x54d   :  { %8158 = vmatmul.mubr.bf16.vlgmr.msra.gmra.mrb[48].mxu1 %v9257_v22  ;;  %8126 = vmatmul.mubr.bf16.vlgmr.msra.gmra.mrb[32].mxu0 %v9265_v23  ;;  %v9282_v22 = vld [vmem:[#allocation11 + $0x150] sm:$0xff]  }
 0x54e   :  { %8161 = vmatprep.mubr.bf16.mxu1 %v9258_v27  ;;  %8129 = vmatprep.mubr.bf16.mxu0 %v9266_v24 }
 0x54f   :  { %8174 = vmatpush3.bf16.msra.mxu0 %v9272_v20  ;;  %8270 = vmatpush3.bf16.msra.mxu1 %v9296_v62 }
 0x550   :  { %8175 = vmatprep.subr.bf16.mxu0 %v9273_v34  ;;  %8271 = vmatprep.subr.bf16.mxu1 %v9297_v0 }
 0x553   :  { %8176 = vmatpush3.bf16.msra.mxu0 %v9273_v34  ;;  %8272 = vmatpush3.bf16.msra.mxu1 %v9297_v0 }
 0x554   :  { %8177 = vmatprep.subr.bf16.mxu0 %v9274_v36 }
 0x555   :  { %8162 = vmatmul.mubr.bf16.gmra.mrb[52].mxu1 %v9259_v37  ;;  %8130 = vmatmul.mubr.bf16.gmra.mrb[36].mxu0 %v9267_v55 }
 0x556   :  { %8165 = vmatprep.mubr.bf16.mxu1 %v9260_v58  ;;  %8133 = vmatprep.mubr.bf16.mxu0 %v9268_v60 }
 0x557   :  { %8178 = vmatpush3.bf16.msra.mxu0 %v9274_v36 }
 0x558   :  { %8179 = vmatprep.subr.bf16.mxu0 %v9275_v7 }
 0x55b   :  { %8180 = vmatpush3.bf16.msra.mxu0 %v9275_v7  ;;  %v9283_v7 = vld [vmem:[#allocation11 + $0x158] sm:$0xff]  }
 0x55c   :  { %8181 = vmatprep.subr.bf16.mxu0 %v9276_v52 }
 0x55d   :  { %8166 = vmatmul.mubr.bf16.gmra.mrb[56].mxu1 %v9261_v35  ;;  %8134 = vmatmul.mubr.bf16.gmra.mrb[40].mxu0 %v9269_v50 }
 0x55e   :  { %8169 = vmatprep.mubr.bf16.mxu1 %v9262_v53  ;;  %8137 = vmatprep.mubr.bf16.mxu0 %v9270_v54  ;;  %v9284_v53 = vld [vmem:[#allocation11 + $0x160] sm:$0xff]  }
 0x55f   :  { %8182 = vmatpush3.bf16.msra.mxu0 %v9276_v52 }
 0x560   :  { %8183 = vmatprep.subr.bf16.mxu0 %v9277_v3 }
 0x563   :  { %8184 = vmatpush3.bf16.msra.mxu0 %v9277_v3 }
 0x564   :  { %8185 = vmatprep.subr.bf16.mxu0 %v9278_v2 }
 0x565   :  { %8170 = vmatmul.mubr.bf16.gmra.mrb[60].mxu1 %v9263_v5  ;;  %8138 = vmatmul.mubr.bf16.gmra.mrb[44].mxu0 %v9271_v43 }
 0x567   :  { %8186 = vmatpush3.bf16.msra.mxu0 %v9278_v2 }
 0x568   :  { %8187 = vmatprep.subr.bf16.mxu0 %v9279_v63 }
 0x56b   :  { %8188 = vmatpush3.bf16.msra.mxu0 %v9279_v63 }
 0x56c   :  { %8205 = vmatprep.subr.bf16.mxu0 %v9280_v49 }
 0x620   :  { %v8159_v10 = vpop.f32.mrb[48].mxu1  ;;  %v10501_v1 = vpop.f32.mrb[32].mxu0 }
 0x621   :  { %v1698_v47 = vpop.f32.mrb[49].mxu1  ;;  %v10503_v18 = vpop.f32.mrb[33].mxu0 }
 0x622   :  { %v8160_v21 = vpop.f32.mrb[50].mxu1  ;;  %v10505_v25 = vpop.f32.mrb[34].mxu0 }
 0x623   :  { %v1762_v57 = vpack.c.bf16 %v8160_v21, %v8159_v10  ;;  %v1701_v33 = vpop.f32.mrb[51].mxu1  ;;  %v1609_v9 = vpack.c.bf16 %v10505_v25, %v10501_v1  ;;  %v10509_v11 = vpop.f32.mrb[35].mxu0  ;;  %v9285_v10 = vld [vmem:[#allocation11 + $0x168] sm:$0xff]   ;;  %v9294_v1 = vld [vmem:[#allocation11 + $0x1f0] sm:$0xff]   ;;  %v9295_v25 = vld [vmem:[#allocation11 + $0x1f8] sm:$0xff]  }
 0x624   :  { %v1761_v48 = vpack.c.bf16 %v1701_v33, %v1698_v47  ;;  %v1608_v12 = vpack.c.bf16 %v10509_v11, %v10503_v18  ;;  %v9286_v33 = vld [vmem:[#allocation11 + $0x170] sm:$0xff]   ;;  %v9292_v18 = vld [vmem:[#allocation11 + $0x1e0] sm:$0xff]   ;;  %v9293_v11 = vld [vmem:[#allocation11 + $0x1e8] sm:$0xff]  }
 0x626   :  { %8189 = vmatprep.mubr.bf16.mxu0 %v1761_v48 }
 0x627   :  { %8190 = vmatmul.mubr.bf16.vlgmr.msra.gmra.mrb[48].mxu0 %v1762_v57 }
 0x628   :  { %v8163_v30 = vpop.f32.mrb[52].mxu1  ;;  %8206 = vmatpush3.bf16.msra.mxu0 %v9280_v49  ;;  %v10513_v26 = vpop.f32.mrb[36].mxu0 }
 0x629   :  { %v1714_v20 = vpop.f32.mrb[53].mxu1  ;;  %8207 = vmatprep.subr.bf16.mxu0 %v9281_v39  ;;  %v10515_v23 = vpop.f32.mrb[37].mxu0 }
 0x62a   :  { %v8164_v27 = vpop.f32.mrb[54].mxu1  ;;  %v10517_v24 = vpop.f32.mrb[38].mxu0 }
 0x62b   :  { %v1764_v34 = vpack.c.bf16 %v8164_v27, %v8163_v30  ;;  %v1717_v36 = vpop.f32.mrb[55].mxu1  ;;  %v1611_v37 = vpack.c.bf16 %v10517_v24, %v10513_v26  ;;  %v1564_v55 = vpop.f32.mrb[39].mxu0 }
 0x62c   :  { %v1763_v58 = vpack.c.bf16 %v1717_v36, %v1714_v20  ;;  %8208 = vmatpush3.bf16.msra.mxu0 %v9281_v39  ;;  %v1610_v60 = vpack.c.bf16 %v1564_v55, %v10515_v23  ;;  %v9287_v55 = vld [vmem:[#allocation11 + $0x178] sm:$0xff]  }
 0x62d   :  { %8209 = vmatprep.subr.bf16.mxu0 %v9282_v22 }
 0x62e   :  { %8193 = vmatprep.mubr.bf16.mxu0 %v1763_v58  ;;  %v9288_v58 = vld [vmem:[#allocation11 + $0x1c0] sm:$0xff]  }
 0x62f   :  { %8194 = vmatmul.mubr.bf16.gmra.mrb[52].mxu0 %v1764_v34 }
 0x630   :  { %v8167_v52 = vpop.f32.mrb[56].mxu1  ;;  %8210 = vmatpush3.bf16.msra.mxu0 %v9282_v22  ;;  %v8135_v35 = vpop.f32.mrb[40].mxu0 }
 0x631   :  { %v1730_v50 = vpop.f32.mrb[57].mxu1  ;;  %8211 = vmatprep.subr.bf16.mxu0 %v9283_v7  ;;  %v1577_v54 = vpop.f32.mrb[41].mxu0 }
 0x632   :  { %v8168_v3 = vpop.f32.mrb[58].mxu1  ;;  %v8136_v2 = vpop.f32.mrb[42].mxu0 }
 0x633   :  { %v1766_v5 = vpack.c.bf16 %v8168_v3, %v8167_v52  ;;  %v1733_v43 = vpop.f32.mrb[59].mxu1  ;;  %v1613_v63 = vpack.c.bf16 %v8136_v2, %v8135_v35  ;;  %v1580_v49 = vpop.f32.mrb[43].mxu0  ;;  %v9290_v52 = vld [vmem:[#allocation11 + $0x1d0] sm:$0xff]   ;;  %v9291_v35 = vld [vmem:[#allocation11 + $0x1d8] sm:$0xff]  }
 0x634   :  { %v1765_v62 = vpack.c.bf16 %v1733_v43, %v1730_v50  ;;  %8212 = vmatpush3.bf16.msra.mxu0 %v9283_v7  ;;  %v1612_v0 = vpack.c.bf16 %v1580_v49, %v1577_v54  ;;  %v9289_v7 = vld [vmem:[#allocation11 + $0x1c8] sm:$0xff]  }
 0x635   :  { %8213 = vmatprep.subr.bf16.mxu0 %v9284_v53 }
 0x636   :  { %8197 = vmatprep.mubr.bf16.mxu0 %v1765_v62 }
 0x637   :  { %8198 = vmatmul.mubr.bf16.gmra.mrb[56].mxu0 %v1766_v5 }
 0x638   :  { %v8171_v47 = vpop.f32.mrb[60].mxu1  ;;  %8214 = vmatpush3.bf16.msra.mxu0 %v9284_v53  ;;  %v8139_v21 = vpop.f32.mrb[44].mxu0 }
 0x639   :  { %v1746_v57 = vpop.f32.mrb[61].mxu1  ;;  %8215 = vmatprep.subr.bf16.mxu0 %v9285_v10  ;;  %v1593_v48 = vpop.f32.mrb[45].mxu0 }
 0x63a   :  { %v8172_v39 = vpop.f32.mrb[62].mxu1  ;;  %v8140_v30 = vpop.f32.mrb[46].mxu0 }
 0x63b   :  { %v1768_v20 = vpack.c.bf16 %v8172_v39, %v8171_v47  ;;  %v1749_v22 = vpop.f32.mrb[63].mxu1  ;;  %v1615_v23 = vpack.c.bf16 %v8140_v30, %v8139_v21  ;;  %v1596_v27 = vpop.f32.mrb[47].mxu0 }
 0x63c   :  { %v1767_v34 = vpack.c.bf16 %v1749_v22, %v1746_v57  ;;  %8216 = vmatpush3.bf16.msra.mxu0 %v9285_v10  ;;  %v1614_v36 = vpack.c.bf16 %v1596_v27, %v1593_v48 }
 0x63d   :  { %8217 = vmatprep.subr.bf16.mxu0 %v9286_v33 }
 0x63e   :  { %8201 = vmatprep.mubr.bf16.mxu0 %v1767_v34 }
 0x63f   :  { %8202 = vmatmul.mubr.bf16.gmra.mrb[60].mxu0 %v1768_v20 }
 0x640   :  { %8218 = vmatpush3.bf16.msra.mxu0 %v9286_v33  ;;  %8221 = vmatprep.mubr.bf16.mxu0 %v1608_v12  ;;  %v9300_v12 = vld [vmem:[#allocation11 + $0x220] sm:$0xff]  }
 0x641   :  { %8219 = vmatprep.subr.bf16.mxu0 %v9287_v55 }
 0x644   :  { %8220 = vmatpush3.bf16.msra.mxu0 %v9287_v55 }
 0x645   :  { %8237 = vmatprep.subr.bf16.mxu0 %v9288_v58 }
 0x647   :  { %8222 = vmatmul.mubr.bf16.vlgmr.msra.gmra.mrb[48].mxu0 %v1609_v9  ;;  %v9298_v9 = vld [vmem:[#allocation11 + $0x210] sm:$0xff]  }
 0x648   :  { %8238 = vmatpush3.bf16.msra.mxu0 %v9288_v58  ;;  %8225 = vmatprep.mubr.bf16.mxu0 %v1610_v60 }
 0x649   :  { %8239 = vmatprep.subr.bf16.mxu0 %v9289_v7  ;;  %8273 = vmatprep.subr.bf16.mxu1 %v9298_v9 }
 0x64a   :  { %8274 = vmatpush3.bf16.msra.mxu1 %v9298_v9 }
 0x64c   :  { %8240 = vmatpush3.bf16.msra.mxu0 %v9289_v7 }
 0x64d   :  { %8241 = vmatprep.subr.bf16.mxu0 %v9290_v52 }
 0x64f   :  { %8226 = vmatmul.mubr.bf16.gmra.mrb[52].mxu0 %v1611_v37 }
 0x650   :  { %8242 = vmatpush3.bf16.msra.mxu0 %v9290_v52  ;;  %8229 = vmatprep.mubr.bf16.mxu0 %v1612_v0 }
 0x651   :  { %8243 = vmatprep.subr.bf16.mxu0 %v9291_v35 }
 0x654   :  { %8244 = vmatpush3.bf16.msra.mxu0 %v9291_v35 }
 0x655   :  { %8245 = vmatprep.subr.bf16.mxu0 %v9292_v18 }
 0x657   :  { %8230 = vmatmul.mubr.bf16.gmra.mrb[56].mxu0 %v1613_v63 }
 0x658   :  { %8246 = vmatpush3.bf16.msra.mxu0 %v9292_v18  ;;  %8233 = vmatprep.mubr.bf16.mxu0 %v1614_v36 }
 0x659   :  { %8247 = vmatprep.subr.bf16.mxu0 %v9293_v11 }
 0x65c   :  { %8248 = vmatpush3.bf16.msra.mxu0 %v9293_v11 }
 0x65d   :  { %8249 = vmatprep.subr.bf16.mxu0 %v9294_v1 }
 0x65f   :  { %8234 = vmatmul.mubr.bf16.gmra.mrb[60].mxu0 %v1615_v23 }
 0x660   :  { %8250 = vmatpush3.bf16.msra.mxu0 %v9294_v1  ;;  %8253 = vmatprep.mubr.bf16.mxu0 %v10310_v44  ;;  %v9299_v44 = vld [vmem:[#allocation11 + $0x218] sm:$0xff]  }
 0x661   :  { %8251 = vmatprep.subr.bf16.mxu0 %v9295_v25  ;;  %8275 = vmatprep.subr.bf16.mxu1 %v9299_v44 }
 0x662   :  { %8276 = vmatpush3.bf16.msra.mxu1 %v9299_v44 }
 0x663   :  { %8277 = vmatprep.subr.bf16.mxu1 %v9300_v12 }
 0x664   :  { %8252 = vmatpush3.bf16.msra.mxu0 %v9295_v25 }
 0x666   :  { %8278 = vmatpush3.bf16.msra.mxu1 %v9300_v12 }
 0x667   :  { %8254 = vmatmul.mubr.bf16.vlgmr.msra.gmra.mrb[48].mxu0 %v10308_v41  ;;  %v9301_v41 = vld [vmem:[#allocation11 + $0x228] sm:$0xff]  }
 0x668   :  { %8257 = vmatprep.mubr.bf16.mxu0 %v10322_v6  ;;  %8279 = vmatprep.subr.bf16.mxu1 %v9301_v41  ;;  %v9303_v6 = vld [vmem:[#allocation11 + $0x238] sm:$0xff]  }
 0x66a   :  { %8280 = vmatpush3.bf16.msra.mxu1 %v9301_v41 }
 0x66f   :  { %8258 = vmatmul.mubr.bf16.gmra.mrb[52].mxu0 %v10320_v4  ;;  %v9302_v4 = vld [vmem:[#allocation11 + $0x230] sm:$0xff]  }
 0x670   :  { %8261 = vmatprep.mubr.bf16.mxu0 %v10330_v19  ;;  %8281 = vmatprep.subr.bf16.mxu1 %v9302_v4 }
 0x671   :  { %8282 = vmatpush3.bf16.msra.mxu1 %v9302_v4 }
 0x672   :  { %8283 = vmatprep.subr.bf16.mxu1 %v9303_v6 }
 0x675   :  { %8284 = vmatpush3.bf16.msra.mxu1 %v9303_v6 }
 0x677   :  { %8262 = vmatmul.mubr.bf16.gmra.mrb[56].mxu0 %v10328_v15  ;;  %v10542_v15 = vld [vmem:[%s11315_s6 + $0x5] ss:$0 sm:$0xff] }
 0x678   :  { %8265 = vmatprep.mubr.bf16.mxu0 %v10338_v32 }
 0x67f   :  { %8266 = vmatmul.mubr.bf16.gmra.mrb[60].mxu0 %v10336_v31 }
 0x73a   :  { %v8255_v19 = vpop.f32.mrb[48].mxu0 }
 0x73b   :  { %v2281_v31 = vadd.f32 %v8255_v19, %v10542_v15  ;;  %v2192_v32 = vpop.f32.mrb[49].mxu0 }
 0x73c   :  { %v2279_v26 = vadd.f32 %v10542_v15, %v2192_v32  ;;  %v8256_v24 = vpop.f32.mrb[50].mxu0 }
 0x73d   :  { %v2297_v37 = vmul.f32 0.5, %v2281_v31  ;;  %v2282_v60 = vadd.f32 %v8256_v24, %v10542_v15  ;;  %v2195_v50 = vpop.f32.mrb[51].mxu0 }
 0x73e   :  { %v2295_v53 = vmul.f32 0.5, %v2279_v26  ;;  %v2280_v54 = vadd.f32 %v10542_v15, %v2195_v50 }
 0x73f   :  { %9536 = vtanh.f32 %v2297_v37  ;;  %v2298_v3 = vmul.f32 0.5, %v2282_v60 }
 0x740   :  { %9538 = vtanh.f32 %v2295_v53  ;;  %v2296_v2 = vmul.f32 0.5, %v2280_v54 }
 0x741   :  { %9540 = vtanh.f32 %v2298_v3 }
 0x742   :  { %9542 = vtanh.f32 %v2296_v2  ;;  %v8259_v5 = vpop.f32.mrb[52].mxu0 }
 0x743   :  { %v2285_v43 = vadd.f32 %v8259_v5, %v10542_v15  ;;  %v2208_v63 = vpop.f32.mrb[53].mxu0 }
 0x744   :  { %v2283_v49 = vadd.f32 %v10542_v15, %v2208_v63  ;;  %v8260_v62 = vpop.f32.mrb[54].mxu0 }
 0x745   :  { %v2301_v0 = vmul.f32 0.5, %v2285_v43  ;;  %v2286_v10 = vadd.f32 %v8260_v62, %v10542_v15  ;;  %v2211_v47 = vpop.f32.mrb[55].mxu0 }
 0x746   :  { %v2299_v21 = vmul.f32 0.5, %v2283_v49  ;;  %v2284_v57 = vadd.f32 %v10542_v15, %v2211_v47 }
 0x747   :  { %9544 = vtanh.f32 %v2301_v0  ;;  %v2302_v33 = vmul.f32 0.5, %v2286_v10 }
 0x748   :  { %9546 = vtanh.f32 %v2299_v21  ;;  %v2300_v48 = vmul.f32 0.5, %v2284_v57 }
 0x749   :  { %v9537_v39 = vpop.eup %9536  ;;  %9548 = vtanh.f32 %v2302_v33 }
 0x74a   :  { %v9539_v30 = vpop.eup %9538  ;;  %v2329_v20 = vadd.f32 1.0, %v9537_v39  ;;  %9550 = vtanh.f32 %v2300_v48  ;;  %v8263_v22 = vpop.f32.mrb[56].mxu0 }
 0x74b   :  { %v9541_v23 = vpop.eup %9540  ;;  %v2327_v27 = vadd.f32 1.0, %v9539_v30  ;;  %v2289_v34 = vadd.f32 %v8263_v22, %v10542_v15  ;;  %v2224_v36 = vpop.f32.mrb[57].mxu0 }
 0x74c   :  { %v9543_v55 = vpop.eup %9542  ;;  %v2330_v58 = vadd.f32 1.0, %v9541_v23  ;;  %v2287_v7 = vadd.f32 %v10542_v15, %v2224_v36  ;;  %v8264_v52 = vpop.f32.mrb[58].mxu0  ;;  %v2345_v25 = vmul.f32 %v2329_v20, %v2297_v37 }
 0x74d   :  { %v2328_v35 = vadd.f32 1.0, %v9543_v55  ;;  %v2305_v18 = vmul.f32 0.5, %v2289_v34  ;;  %v2290_v11 = vadd.f32 %v8264_v52, %v10542_v15  ;;  %v2227_v1 = vpop.f32.mrb[59].mxu0  ;;  %v2343_v41 = vmul.f32 %v2327_v27, %v2295_v53 }
 0x74e   :  { %v2346_v9 = vmul.f32 %v2330_v58, %v2298_v3  ;;  %v2303_v44 = vmul.f32 0.5, %v2287_v7  ;;  %v2288_v12 = vadd.f32 %v10542_v15, %v2227_v1 }
 0x74f   :  { %v2344_v4 = vmul.f32 %v2328_v35, %v2296_v2  ;;  %9552 = vtanh.f32 %v2305_v18  ;;  %v2306_v6 = vmul.f32 0.5, %v2290_v11 }
 0x750   :  { %v2360_v19 = vpack.c.bf16 %v2346_v9, %v2345_v25  ;;  %9554 = vtanh.f32 %v2303_v44  ;;  %v2304_v31 = vmul.f32 0.5, %v2288_v12 }
 0x751   :  { %v9545_v32 = vpop.eup %9544  ;;  %9556 = vtanh.f32 %v2306_v6  ;;  %v2359_v26 = vpack.c.bf16 %v2344_v4, %v2343_v41 }
 0x752   :  { %v9547_v24 = vpop.eup %9546  ;;  %v2333_v60 = vadd.f32 1.0, %v9545_v32  ;;  %9558 = vtanh.f32 %v2304_v31  ;;  %v8267_v50 = vpop.f32.mrb[60].mxu0 }
 0x753   :  { %v9549_v54 = vpop.eup %9548  ;;  %v2331_v37 = vadd.f32 1.0, %v9547_v24  ;;  %v2293_v3 = vadd.f32 %v8267_v50, %v10542_v15  ;;  %v2240_v5 = vpop.f32.mrb[61].mxu0  ;;  %8285 = vmatprep.mubr.bf16.mxu1 %v2359_v26 }
 0x754   :  { %v9551_v53 = vpop.eup %9550  ;;  %v2334_v2 = vadd.f32 1.0, %v9549_v54  ;;  %v2291_v43 = vadd.f32 %v10542_v15, %v2240_v5  ;;  %v8268_v63 = vpop.f32.mrb[62].mxu0  ;;  %8286 = vmatmul.mubr.bf16.vlgmr.msra.gmra.mrb[64].mxu1 %v2360_v19  ;;  %v2349_v57 = vmul.f32 %v2333_v60, %v2301_v0 }
 0x755   :  { %v2332_v49 = vadd.f32 1.0, %v9551_v53  ;;  %v2309_v62 = vmul.f32 0.5, %v2293_v3  ;;  %v2294_v10 = vadd.f32 %v8268_v63, %v10542_v15  ;;  %v2243_v47 = vpop.f32.mrb[63].mxu0  ;;  %v2347_v22 = vmul.f32 %v2331_v37, %v2299_v21 }
 0x756   :  { %v2350_v39 = vmul.f32 %v2334_v2, %v2302_v33  ;;  %v2307_v30 = vmul.f32 0.5, %v2291_v43  ;;  %v2292_v20 = vadd.f32 %v10542_v15, %v2243_v47 }
 0x757   :  { %v2348_v23 = vmul.f32 %v2332_v49, %v2300_v48  ;;  %9560 = vtanh.f32 %v2309_v62  ;;  %v2310_v27 = vmul.f32 0.5, %v2294_v10 }
 0x758   :  { %9562 = vtanh.f32 %v2307_v30  ;;  %v2308_v34 = vmul.f32 0.5, %v2292_v20  ;;  %v2362_v36 = vpack.c.bf16 %v2350_v39, %v2349_v57 }
 0x759   :  { %v9553_v55 = vpop.eup %9552  ;;  %9564 = vtanh.f32 %v2310_v27  ;;  %v2361_v58 = vpack.c.bf16 %v2348_v23, %v2347_v22 }
 0x75a   :  { %v9555_v7 = vpop.eup %9554  ;;  %v2337_v52 = vadd.f32 1.0, %v9553_v55  ;;  %9566 = vtanh.f32 %v2308_v34 }
 0x75b   :  { %v9557_v35 = vpop.eup %9556  ;;  %v2335_v11 = vadd.f32 1.0, %v9555_v7  ;;  %8289 = vmatprep.mubr.bf16.mxu1 %v2361_v58 }
 0x75c   :  { %v9559_v0 = vpop.eup %9558  ;;  %v2338_v33 = vadd.f32 1.0, %v9557_v35  ;;  %8290 = vmatmul.mubr.bf16.gmra.mrb[68].mxu1 %v2362_v36  ;;  %v2353_v21 = vmul.f32 %v2337_v52, %v2305_v18 }
 0x75d   :  { %v2336_v15 = vadd.f32 1.0, %v9559_v0  ;;  %v2351_v1 = vmul.f32 %v2335_v11, %v2303_v44  ;;  %v9888_v44 = vld [vmem:[#allocation7] sm:$0xff]  }
 0x75e   :  { %v2354_v48 = vmul.f32 %v2338_v33, %v2306_v6 }
 0x75f   :  { %v2352_v25 = vmul.f32 %v2336_v15, %v2304_v31  ;;  %v10563_v31 = vld [vmem:[%s11315_s6 + $0x6] ss:$0 sm:$0xff] }
 0x760   :  { %v2364_v9 = vpack.c.bf16 %v2354_v48, %v2353_v21 }
 0x761   :  { %v9561_v12 = vpop.eup %9560  ;;  %v2363_v41 = vpack.c.bf16 %v2352_v25, %v2351_v1 }
 0x762   :  { %v9563_v4 = vpop.eup %9562  ;;  %v2341_v19 = vadd.f32 1.0, %v9561_v12 }
 0x763   :  { %v9565_v32 = vpop.eup %9564  ;;  %v2339_v26 = vadd.f32 1.0, %v9563_v4  ;;  %8293 = vmatprep.mubr.bf16.mxu1 %v2363_v41 }
 0x764   :  { %v9567_v24 = vpop.eup %9566  ;;  %v2342_v60 = vadd.f32 1.0, %v9565_v32  ;;  %8294 = vmatmul.mubr.bf16.gmra.mrb[72].mxu1 %v2364_v9  ;;  %v2357_v54 = vmul.f32 %v2341_v19, %v2309_v62 }
 0x765   :  { %v2340_v50 = vadd.f32 1.0, %v9567_v24  ;;  %v2355_v3 = vmul.f32 %v2339_v26, %v2307_v30 }
 0x766   :  { %v2358_v37 = vmul.f32 %v2342_v60, %v2310_v27 }
 0x767   :  { %v2356_v5 = vmul.f32 %v2340_v50, %v2308_v34 }
 0x768   :  { %v2366_v18 = vpack.c.bf16 %v2358_v37, %v2357_v54 }
 0x769   :  { %v2365_v6 = vpack.c.bf16 %v2356_v5, %v2355_v3 }
 0x76b   :  { %8297 = vmatprep.mubr.bf16.mxu1 %v2365_v6 }
 0x76c   :  { %8298 = vmatmul.mubr.bf16.gmra.mrb[76].mxu1 %v2366_v18 }
 0x76d   :  { %8317 = vmatprep.mubr.bf16.mxu1 %v9888_v44 }
 0x827   :  { %v8287_v53 = vpop.f32.mrb[64].mxu1 }
 0x828   :  { %v2483_v2 = vadd.f32 %v8287_v53, %v10563_v31  ;;  %v2474_v43 = vpop.f32.mrb[65].mxu1 }
 0x829   :  { %v2475_v63 = vadd.f32 %v10563_v31, %v2474_v43  ;;  %v8288_v49 = vpop.f32.mrb[66].mxu1 }
 0x82a   :  { %v2539_v62 = vmul.f32 0.5, %v2483_v2  ;;  %v2486_v10 = vadd.f32 %v8288_v49, %v10563_v31  ;;  %v2477_v47 = vpop.f32.mrb[67].mxu1 }
 0x82b   :  { %v2537_v57 = vmul.f32 0.5, %v2475_v63  ;;  %v2478_v39 = vadd.f32 %v10563_v31, %v2477_v47 }
 0x82c   :  { %9568 = vtanh.f32 %v2539_v62  ;;  %v2540_v30 = vmul.f32 0.5, %v2486_v10 }
 0x82d   :  { %9570 = vtanh.f32 %v2537_v57  ;;  %v2538_v20 = vmul.f32 0.5, %v2478_v39 }
 0x82e   :  { %9572 = vtanh.f32 %v2540_v30 }
 0x82f   :  { %9574 = vtanh.f32 %v2538_v20  ;;  %v8291_v22 = vpop.f32.mrb[68].mxu1 }
 0x830   :  { %v2499_v23 = vadd.f32 %v8291_v22, %v10563_v31  ;;  %v2490_v27 = vpop.f32.mrb[69].mxu1 }
 0x831   :  { %v2491_v34 = vadd.f32 %v10563_v31, %v2490_v27  ;;  %v8292_v36 = vpop.f32.mrb[70].mxu1 }
 0x832   :  { %v2543_v55 = vmul.f32 0.5, %v2499_v23  ;;  %v2502_v58 = vadd.f32 %v8292_v36, %v10563_v31  ;;  %v2493_v7 = vpop.f32.mrb[71].mxu1 }
 0x833   :  { %v2541_v52 = vmul.f32 0.5, %v2491_v34  ;;  %v2494_v35 = vadd.f32 %v10563_v31, %v2493_v7 }
 0x834   :  { %9576 = vtanh.f32 %v2543_v55  ;;  %v2544_v11 = vmul.f32 0.5, %v2502_v58 }
 0x835   :  { %9578 = vtanh.f32 %v2541_v52  ;;  %v2542_v0 = vmul.f32 0.5, %v2494_v35 }
 0x836   :  { %v9569_v33 = vpop.eup %9568  ;;  %9580 = vtanh.f32 %v2544_v11 }
 0x837   :  { %v9571_v15 = vpop.eup %9570  ;;  %v2571_v21 = vadd.f32 1.0, %v9569_v33  ;;  %9582 = vtanh.f32 %v2542_v0  ;;  %v8295_v48 = vpop.f32.mrb[72].mxu1 }
 0x838   :  { %v9573_v1 = vpop.eup %9572  ;;  %v2569_v25 = vadd.f32 1.0, %v9571_v15  ;;  %v2515_v9 = vadd.f32 %v8295_v48, %v10563_v31  ;;  %v2506_v12 = vpop.f32.mrb[73].mxu1 }
 0x839   :  { %v9575_v41 = vpop.eup %9574  ;;  %v2572_v4 = vadd.f32 1.0, %v9573_v1  ;;  %v2507_v19 = vadd.f32 %v10563_v31, %v2506_v12  ;;  %v8296_v32 = vpop.f32.mrb[74].mxu1  ;;  %v2587_v54 = vmul.f32 %v2571_v21, %v2539_v62 }
 0x83a   :  { %v2570_v26 = vadd.f32 1.0, %v9575_v41  ;;  %v2547_v24 = vmul.f32 0.5, %v2515_v9  ;;  %v2518_v60 = vadd.f32 %v8296_v32, %v10563_v31  ;;  %v2509_v50 = vpop.f32.mrb[75].mxu1  ;;  %v2585_v18 = vmul.f32 %v2569_v25, %v2537_v57 }
 0x83b   :  { %v2588_v37 = vmul.f32 %v2572_v4, %v2540_v30  ;;  %v2545_v3 = vmul.f32 0.5, %v2507_v19  ;;  %v2510_v5 = vadd.f32 %v10563_v31, %v2509_v50 }
 0x83c   :  { %v2586_v6 = vmul.f32 %v2570_v26, %v2538_v20  ;;  %9584 = vtanh.f32 %v2547_v24  ;;  %v2548_v44 = vmul.f32 0.5, %v2518_v60 }
 0x83d   :  { %9586 = vtanh.f32 %v2545_v3  ;;  %v2546_v53 = vmul.f32 0.5, %v2510_v5  ;;  %v10577_v2 = vpack.c.bf16 %v2588_v37, %v2587_v54 }
 0x83e   :  { %v9577_v43 = vpop.eup %9576  ;;  %9588 = vtanh.f32 %v2548_v44  ;;  %v10579_v63 = vpack.c.bf16 %v2586_v6, %v2585_v18 }
 0x83f   :  { %v9579_v49 = vpop.eup %9578  ;;  %v2575_v10 = vadd.f32 1.0, %v9577_v43  ;;  %9590 = vtanh.f32 %v2546_v53  ;;  %v8299_v62 = vpop.f32.mrb[76].mxu1 }
 0x840   :  { %v9581_v47 = vpop.eup %9580  ;;  %v2573_v39 = vadd.f32 1.0, %v9579_v49  ;;  %v2531_v30 = vadd.f32 %v8299_v62, %v10563_v31  ;;  %v2522_v57 = vpop.f32.mrb[77].mxu1  ;;  %8301 = vmatprep.subr.bf16.mxu1 %v10579_v63 }
 0x841   :  { %v9583_v20 = vpop.eup %9582  ;;  %v2576_v22 = vadd.f32 1.0, %v9581_v47  ;;  %v2523_v23 = vadd.f32 %v10563_v31, %v2522_v57  ;;  %v8300_v27 = vpop.f32.mrb[78].mxu1  ;;  %8302 = vmatpush3.bf16.msra.mxu1 %v10579_v63  ;;  %v2591_v35 = vmul.f32 %v2575_v10, %v2543_v55 }
 0x842   :  { %v2574_v34 = vadd.f32 1.0, %v9583_v20  ;;  %v2551_v36 = vmul.f32 0.5, %v2531_v30  ;;  %v2534_v58 = vadd.f32 %v8300_v27, %v10563_v31  ;;  %v2525_v7 = vpop.f32.mrb[79].mxu1  ;;  %8303 = vmatprep.subr.bf16.mxu1 %v10577_v2  ;;  %v2589_v48 = vmul.f32 %v2573_v39, %v2541_v52  ;;  %v9304_v20 = vld [vmem:[#allocation11 + $0x240] sm:$0xff]   ;;  %v9890_v27 = vld [vmem:[#allocation7 + $0x10] sm:$0xff]  }
 0x843   :  { %v2592_v33 = vmul.f32 %v2576_v22, %v2544_v11  ;;  %v2549_v15 = vmul.f32 0.5, %v2523_v23  ;;  %v2526_v21 = vadd.f32 %v10563_v31, %v2525_v7  ;;  %v9305_v22 = vld [vmem:[#allocation11 + $0x248] sm:$0xff]   ;;  %v9892_v7 = vld [vmem:[#allocation7 + $0x20] sm:$0xff]  }
 0x844   :  { %v2590_v1 = vmul.f32 %v2574_v34, %v2542_v0  ;;  %9592 = vtanh.f32 %v2551_v36  ;;  %v2552_v25 = vmul.f32 0.5, %v2534_v58  ;;  %v9889_v23 = vld [vmem:[#allocation7 + $0x8] sm:$0xff]   ;;  %v9306_v34 = vld [vmem:[#allocation11 + $0x250] sm:$0xff]   ;;  %v9891_v58 = vld [vmem:[#allocation7 + $0x18] sm:$0xff]  }
 0x845   :  { %9594 = vtanh.f32 %v2549_v15  ;;  %v2550_v9 = vmul.f32 0.5, %v2526_v21  ;;  %8304 = vmatpush3.bf16.msra.mxu1 %v10577_v2  ;;  %v10589_v12 = vpack.c.bf16 %v2592_v33, %v2591_v35  ;;  %v9308_v35 = vld [vmem:[#allocation11 + $0x260] sm:$0xff]   ;;  %v9309_v33 = vld [vmem:[#allocation11 + $0x268] sm:$0xff]   ;;  %v9894_v21 = vld [vmem:[#allocation7 + $0x30] sm:$0xff]  }
 0x846   :  { %v9585_v41 = vpop.eup %9584  ;;  %9596 = vtanh.f32 %v2552_v25  ;;  %v10591_v4 = vpack.c.bf16 %v2590_v1, %v2589_v48  ;;  %v9895_v48 = vld [vmem:[#allocation7 + $0x38] sm:$0xff]   ;;  %v9310_v1 = vld [vmem:[#allocation11 + $0x270] sm:$0xff]  }
 0x847   :  { %v9587_v19 = vpop.eup %9586  ;;  %v2579_v55 = vadd.f32 1.0, %v9585_v41  ;;  %9598 = vtanh.f32 %v2550_v9  ;;  %v9313_v41 = vld [vmem:[#allocation11 + $0x288] sm:$0xff]  }
 0x848   :  { %v9589_v11 = vpop.eup %9588  ;;  %v2577_v32 = vadd.f32 1.0, %v9587_v19  ;;  %8305 = vmatprep.subr.bf16.mxu1 %v10591_v4 }
 0x849   :  { %v9591_v31 = vpop.eup %9590  ;;  %v2580_v52 = vadd.f32 1.0, %v9589_v11  ;;  %8306 = vmatpush3.bf16.msra.mxu1 %v10591_v4  ;;  %v2595_v26 = vmul.f32 %v2579_v55, %v2547_v24 }
 0x84a   :  { %v2578_v0 = vadd.f32 1.0, %v9591_v31  ;;  %8307 = vmatprep.subr.bf16.mxu1 %v10589_v12  ;;  %v2593_v50 = vmul.f32 %v2577_v32, %v2545_v3 }
 0x84b   :  { %v2596_v60 = vmul.f32 %v2580_v52, %v2548_v44 }
 0x84c   :  { %v2594_v54 = vmul.f32 %v2578_v0, %v2546_v53 }
 0x84d   :  { %8308 = vmatpush3.bf16.msra.mxu1 %v10589_v12  ;;  %v10597_v37 = vpack.c.bf16 %v2596_v60, %v2595_v26 }
 0x84e   :  { %v9593_v5 = vpop.eup %9592  ;;  %v10599_v18 = vpack.c.bf16 %v2594_v54, %v2593_v50 }
 0x84f   :  { %v9595_v6 = vpop.eup %9594  ;;  %v2583_v43 = vadd.f32 1.0, %v9593_v5 }
 0x850   :  { %v9597_v49 = vpop.eup %9596  ;;  %v2581_v10 = vadd.f32 1.0, %v9595_v6  ;;  %8309 = vmatprep.subr.bf16.mxu1 %v10599_v18 }
 0x851   :  { %v9599_v62 = vpop.eup %9598  ;;  %v2584_v47 = vadd.f32 1.0, %v9597_v49  ;;  %8310 = vmatpush3.bf16.msra.mxu1 %v10599_v18  ;;  %v2599_v3 = vmul.f32 %v2583_v43, %v2551_v36  ;;  %v9307_v36 = vld [vmem:[#allocation11 + $0x258] sm:$0xff]  }
 0x852   :  { %v2582_v24 = vadd.f32 1.0, %v9599_v62  ;;  %8311 = vmatprep.subr.bf16.mxu1 %v10597_v37  ;;  %v2597_v53 = vmul.f32 %v2581_v10, %v2549_v15  ;;  %v9893_v15 = vld [vmem:[#allocation7 + $0x28] sm:$0xff]  }
 0x853   :  { %v2600_v44 = vmul.f32 %v2584_v47, %v2552_v25  ;;  %v9311_v25 = vld [vmem:[#allocation11 + $0x278] sm:$0xff]  }
 0x854   :  { %v2598_v39 = vmul.f32 %v2582_v24, %v2550_v9  ;;  %v9312_v9 = vld [vmem:[#allocation11 + $0x280] sm:$0xff]  }
 0x855   :  { %8312 = vmatpush3.bf16.msra.mxu1 %v10597_v37  ;;  %v10605_v30 = vpack.c.bf16 %v2600_v44, %v2599_v3  ;;  %8365 = vmatprep.subr.bf16.mxu0 %v9312_v9 }
 0x856   :  { %v10607_v57 = vpack.c.bf16 %v2598_v39, %v2597_v53  ;;  %8366 = vmatpush3.bf16.msra.mxu0 %v9312_v9 }
 0x857   :  { %8367 = vmatprep.subr.bf16.mxu0 %v9313_v41 }
 0x858   :  { %8313 = vmatprep.subr.bf16.mxu1 %v10607_v57 }
 0x859   :  { %8314 = vmatpush3.bf16.msra.mxu1 %v10607_v57 }
 0x85a   :  { %8315 = vmatprep.subr.bf16.mxu1 %v10605_v30  ;;  %8368 = vmatpush3.bf16.msra.mxu0 %v9313_v41 }
 0x85d   :  { %8316 = vmatpush3.bf16.msra.mxu1 %v10605_v30 }
 0x85e   :  { %8333 = vmatprep.subr.bf16.mxu1 %v9304_v20 }
 0x860   :  { %8318 = vmatmul.mubr.bf16.vlgmr.msra.gmra.mrb[80].mxu1 %v9889_v23 }
 0x861   :  { %8321 = vmatprep.mubr.bf16.mxu1 %v9890_v27  ;;  %8334 = vmatpush3.bf16.msra.mxu1 %v9304_v20 }
 0x862   :  { %8335 = vmatprep.subr.bf16.mxu1 %v9305_v22 }
 0x865   :  { %8336 = vmatpush3.bf16.msra.mxu1 %v9305_v22 }
 0x866   :  { %8337 = vmatprep.subr.bf16.mxu1 %v9306_v34 }
 0x868   :  { %8322 = vmatmul.mubr.bf16.gmra.mrb[84].mxu1 %v9891_v58  ;;  %v9318_v58 = vld [vmem:[#allocation11 + $0x2b0] sm:$0xff]  }
 0x869   :  { %8325 = vmatprep.mubr.bf16.mxu1 %v9892_v7  ;;  %8338 = vmatpush3.bf16.msra.mxu1 %v9306_v34  ;;  %v9319_v7 = vld [vmem:[#allocation11 + $0x2b8] sm:$0xff]  }
 0x86a   :  { %8339 = vmatprep.subr.bf16.mxu1 %v9307_v36 }
 0x86d   :  { %8340 = vmatpush3.bf16.msra.mxu1 %v9307_v36  ;;  %v9314_v36 = vld [vmem:[#allocation11 + $0x290] sm:$0xff]  }
 0x86e   :  { %8341 = vmatprep.subr.bf16.mxu1 %v9308_v35  ;;  %8369 = vmatprep.subr.bf16.mxu0 %v9314_v36 }
 0x86f   :  { %8370 = vmatpush3.bf16.msra.mxu0 %v9314_v36 }
 0x870   :  { %8326 = vmatmul.mubr.bf16.gmra.mrb[88].mxu1 %v9893_v15 }
 0x871   :  { %8329 = vmatprep.mubr.bf16.mxu1 %v9894_v21  ;;  %8342 = vmatpush3.bf16.msra.mxu1 %v9308_v35  ;;  %v10680_v35 = vld [vmem:[%s11315_s6 + $0x7] ss:$0 sm:$0xff] }
 0x872   :  { %8343 = vmatprep.subr.bf16.mxu1 %v9309_v33 }
 0x875   :  { %8344 = vmatpush3.bf16.msra.mxu1 %v9309_v33 }
 0x876   :  { %8345 = vmatprep.subr.bf16.mxu1 %v9310_v1 }
 0x878   :  { %8330 = vmatmul.mubr.bf16.gmra.mrb[92].mxu1 %v9895_v48 }
 0x879   :  { %8346 = vmatpush3.bf16.msra.mxu1 %v9310_v1 }
 0x87a   :  { %8347 = vmatprep.subr.bf16.mxu1 %v9311_v25 }
 0x87d   :  { %8348 = vmatpush3.bf16.msra.mxu1 %v9311_v25 }
 0x933   :  { %v8319_v19 = vpop.f32.mrb[80].mxu1 }
 0x934   :  { %v2643_v55 = vpop.f32.mrb[81].mxu1  ;;  %v10623_v26 = vadd.f32 %v8319_v19, %v10435_v46 }
 0x935   :  { %v8320_v11 = vpop.f32.mrb[82].mxu1  ;;  %v10617_v52 = vadd.f32 %v2643_v55, %v10426_v38 }
 0x936   :  { %v10614_v32 = vadd.f32 %v8320_v11, %v10429_v40  ;;  %v2646_v31 = vpop.f32.mrb[83].mxu1 }
 0x937   :  { %v10620_v0 = vadd.f32 %v2646_v31, %v10432_v45 }
 0x938   :  { %v2723_v50 = vpack.c.bf16 %v10614_v32, %v10623_v26 }
 0x939   :  { %v2722_v60 = vpack.c.bf16 %v10620_v0, %v10617_v52 }
 0x93b   :  { %v8323_v54 = vpop.f32.mrb[84].mxu1  ;;  %8349 = vmatprep.mubr.bf16.mxu1 %v2722_v60 }
 0x93c   :  { %v2659_v40 = vpop.f32.mrb[85].mxu1  ;;  %8350 = vmatmul.mubr.bf16.vlgmr.msra.gmra.mrb[96].mxu1 %v2723_v50  ;;  %v10639_v43 = vadd.f32 %v8323_v54, %v10455_v42 }
 0x93d   :  { %v8324_v5 = vpop.f32.mrb[86].mxu1  ;;  %v10633_v45 = vadd.f32 %v2659_v40, %v10446_v8 }
 0x93e   :  { %v10630_v38 = vadd.f32 %v8324_v5, %v10449_v59  ;;  %v2662_v6 = vpop.f32.mrb[87].mxu1 }
 0x93f   :  { %v10636_v46 = vadd.f32 %v2662_v6, %v10452_v61 }
 0x940   :  { %v2725_v10 = vpack.c.bf16 %v10630_v38, %v10639_v43 }
 0x941   :  { %v2724_v49 = vpack.c.bf16 %v10636_v46, %v10633_v45 }
 0x943   :  { %v8327_v62 = vpop.f32.mrb[88].mxu1  ;;  %8353 = vmatprep.mubr.bf16.mxu1 %v2724_v49 }
 0x944   :  { %v2675_v59 = vpop.f32.mrb[89].mxu1  ;;  %8354 = vmatmul.mubr.bf16.gmra.mrb[100].mxu1 %v2725_v10  ;;  %v10655_v3 = vadd.f32 %v8327_v62, %v10475_v16 }
 0x945   :  { %v8328_v47 = vpop.f32.mrb[90].mxu1  ;;  %v10649_v61 = vadd.f32 %v2675_v59, %v10466_v51 }
 0x946   :  { %v10646_v8 = vadd.f32 %v8328_v47, %v10469_v13  ;;  %v2678_v24 = vpop.f32.mrb[91].mxu1 }
 0x947   :  { %v10652_v42 = vadd.f32 %v2678_v24, %v10472_v14 }
 0x948   :  { %v2727_v53 = vpack.c.bf16 %v10646_v8, %v10655_v3 }
 0x949   :  { %v2726_v44 = vpack.c.bf16 %v10652_v42, %v10649_v61 }
 0x94b   :  { %v8331_v39 = vpop.f32.mrb[92].mxu1  ;;  %8357 = vmatprep.mubr.bf16.mxu1 %v2726_v44 }
 0x94c   :  { %v2691_v13 = vpop.f32.mrb[93].mxu1  ;;  %8358 = vmatmul.mubr.bf16.gmra.mrb[104].mxu1 %v2727_v53  ;;  %v10671_v23 = vadd.f32 %v8331_v39, %v10495_v17  ;;  %v9317_v17 = vld [vmem:[#allocation11 + $0x2a8] sm:$0xff]  }
 0x94d   :  { %v8332_v20 = vpop.f32.mrb[94].mxu1  ;;  %v10665_v14 = vadd.f32 %v2691_v13, %v10486_v56  ;;  %v9315_v56 = vld [vmem:[#allocation11 + $0x298] sm:$0xff]  }
 0x94e   :  { %v10662_v51 = vadd.f32 %v8332_v20, %v10489_v28  ;;  %v2694_v22 = vpop.f32.mrb[95].mxu1  ;;  %v9896_v28 = vld [vmem:[#allocation2] sm:$0xff]   ;;  %8371 = vmatprep.subr.bf16.mxu0 %v9315_v56 }
 0x94f   :  { %v10668_v16 = vadd.f32 %v2694_v22, %v10492_v29  ;;  %8372 = vmatpush3.bf16.msra.mxu0 %v9315_v56  ;;  %v9316_v29 = vld [vmem:[#allocation11 + $0x2a0] sm:$0xff]  }
 0x950   :  { %v2729_v34 = vpack.c.bf16 %v10662_v51, %v10671_v23  ;;  %8373 = vmatprep.subr.bf16.mxu0 %v9316_v29 }
 0x951   :  { %v2728_v27 = vpack.c.bf16 %v10668_v16, %v10665_v14 }
 0x953   :  { %8361 = vmatprep.mubr.bf16.mxu1 %v2728_v27  ;;  %8374 = vmatpush3.bf16.msra.mxu0 %v9316_v29 }
 0x954   :  { %8362 = vmatmul.mubr.bf16.gmra.mrb[108].mxu1 %v2729_v34  ;;  %8375 = vmatprep.subr.bf16.mxu0 %v9317_v17 }
 0x955   :  { %8413 = vmatprep.mubr.bf16.mxu1 %v9896_v28 }
 0x957   :  { %8376 = vmatpush3.bf16.msra.mxu0 %v9317_v17 }
 0x958   :  { %8377 = vmatprep.subr.bf16.mxu0 %v9318_v58 }
 0x95b   :  { %8378 = vmatpush3.bf16.msra.mxu0 %v9318_v58 }
 0x95c   :  { %8379 = vmatprep.subr.bf16.mxu0 %v9319_v7 }
 0x95f   :  { %8380 = vmatpush3.bf16.msra.mxu0 %v9319_v7 }
 0xa0f   :  { %v8351_v33 = vpop.f32.mrb[96].mxu1 }
 0xa10   :  { %v2846_v15 = vadd.f32 %v8351_v33, %v10680_v35  ;;  %v2837_v21 = vpop.f32.mrb[97].mxu1 }
 0xa11   :  { %v2838_v48 = vadd.f32 %v10680_v35, %v2837_v21  ;;  %v8352_v1 = vpop.f32.mrb[98].mxu1 }
 0xa12   :  { %v2902_v25 = vmul.f32 0.5, %v2846_v15  ;;  %v2849_v9 = vadd.f32 %v8352_v1, %v10680_v35  ;;  %v2840_v41 = vpop.f32.mrb[99].mxu1 }
 0xa13   :  { %v2900_v19 = vmul.f32 0.5, %v2838_v48  ;;  %v2841_v55 = vadd.f32 %v10680_v35, %v2840_v41 }
 0xa14   :  { %9600 = vtanh.f32 %v2902_v25  ;;  %v2903_v11 = vmul.f32 0.5, %v2849_v9 }
 0xa15   :  { %9602 = vtanh.f32 %v2900_v19  ;;  %v2901_v31 = vmul.f32 0.5, %v2841_v55 }
 0xa16   :  { %9604 = vtanh.f32 %v2903_v11 }
 0xa17   :  { %9606 = vtanh.f32 %v2901_v31  ;;  %v8355_v60 = vpop.f32.mrb[100].mxu1 }
 0xa18   :  { %v2862_v50 = vadd.f32 %v8355_v60, %v10680_v35  ;;  %v2853_v54 = vpop.f32.mrb[101].mxu1 }
 0xa19   :  { %v2854_v40 = vadd.f32 %v10680_v35, %v2853_v54  ;;  %v8356_v5 = vpop.f32.mrb[102].mxu1 }
 0xa1a   :  { %v2906_v6 = vmul.f32 0.5, %v2862_v50  ;;  %v2865_v49 = vadd.f32 %v8356_v5, %v10680_v35  ;;  %v2856_v10 = vpop.f32.mrb[103].mxu1 }
 0xa1b   :  { %v2904_v62 = vmul.f32 0.5, %v2854_v40  ;;  %v2857_v59 = vadd.f32 %v10680_v35, %v2856_v10 }
 0xa1c   :  { %9608 = vtanh.f32 %v2906_v6  ;;  %v2907_v47 = vmul.f32 0.5, %v2865_v49 }
 0xa1d   :  { %9610 = vtanh.f32 %v2904_v62  ;;  %v2905_v24 = vmul.f32 0.5, %v2857_v59 }
 0xa1e   :  { %v9601_v44 = vpop.eup %9600  ;;  %9612 = vtanh.f32 %v2907_v47 }
 0xa1f   :  { %v9603_v53 = vpop.eup %9602  ;;  %v2934_v39 = vadd.f32 1.0, %v9601_v44  ;;  %9614 = vtanh.f32 %v2905_v24  ;;  %v8359_v13 = vpop.f32.mrb[104].mxu1 }
 0xa20   :  { %v9605_v20 = vpop.eup %9604  ;;  %v2932_v22 = vadd.f32 1.0, %v9603_v53  ;;  %v2878_v27 = vadd.f32 %v8359_v13, %v10680_v35  ;;  %v2869_v34 = vpop.f32.mrb[105].mxu1 }
 0xa21   :  { %v9607_v28 = vpop.eup %9606  ;;  %v2935_v36 = vadd.f32 1.0, %v9605_v20  ;;  %v2870_v56 = vadd.f32 %v10680_v35, %v2869_v34  ;;  %v8360_v29 = vpop.f32.mrb[106].mxu1  ;;  %v2950_v15 = vmul.f32 %v2934_v39, %v2902_v25 }
 0xa22   :  { %v2933_v17 = vadd.f32 1.0, %v9607_v28  ;;  %v2910_v58 = vmul.f32 0.5, %v2878_v27  ;;  %v2881_v7 = vadd.f32 %v8360_v29, %v10680_v35  ;;  %v2872_v33 = vpop.f32.mrb[107].mxu1  ;;  %v2948_v9 = vmul.f32 %v2932_v22, %v2900_v19 }
 0xa23   :  { %v2951_v21 = vmul.f32 %v2935_v36, %v2903_v11  ;;  %v2908_v48 = vmul.f32 0.5, %v2870_v56  ;;  %v2873_v1 = vadd.f32 %v10680_v35, %v2872_v33 }
 0xa24   :  { %v2949_v41 = vmul.f32 %v2933_v17, %v2901_v31  ;;  %9616 = vtanh.f32 %v2910_v58  ;;  %v2911_v55 = vmul.f32 0.5, %v2881_v7 }
 0xa25   :  { %v2965_v60 = vpack.c.bf16 %v2951_v21, %v2950_v15  ;;  %9618 = vtanh.f32 %v2908_v48  ;;  %v2909_v50 = vmul.f32 0.5, %v2873_v1 }
 0xa26   :  { %v9609_v54 = vpop.eup %9608  ;;  %9620 = vtanh.f32 %v2911_v55  ;;  %v2964_v40 = vpack.c.bf16 %v2949_v41, %v2948_v9 }
 0xa27   :  { %v9611_v5 = vpop.eup %9610  ;;  %v2938_v49 = vadd.f32 1.0, %v9609_v54  ;;  %9622 = vtanh.f32 %v2909_v50  ;;  %v8363_v10 = vpop.f32.mrb[108].mxu1 }
 0xa28   :  { %v9613_v59 = vpop.eup %9612  ;;  %v2936_v25 = vadd.f32 1.0, %v9611_v5  ;;  %v2894_v11 = vadd.f32 %v8363_v10, %v10680_v35  ;;  %v2885_v44 = vpop.f32.mrb[109].mxu1  ;;  %8381 = vmatprep.mubr.bf16.mxu0 %v2964_v40 }
 0xa29   :  { %v9615_v19 = vpop.eup %9614  ;;  %v2939_v31 = vadd.f32 1.0, %v9613_v59  ;;  %v2886_v53 = vadd.f32 %v10680_v35, %v2885_v44  ;;  %v8364_v39 = vpop.f32.mrb[110].mxu1  ;;  %8382 = vmatmul.mubr.bf16.vlgmr.msra.gmra.mrb[64].mxu0 %v2965_v60  ;;  %v2954_v34 = vmul.f32 %v2938_v49, %v2906_v6 }
 0xa2a   :  { %v2937_v13 = vadd.f32 1.0, %v9615_v19  ;;  %v2914_v20 = vmul.f32 0.5, %v2894_v11  ;;  %v2897_v22 = vadd.f32 %v8364_v39, %v10680_v35  ;;  %v2888_v27 = vpop.f32.mrb[111].mxu1  ;;  %v2952_v29 = vmul.f32 %v2936_v25, %v2904_v62 }
 0xa2b   :  { %v2955_v28 = vmul.f32 %v2939_v31, %v2907_v47  ;;  %v2912_v36 = vmul.f32 0.5, %v2886_v53  ;;  %v2889_v56 = vadd.f32 %v10680_v35, %v2888_v27 }
 0xa2c   :  { %v2953_v17 = vmul.f32 %v2937_v13, %v2905_v24  ;;  %9624 = vtanh.f32 %v2914_v20  ;;  %v2915_v7 = vmul.f32 0.5, %v2897_v22 }
 0xa2d   :  { %9626 = vtanh.f32 %v2912_v36  ;;  %v2913_v33 = vmul.f32 0.5, %v2889_v56  ;;  %v2967_v15 = vpack.c.bf16 %v2955_v28, %v2954_v34 }
 0xa2e   :  { %v9617_v21 = vpop.eup %9616  ;;  %9628 = vtanh.f32 %v2915_v7  ;;  %v2966_v1 = vpack.c.bf16 %v2953_v17, %v2952_v29 }
 0xa2f   :  { %v9619_v9 = vpop.eup %9618  ;;  %v2942_v41 = vadd.f32 1.0, %v9617_v21  ;;  %9630 = vtanh.f32 %v2913_v33 }
 0xa30   :  { %v9621_v60 = vpop.eup %9620  ;;  %v2940_v54 = vadd.f32 1.0, %v9619_v9  ;;  %8385 = vmatprep.mubr.bf16.mxu0 %v2966_v1 }
 0xa31   :  { %v9623_v6 = vpop.eup %9622  ;;  %v2943_v47 = vadd.f32 1.0, %v9621_v60  ;;  %8386 = vmatmul.mubr.bf16.gmra.mrb[68].mxu0 %v2967_v15  ;;  %v2958_v62 = vmul.f32 %v2942_v41, %v2910_v58 }
 0xa32   :  { %v2941_v35 = vadd.f32 1.0, %v9623_v6  ;;  %v2956_v40 = vmul.f32 %v2940_v54, %v2908_v48  ;;  %v9897_v48 = vld [vmem:[#allocation5] sm:$0xff]  }
 0xa33   :  { %v2959_v24 = vmul.f32 %v2943_v47, %v2911_v55 }
 0xa34   :  { %v2957_v5 = vmul.f32 %v2941_v35, %v2909_v50  ;;  %v10701_v50 = vld [vmem:[%s11315_s6 + $0x8] ss:$0 sm:$0xff] }
 0xa35   :  { %v2969_v49 = vpack.c.bf16 %v2959_v24, %v2958_v62 }
 0xa36   :  { %v9625_v10 = vpop.eup %9624  ;;  %v2968_v59 = vpack.c.bf16 %v2957_v5, %v2956_v40 }
 0xa37   :  { %v9627_v25 = vpop.eup %9626  ;;  %v2946_v11 = vadd.f32 1.0, %v9625_v10 }
 0xa38   :  { %v9629_v44 = vpop.eup %9628  ;;  %v2944_v19 = vadd.f32 1.0, %v9627_v25  ;;  %8389 = vmatprep.mubr.bf16.mxu0 %v2968_v59 }
 0xa39   :  { %v9631_v31 = vpop.eup %9630  ;;  %v2947_v53 = vadd.f32 1.0, %v9629_v44  ;;  %8390 = vmatmul.mubr.bf16.gmra.mrb[72].mxu0 %v2969_v49  ;;  %v2962_v13 = vmul.f32 %v2946_v11, %v2914_v20 }
 0xa3a   :  { %v2945_v39 = vadd.f32 1.0, %v9631_v31  ;;  %v2960_v27 = vmul.f32 %v2944_v19, %v2912_v36 }
 0xa3b   :  { %v2963_v22 = vmul.f32 %v2947_v53, %v2915_v7 }
 0xa3c   :  { %v2961_v34 = vmul.f32 %v2945_v39, %v2913_v33 }
 0xa3d   :  { %v2971_v58 = vpack.c.bf16 %v2963_v22, %v2962_v13 }
 0xa3e   :  { %v2970_v55 = vpack.c.bf16 %v2961_v34, %v2960_v27 }
 0xa40   :  { %8393 = vmatprep.mubr.bf16.mxu0 %v2970_v55 }
 0xa41   :  { %8394 = vmatmul.mubr.bf16.gmra.mrb[76].mxu0 %v2971_v58 }
 0xa42   :  { %8445 = vmatprep.mubr.bf16.mxu0 %v9897_v48 }
 0xafc   :  { %v8383_v28 = vpop.f32.mrb[64].mxu0 }
 0xafd   :  { %v3079_v56 = vpop.f32.mrb[65].mxu0  ;;  %v3088_v7 = vadd.f32 %v8383_v28, %v10701_v50 }
 0xafe   :  { %v3080_v29 = vadd.f32 %v10701_v50, %v3079_v56  ;;  %v8384_v17 = vpop.f32.mrb[66].mxu0 }
 0xaff   :  { %v3091_v20 = vadd.f32 %v8384_v17, %v10701_v50  ;;  %v3082_v36 = vpop.f32.mrb[67].mxu0  ;;  %v10717_v9 = vadd.f32 %v3088_v7, %v10623_v26  ;;  %v9322_v7 = vld [vmem:[#allocation11 + $0x310] sm:$0xff]  }
 0xb00   :  { %v3083_v33 = vadd.f32 %v10701_v50, %v3082_v36  ;;  %v10708_v15 = vadd.f32 %v3080_v29, %v10617_v52  ;;  %v9901_v36 = vld [vmem:[#allocation2 + $0x10] sm:$0xff]  }
 0xb01   :  { %v10711_v21 = vadd.f32 %v3091_v20, %v10614_v32  ;;  %v9900_v20 = vld [vmem:[#allocation5 + $0x10] sm:$0xff]  }
 0xb02   :  { %v10714_v1 = vadd.f32 %v3083_v33, %v10620_v0  ;;  %v9323_v33 = vld [vmem:[#allocation11 + $0x318] sm:$0xff]  }
 0xb03   :  { %v3159_v6 = vpack.c.bf16 %v10711_v21, %v10717_v9 }
 0xb04   :  { %v3158_v41 = vpack.c.bf16 %v10714_v1, %v10708_v15  ;;  %v8387_v60 = vpop.f32.mrb[68].mxu0 }
 0xb05   :  { %v3095_v54 = vpop.f32.mrb[69].mxu0  ;;  %v3104_v26 = vadd.f32 %v8387_v60, %v10701_v50  ;;  %v9903_v60 = vld [vmem:[#allocation2 + $0x18] sm:$0xff]  }
 0xb06   :  { %v3096_v52 = vadd.f32 %v10701_v50, %v3095_v54  ;;  %v8388_v47 = vpop.f32.mrb[70].mxu0  ;;  %8397 = vmatprep.subr.bf16.mxu1 %v3158_v41  ;;  %8429 = vmatprep.subr.bf16.mxu0 %v3158_v41  ;;  %v9904_v54 = vld [vmem:[#allocation5 + $0x20] sm:$0xff]  }
 0xb07   :  { %v3107_v32 = vadd.f32 %v8388_v47, %v10701_v50  ;;  %v3098_v0 = vpop.f32.mrb[71].mxu0  ;;  %8398 = vmatpush3.bf16.msra.mxu1 %v3158_v41  ;;  %8430 = vmatpush3.bf16.msra.mxu0 %v3158_v41  ;;  %v10737_v5 = vadd.f32 %v3104_v26, %v10639_v43  ;;  %v9902_v41 = vld [vmem:[#allocation5 + $0x18] sm:$0xff]   ;;  %v9325_v47 = vld [vmem:[#allocation11 + $0x328] sm:$0xff]   ;;  %v9908_v26 = vld [vmem:[#allocation5 + $0x30] sm:$0xff]  }
 0xb08   :  { %v3099_v35 = vadd.f32 %v10701_v50, %v3098_v0  ;;  %8399 = vmatprep.subr.bf16.mxu1 %v3159_v6  ;;  %8431 = vmatprep.subr.bf16.mxu0 %v3159_v6  ;;  %v10728_v62 = vadd.f32 %v3096_v52, %v10633_v45  ;;  %v9324_v52 = vld [vmem:[#allocation11 + $0x320] sm:$0xff]   ;;  %v9907_v0 = vld [vmem:[#allocation2 + $0x28] sm:$0xff]  }
 0xb09   :  { %v10731_v24 = vadd.f32 %v3107_v32, %v10630_v38  ;;  %v9906_v32 = vld [vmem:[#allocation5 + $0x28] sm:$0xff]  }
 0xb0a   :  { %v10734_v40 = vadd.f32 %v3099_v35, %v10636_v46  ;;  %v9909_v35 = vld [vmem:[#allocation2 + $0x30] sm:$0xff]  }
 0xb0b   :  { %8400 = vmatpush3.bf16.msra.mxu1 %v3159_v6  ;;  %8432 = vmatpush3.bf16.msra.mxu0 %v3159_v6  ;;  %v3161_v45 = vpack.c.bf16 %v10731_v24, %v10737_v5  ;;  %v9905_v6 = vld [vmem:[#allocation2 + $0x20] sm:$0xff]  }
 0xb0c   :  { %v3160_v49 = vpack.c.bf16 %v10734_v40, %v10728_v62  ;;  %v8391_v10 = vpop.f32.mrb[72].mxu0 }
 0xb0d   :  { %v3111_v59 = vpop.f32.mrb[73].mxu0  ;;  %v3120_v43 = vadd.f32 %v8391_v10, %v10701_v50  ;;  %v9910_v10 = vld [vmem:[#allocation5 + $0x38] sm:$0xff]  }
 0xb0e   :  { %v3112_v25 = vadd.f32 %v10701_v50, %v3111_v59  ;;  %v8392_v38 = vpop.f32.mrb[74].mxu0  ;;  %8401 = vmatprep.subr.bf16.mxu1 %v3160_v49  ;;  %8433 = vmatprep.subr.bf16.mxu0 %v3160_v49  ;;  %v9911_v59 = vld [vmem:[#allocation2 + $0x38] sm:$0xff]  }
 0xb0f   :  { %v3123_v46 = vadd.f32 %v8392_v38, %v10701_v50  ;;  %v3114_v11 = vpop.f32.mrb[75].mxu0  ;;  %8402 = vmatpush3.bf16.msra.mxu1 %v3160_v49  ;;  %8434 = vmatpush3.bf16.msra.mxu0 %v3160_v49  ;;  %v10757_v39 = vadd.f32 %v3120_v43, %v10655_v3  ;;  %v9326_v49 = vld [vmem:[#allocation11 + $0x330] sm:$0xff]   ;;  %v9344_v38 = vld [vmem:[#allocation11 + $0x380] sm:$0xff]  }
 0xb10   :  { %v3115_v44 = vadd.f32 %v10701_v50, %v3114_v11  ;;  %8403 = vmatprep.subr.bf16.mxu1 %v3161_v45  ;;  %8435 = vmatprep.subr.bf16.mxu0 %v3161_v45  ;;  %v10748_v19 = vadd.f32 %v3112_v25, %v10649_v61  ;;  %v9328_v25 = vld [vmem:[#allocation11 + $0x2c0] sm:$0xff]  }
 0xb11   :  { %v10751_v31 = vadd.f32 %v3123_v46, %v10646_v8  ;;  %v9345_v46 = vld [vmem:[#allocation11 + $0x388] sm:$0xff]  }
 0xb12   :  { %v10754_v53 = vadd.f32 %v3115_v44, %v10652_v42 }
 0xb13   :  { %8404 = vmatpush3.bf16.msra.mxu1 %v3161_v45  ;;  %8436 = vmatpush3.bf16.msra.mxu0 %v3161_v45  ;;  %v3163_v61 = vpack.c.bf16 %v10751_v31, %v10757_v39  ;;  %v9327_v45 = vld [vmem:[#allocation11 + $0x338] sm:$0xff]  }
 0xb14   :  { %v3162_v13 = vpack.c.bf16 %v10754_v53, %v10748_v19  ;;  %v8395_v22 = vpop.f32.mrb[76].mxu0 }
 0xb15   :  { %v3127_v27 = vpop.f32.mrb[77].mxu0  ;;  %v3136_v3 = vadd.f32 %v8395_v22, %v10701_v50 }
 0xb16   :  { %v3128_v34 = vadd.f32 %v10701_v50, %v3127_v27  ;;  %v8396_v8 = vpop.f32.mrb[78].mxu0  ;;  %8405 = vmatprep.subr.bf16.mxu1 %v3162_v13  ;;  %8437 = vmatprep.subr.bf16.mxu0 %v3162_v13 }
 0xb17   :  { %v3139_v42 = vadd.f32 %v8396_v8, %v10701_v50  ;;  %v3130_v58 = vpop.f32.mrb[79].mxu0  ;;  %8406 = vmatpush3.bf16.msra.mxu1 %v3162_v13  ;;  %8438 = vmatpush3.bf16.msra.mxu0 %v3162_v13  ;;  %v10777_v29 = vadd.f32 %v3136_v3, %v10671_v23  ;;  %v9899_v23 = vld [vmem:[#allocation2 + $0x8] sm:$0xff]  }
 0xb18   :  { %v3131_v55 = vadd.f32 %v10701_v50, %v3130_v58  ;;  %8407 = vmatprep.subr.bf16.mxu1 %v3163_v61  ;;  %8439 = vmatprep.subr.bf16.mxu0 %v3163_v61  ;;  %v10768_v48 = vadd.f32 %v3128_v34, %v10665_v14  ;;  %v9321_v14 = vld [vmem:[#allocation11 + $0x308] sm:$0xff]  }
 0xb19   :  { %v10771_v28 = vadd.f32 %v3139_v42, %v10662_v51  ;;  %v9320_v51 = vld [vmem:[#allocation11 + $0x300] sm:$0xff]  }
 0xb1a   :  { %v10774_v56 = vadd.f32 %v3131_v55, %v10668_v16  ;;  %v9898_v16 = vld [vmem:[#allocation5 + $0x8] sm:$0xff]  }
 0xb1b   :  { %8408 = vmatpush3.bf16.msra.mxu1 %v3163_v61  ;;  %8440 = vmatpush3.bf16.msra.mxu0 %v3163_v61  ;;  %v3165_v50 = vpack.c.bf16 %v10771_v28, %v10777_v29  ;;  %v9329_v55 = vld [vmem:[#allocation11 + $0x2c8] sm:$0xff]  }
 0xb1c   :  { %v3164_v17 = vpack.c.bf16 %v10774_v56, %v10768_v48 }
 0xb1e   :  { %8409 = vmatprep.subr.bf16.mxu1 %v3164_v17  ;;  %8441 = vmatprep.subr.bf16.mxu0 %v3164_v17 }
 0xb1f   :  { %8410 = vmatpush3.bf16.msra.mxu1 %v3164_v17  ;;  %8442 = vmatpush3.bf16.msra.mxu0 %v3164_v17 }
 0xb20   :  { %8411 = vmatprep.subr.bf16.mxu1 %v3165_v50  ;;  %8443 = vmatprep.subr.bf16.mxu0 %v3165_v50 }
 0xb23   :  { %8412 = vmatpush3.bf16.msra.mxu1 %v3165_v50  ;;  %8444 = vmatpush3.bf16.msra.mxu0 %v3165_v50 }
 0xb24   :  { %8461 = vmatprep.subr.bf16.mxu1 %v9320_v51  ;;  %8557 = vmatprep.subr.bf16.mxu0 %v9344_v38 }
 0xb26   :  { %8446 = vmatmul.mubr.bf16.vlgmr.msra.gmra.mrb[80].mxu0 %v9898_v16  ;;  %8414 = vmatmul.mubr.bf16.vlgmr.msra.gmra.mrb[112].mxu1 %v9899_v23 }
 0xb27   :  { %8449 = vmatprep.mubr.bf16.mxu0 %v9900_v20  ;;  %8417 = vmatprep.mubr.bf16.mxu1 %v9901_v36 }
 0xb28   :  { %8462 = vmatpush3.bf16.msra.mxu1 %v9320_v51  ;;  %8558 = vmatpush3.bf16.msra.mxu0 %v9344_v38 }
 0xb29   :  { %8463 = vmatprep.subr.bf16.mxu1 %v9321_v14  ;;  %8559 = vmatprep.subr.bf16.mxu0 %v9345_v46 }
 0xb2c   :  { %8464 = vmatpush3.bf16.msra.mxu1 %v9321_v14  ;;  %8560 = vmatpush3.bf16.msra.mxu0 %v9345_v46  ;;  %v9330_v14 = vld [vmem:[#allocation11 + $0x2d0] sm:$0xff]  }
 0xb2d   :  { %8465 = vmatprep.subr.bf16.mxu1 %v9322_v7 }
 0xb2e   :  { %8450 = vmatmul.mubr.bf16.gmra.mrb[84].mxu0 %v9902_v41  ;;  %8418 = vmatmul.mubr.bf16.gmra.mrb[116].mxu1 %v9903_v60 }
 0xb2f   :  { %8453 = vmatprep.mubr.bf16.mxu0 %v9904_v54  ;;  %8421 = vmatprep.mubr.bf16.mxu1 %v9905_v6  ;;  %v9331_v6 = vld [vmem:[#allocation11 + $0x2d8] sm:$0xff]  }
 0xb30   :  { %8466 = vmatpush3.bf16.msra.mxu1 %v9322_v7 }
 0xb31   :  { %8467 = vmatprep.subr.bf16.mxu1 %v9323_v33 }
 0xb34   :  { %8468 = vmatpush3.bf16.msra.mxu1 %v9323_v33 }
 0xb35   :  { %8469 = vmatprep.subr.bf16.mxu1 %v9324_v52 }
 0xb36   :  { %8454 = vmatmul.mubr.bf16.gmra.mrb[88].mxu0 %v9906_v32  ;;  %8422 = vmatmul.mubr.bf16.gmra.mrb[120].mxu1 %v9907_v0  ;;  %v9332_v0 = vld [vmem:[#allocation11 + $0x2e0] sm:$0xff]  }
 0xb37   :  { %8457 = vmatprep.mubr.bf16.mxu0 %v9908_v26  ;;  %8425 = vmatprep.mubr.bf16.mxu1 %v9909_v35 }
 0xb38   :  { %8470 = vmatpush3.bf16.msra.mxu1 %v9324_v52 }
 0xb39   :  { %8471 = vmatprep.subr.bf16.mxu1 %v9325_v47 }
 0xb3c   :  { %8472 = vmatpush3.bf16.msra.mxu1 %v9325_v47 }
 0xb3d   :  { %8473 = vmatprep.subr.bf16.mxu1 %v9326_v49 }
 0xb3e   :  { %8458 = vmatmul.mubr.bf16.gmra.mrb[92].mxu0 %v9910_v10  ;;  %8426 = vmatmul.mubr.bf16.gmra.mrb[124].mxu1 %v9911_v59 }
 0xb40   :  { %8474 = vmatpush3.bf16.msra.mxu1 %v9326_v49 }
 0xb41   :  { %8475 = vmatprep.subr.bf16.mxu1 %v9327_v45 }
 0xb44   :  { %8476 = vmatpush3.bf16.msra.mxu1 %v9327_v45 }
 0xb45   :  { %8493 = vmatprep.subr.bf16.mxu1 %v9328_v25 }
 0xbf9   :  { %v8447_v11 = vpop.f32.mrb[80].mxu0  ;;  %v10783_v43 = vpop.f32.mrb[112].mxu1 }
 0xbfa   :  { %v3305_v44 = vpop.f32.mrb[81].mxu0  ;;  %v10785_v13 = vpop.f32.mrb[113].mxu1 }
 0xbfb   :  { %v8448_v22 = vpop.f32.mrb[82].mxu0  ;;  %v10787_v27 = vpop.f32.mrb[114].mxu1 }
 0xbfc   :  { %v3369_v61 = vpack.c.bf16 %v8448_v22, %v8447_v11  ;;  %v3308_v34 = vpop.f32.mrb[83].mxu0  ;;  %v3264_v8 = vpack.c.bf16 %v10787_v27, %v10783_v43  ;;  %v10791_v42 = vpop.f32.mrb[115].mxu1  ;;  %v9333_v11 = vld [vmem:[#allocation11 + $0x2e8] sm:$0xff]   ;;  %v9342_v43 = vld [vmem:[#allocation11 + $0x370] sm:$0xff]   ;;  %v9343_v27 = vld [vmem:[#allocation11 + $0x378] sm:$0xff]  }
 0xbfd   :  { %v3368_v58 = vpack.c.bf16 %v3308_v34, %v3305_v44  ;;  %v3263_v3 = vpack.c.bf16 %v10791_v42, %v10785_v13  ;;  %v9334_v34 = vld [vmem:[#allocation11 + $0x2f0] sm:$0xff]   ;;  %v9340_v13 = vld [vmem:[#allocation11 + $0x360] sm:$0xff]   ;;  %v9341_v42 = vld [vmem:[#allocation11 + $0x368] sm:$0xff]  }
 0xbff   :  { %8477 = vmatprep.mubr.bf16.mxu1 %v3368_v58 }
 0xc00   :  { %8478 = vmatmul.mubr.bf16.vlgmr.msra.gmra.mrb[128].mxu1 %v3369_v61 }
 0xc01   :  { %v8451_v17 = vpop.f32.mrb[84].mxu0  ;;  %8494 = vmatpush3.bf16.msra.mxu1 %v9328_v25  ;;  %v10795_v50 = vpop.f32.mrb[116].mxu1 }
 0xc02   :  { %v3321_v51 = vpop.f32.mrb[85].mxu0  ;;  %8495 = vmatprep.subr.bf16.mxu1 %v9329_v55  ;;  %v10797_v16 = vpop.f32.mrb[117].mxu1 }
 0xc03   :  { %v8452_v23 = vpop.f32.mrb[86].mxu0  ;;  %v10799_v20 = vpop.f32.mrb[118].mxu1 }
 0xc04   :  { %v3371_v36 = vpack.c.bf16 %v8452_v23, %v8451_v17  ;;  %v3324_v7 = vpop.f32.mrb[87].mxu0  ;;  %v3266_v33 = vpack.c.bf16 %v10799_v20, %v10795_v50  ;;  %v3219_v41 = vpop.f32.mrb[119].mxu1 }
 0xc05   :  { %v3370_v60 = vpack.c.bf16 %v3324_v7, %v3321_v51  ;;  %8496 = vmatpush3.bf16.msra.mxu1 %v9329_v55  ;;  %v3265_v54 = vpack.c.bf16 %v3219_v41, %v10797_v16  ;;  %v9335_v41 = vld [vmem:[#allocation11 + $0x2f8] sm:$0xff]  }
 0xc06   :  { %8497 = vmatprep.subr.bf16.mxu1 %v9330_v14 }
 0xc07   :  { %8481 = vmatprep.mubr.bf16.mxu1 %v3370_v60  ;;  %v9336_v60 = vld [vmem:[#allocation11 + $0x340] sm:$0xff]  }
 0xc08   :  { %8482 = vmatmul.mubr.bf16.gmra.mrb[132].mxu1 %v3371_v36 }
 0xc09   :  { %v8455_v52 = vpop.f32.mrb[88].mxu0  ;;  %8498 = vmatpush3.bf16.msra.mxu1 %v9330_v14  ;;  %v8423_v47 = vpop.f32.mrb[120].mxu1 }
 0xc0a   :  { %v3337_v32 = vpop.f32.mrb[89].mxu0  ;;  %8499 = vmatprep.subr.bf16.mxu1 %v9331_v6  ;;  %v3232_v26 = vpop.f32.mrb[121].mxu1 }
 0xc0b   :  { %v8456_v35 = vpop.f32.mrb[90].mxu0  ;;  %v8424_v49 = vpop.f32.mrb[122].mxu1 }
 0xc0c   :  { %v3373_v10 = vpack.c.bf16 %v8456_v35, %v8455_v52  ;;  %v3340_v59 = vpop.f32.mrb[91].mxu0  ;;  %v3268_v45 = vpack.c.bf16 %v8424_v49, %v8423_v47  ;;  %v3235_v25 = vpop.f32.mrb[123].mxu1  ;;  %v9338_v52 = vld [vmem:[#allocation11 + $0x350] sm:$0xff]   ;;  %v9339_v47 = vld [vmem:[#allocation11 + $0x358] sm:$0xff]  }
 0xc0d   :  { %v3372_v38 = vpack.c.bf16 %v3340_v59, %v3337_v32  ;;  %8500 = vmatpush3.bf16.msra.mxu1 %v9331_v6  ;;  %v3267_v46 = vpack.c.bf16 %v3235_v25, %v3232_v26  ;;  %v9337_v6 = vld [vmem:[#allocation11 + $0x348] sm:$0xff]  }
 0xc0e   :  { %8501 = vmatprep.subr.bf16.mxu1 %v9332_v0 }
 0xc0f   :  { %8485 = vmatprep.mubr.bf16.mxu1 %v3372_v38 }
 0xc10   :  { %8486 = vmatmul.mubr.bf16.gmra.mrb[136].mxu1 %v3373_v10 }
 0xc11   :  { %v8459_v44 = vpop.f32.mrb[92].mxu0  ;;  %8502 = vmatpush3.bf16.msra.mxu1 %v9332_v0  ;;  %v8427_v22 = vpop.f32.mrb[124].mxu1 }
 0xc12   :  { %v3353_v61 = vpop.f32.mrb[93].mxu0  ;;  %8503 = vmatprep.subr.bf16.mxu1 %v9333_v11  ;;  %v3248_v58 = vpop.f32.mrb[125].mxu1 }
 0xc13   :  { %v8460_v55 = vpop.f32.mrb[94].mxu0  ;;  %v8428_v17 = vpop.f32.mrb[126].mxu1 }
 0xc14   :  { %v3375_v51 = vpack.c.bf16 %v8460_v55, %v8459_v44  ;;  %v3356_v14 = vpop.f32.mrb[95].mxu0  ;;  %v3270_v16 = vpack.c.bf16 %v8428_v17, %v8427_v22  ;;  %v3251_v23 = vpop.f32.mrb[127].mxu1 }
 0xc15   :  { %v3374_v36 = vpack.c.bf16 %v3356_v14, %v3353_v61  ;;  %8504 = vmatpush3.bf16.msra.mxu1 %v9333_v11  ;;  %v3269_v7 = vpack.c.bf16 %v3251_v23, %v3248_v58 }
 0xc16   :  { %8505 = vmatprep.subr.bf16.mxu1 %v9334_v34 }
 0xc17   :  { %8489 = vmatprep.mubr.bf16.mxu1 %v3374_v36 }
 0xc18   :  { %8490 = vmatmul.mubr.bf16.gmra.mrb[140].mxu1 %v3375_v51 }
 0xc19   :  { %8506 = vmatpush3.bf16.msra.mxu1 %v9334_v34  ;;  %8509 = vmatprep.mubr.bf16.mxu1 %v3263_v3  ;;  %v9348_v3 = vld [vmem:[#allocation11 + $0x3a0] sm:$0xff]  }
 0xc1a   :  { %8507 = vmatprep.subr.bf16.mxu1 %v9335_v41 }
 0xc1d   :  { %8508 = vmatpush3.bf16.msra.mxu1 %v9335_v41 }
 0xc1e   :  { %8525 = vmatprep.subr.bf16.mxu1 %v9336_v60 }
 0xc20   :  { %8510 = vmatmul.mubr.bf16.vlgmr.msra.gmra.mrb[128].mxu1 %v3264_v8  ;;  %v9346_v8 = vld [vmem:[#allocation11 + $0x390] sm:$0xff]  }
 0xc21   :  { %8526 = vmatpush3.bf16.msra.mxu1 %v9336_v60  ;;  %8513 = vmatprep.mubr.bf16.mxu1 %v3265_v54 }
 0xc22   :  { %8527 = vmatprep.subr.bf16.mxu1 %v9337_v6  ;;  %8561 = vmatprep.subr.bf16.mxu0 %v9346_v8 }
 0xc23   :  { %8562 = vmatpush3.bf16.msra.mxu0 %v9346_v8 }
 0xc25   :  { %8528 = vmatpush3.bf16.msra.mxu1 %v9337_v6 }
 0xc26   :  { %8529 = vmatprep.subr.bf16.mxu1 %v9338_v52 }
 0xc28   :  { %8514 = vmatmul.mubr.bf16.gmra.mrb[132].mxu1 %v3266_v33 }
 0xc29   :  { %8530 = vmatpush3.bf16.msra.mxu1 %v9338_v52  ;;  %8517 = vmatprep.mubr.bf16.mxu1 %v3267_v46 }
 0xc2a   :  { %8531 = vmatprep.subr.bf16.mxu1 %v9339_v47 }
 0xc2d   :  { %8532 = vmatpush3.bf16.msra.mxu1 %v9339_v47 }
 0xc2e   :  { %8533 = vmatprep.subr.bf16.mxu1 %v9340_v13 }
 0xc30   :  { %8518 = vmatmul.mubr.bf16.gmra.mrb[136].mxu1 %v3268_v45 }
 0xc31   :  { %8534 = vmatpush3.bf16.msra.mxu1 %v9340_v13  ;;  %8521 = vmatprep.mubr.bf16.mxu1 %v3269_v7 }
 0xc32   :  { %8535 = vmatprep.subr.bf16.mxu1 %v9341_v42 }
 0xc35   :  { %8536 = vmatpush3.bf16.msra.mxu1 %v9341_v42 }
 0xc36   :  { %8537 = vmatprep.subr.bf16.mxu1 %v9342_v43 }
 0xc38   :  { %8522 = vmatmul.mubr.bf16.gmra.mrb[140].mxu1 %v3270_v16 }
 0xc39   :  { %8538 = vmatpush3.bf16.msra.mxu1 %v9342_v43  ;;  %8541 = vmatprep.mubr.bf16.mxu1 %v10579_v63  ;;  %v9347_v63 = vld [vmem:[#allocation11 + $0x398] sm:$0xff]  }
 0xc3a   :  { %8539 = vmatprep.subr.bf16.mxu1 %v9343_v27  ;;  %8563 = vmatprep.subr.bf16.mxu0 %v9347_v63 }
 0xc3b   :  { %8564 = vmatpush3.bf16.msra.mxu0 %v9347_v63 }
 0xc3c   :  { %8565 = vmatprep.subr.bf16.mxu0 %v9348_v3 }
 0xc3d   :  { %8540 = vmatpush3.bf16.msra.mxu1 %v9343_v27 }
 0xc3f   :  { %8566 = vmatpush3.bf16.msra.mxu0 %v9348_v3 }
 0xc40   :  { %8542 = vmatmul.mubr.bf16.vlgmr.msra.gmra.mrb[128].mxu1 %v10577_v2  ;;  %v9349_v2 = vld [vmem:[#allocation11 + $0x3a8] sm:$0xff]  }
 0xc41   :  { %8545 = vmatprep.mubr.bf16.mxu1 %v10591_v4  ;;  %8567 = vmatprep.subr.bf16.mxu0 %v9349_v2  ;;  %v9351_v4 = vld [vmem:[#allocation11 + $0x3b8] sm:$0xff]  }
 0xc43   :  { %8568 = vmatpush3.bf16.msra.mxu0 %v9349_v2 }
 0xc48   :  { %8546 = vmatmul.mubr.bf16.gmra.mrb[132].mxu1 %v10589_v12  ;;  %v9350_v12 = vld [vmem:[#allocation11 + $0x3b0] sm:$0xff]  }
 0xc49   :  { %8549 = vmatprep.mubr.bf16.mxu1 %v10599_v18  ;;  %8569 = vmatprep.subr.bf16.mxu0 %v9350_v12 }
 0xc4a   :  { %8570 = vmatpush3.bf16.msra.mxu0 %v9350_v12 }
 0xc4b   :  { %8571 = vmatprep.subr.bf16.mxu0 %v9351_v4 }
 0xc4e   :  { %8572 = vmatpush3.bf16.msra.mxu0 %v9351_v4 }
 0xc50   :  { %8550 = vmatmul.mubr.bf16.gmra.mrb[136].mxu1 %v10597_v37  ;;  %v10824_v37 = vld [vmem:[%s11315_s6 + $0x9] ss:$0 sm:$0xff] }
 0xc51   :  { %8553 = vmatprep.mubr.bf16.mxu1 %v10607_v57 }
 0xc58   :  { %8554 = vmatmul.mubr.bf16.gmra.mrb[140].mxu1 %v10605_v30 }
 0xd13   :  { %v8543_v18 = vpop.f32.mrb[128].mxu1 }
 0xd14   :  { %v3888_v30 = vadd.f32 %v8543_v18, %v10824_v37  ;;  %v3799_v57 = vpop.f32.mrb[129].mxu1 }
 0xd15   :  { %v3886_v50 = vadd.f32 %v10824_v37, %v3799_v57  ;;  %v8544_v20 = vpop.f32.mrb[130].mxu1 }
 0xd16   :  { %v3904_v33 = vmul.f32 0.5, %v3888_v30  ;;  %v3889_v54 = vadd.f32 %v8544_v20, %v10824_v37  ;;  %v3802_v32 = vpop.f32.mrb[131].mxu1 }
 0xd17   :  { %v3902_v0 = vmul.f32 0.5, %v3886_v50  ;;  %v3887_v26 = vadd.f32 %v10824_v37, %v3802_v32 }
 0xd18   :  { %9632 = vtanh.f32 %v3904_v33  ;;  %v3905_v35 = vmul.f32 0.5, %v3889_v54 }
 0xd19   :  { %9634 = vtanh.f32 %v3902_v0  ;;  %v3903_v49 = vmul.f32 0.5, %v3887_v26 }
 0xd1a   :  { %9636 = vtanh.f32 %v3905_v35 }
 0xd1b   :  { %9638 = vtanh.f32 %v3903_v49  ;;  %v8547_v10 = vpop.f32.mrb[132].mxu1 }
 0xd1c   :  { %v3892_v59 = vadd.f32 %v8547_v10, %v10824_v37  ;;  %v3815_v45 = vpop.f32.mrb[133].mxu1 }
 0xd1d   :  { %v3890_v25 = vadd.f32 %v10824_v37, %v3815_v45  ;;  %v8548_v38 = vpop.f32.mrb[134].mxu1 }
 0xd1e   :  { %v3908_v46 = vmul.f32 0.5, %v3892_v59  ;;  %v3893_v11 = vadd.f32 %v8548_v38, %v10824_v37  ;;  %v3818_v44 = vpop.f32.mrb[135].mxu1 }
 0xd1f   :  { %v3906_v22 = vmul.f32 0.5, %v3890_v25  ;;  %v3891_v61 = vadd.f32 %v10824_v37, %v3818_v44 }
 0xd20   :  { %9640 = vtanh.f32 %v3908_v46  ;;  %v3909_v34 = vmul.f32 0.5, %v3893_v11 }
 0xd21   :  { %9642 = vtanh.f32 %v3906_v22  ;;  %v3907_v58 = vmul.f32 0.5, %v3891_v61 }
 0xd22   :  { %v9633_v55 = vpop.eup %9632  ;;  %9644 = vtanh.f32 %v3909_v34 }
 0xd23   :  { %v9635_v17 = vpop.eup %9634  ;;  %v3936_v51 = vadd.f32 1.0, %v9633_v55  ;;  %9646 = vtanh.f32 %v3907_v58  ;;  %v8551_v14 = vpop.f32.mrb[136].mxu1 }
 0xd24   :  { %v9637_v16 = vpop.eup %9636  ;;  %v3934_v23 = vadd.f32 1.0, %v9635_v17  ;;  %v3896_v36 = vadd.f32 %v8551_v14, %v10824_v37  ;;  %v3831_v7 = vpop.f32.mrb[137].mxu1 }
 0xd25   :  { %v9639_v41 = vpop.eup %9638  ;;  %v3937_v60 = vadd.f32 1.0, %v9637_v16  ;;  %v3894_v6 = vadd.f32 %v10824_v37, %v3831_v7  ;;  %v8552_v52 = vpop.f32.mrb[138].mxu1  ;;  %v3952_v27 = vmul.f32 %v3936_v51, %v3904_v33 }
 0xd26   :  { %v3935_v47 = vadd.f32 1.0, %v9639_v41  ;;  %v3912_v13 = vmul.f32 0.5, %v3896_v36  ;;  %v3897_v42 = vadd.f32 %v8552_v52, %v10824_v37  ;;  %v3834_v43 = vpop.f32.mrb[139].mxu1  ;;  %v3950_v2 = vmul.f32 %v3934_v23, %v3902_v0 }
 0xd27   :  { %v3953_v8 = vmul.f32 %v3937_v60, %v3905_v35  ;;  %v3910_v63 = vmul.f32 0.5, %v3894_v6  ;;  %v3895_v3 = vadd.f32 %v10824_v37, %v3834_v43 }
 0xd28   :  { %v3951_v12 = vmul.f32 %v3935_v47, %v3903_v49  ;;  %9648 = vtanh.f32 %v3912_v13  ;;  %v3913_v4 = vmul.f32 0.5, %v3897_v42 }
 0xd29   :  { %v3967_v18 = vpack.c.bf16 %v3953_v8, %v3952_v27  ;;  %9650 = vtanh.f32 %v3910_v63  ;;  %v3911_v30 = vmul.f32 0.5, %v3895_v3 }
 0xd2a   :  { %v9641_v57 = vpop.eup %9640  ;;  %9652 = vtanh.f32 %v3913_v4  ;;  %v3966_v50 = vpack.c.bf16 %v3951_v12, %v3950_v2 }
 0xd2b   :  { %v9643_v20 = vpop.eup %9642  ;;  %v3940_v54 = vadd.f32 1.0, %v9641_v57  ;;  %9654 = vtanh.f32 %v3911_v30  ;;  %v8555_v32 = vpop.f32.mrb[140].mxu1 }
 0xd2c   :  { %v9645_v26 = vpop.eup %9644  ;;  %v3938_v33 = vadd.f32 1.0, %v9643_v20  ;;  %v3900_v35 = vadd.f32 %v8555_v32, %v10824_v37  ;;  %v3847_v10 = vpop.f32.mrb[141].mxu1  ;;  %8573 = vmatprep.mubr.bf16.mxu0 %v3966_v50 }
 0xd2d   :  { %v9647_v0 = vpop.eup %9646  ;;  %v3941_v49 = vadd.f32 1.0, %v9645_v26  ;;  %v3898_v59 = vadd.f32 %v10824_v37, %v3847_v10  ;;  %v8556_v45 = vpop.f32.mrb[142].mxu1  ;;  %8574 = vmatmul.mubr.bf16.vlgmr.msra.gmra.mrb[96].mxu0 %v3967_v18  ;;  %v3956_v61 = vmul.f32 %v3940_v54, %v3908_v46 }
 0xd2e   :  { %v3939_v25 = vadd.f32 1.0, %v9647_v0  ;;  %v3916_v38 = vmul.f32 0.5, %v3900_v35  ;;  %v3901_v11 = vadd.f32 %v8556_v45, %v10824_v37  ;;  %v3850_v44 = vpop.f32.mrb[143].mxu1  ;;  %v3954_v14 = vmul.f32 %v3938_v33, %v3906_v22 }
 0xd2f   :  { %v3957_v55 = vmul.f32 %v3941_v49, %v3909_v34  ;;  %v3914_v17 = vmul.f32 0.5, %v3898_v59  ;;  %v3899_v51 = vadd.f32 %v10824_v37, %v3850_v44 }
 0xd30   :  { %v3955_v16 = vmul.f32 %v3939_v25, %v3907_v58  ;;  %9656 = vtanh.f32 %v3916_v38  ;;  %v3917_v23 = vmul.f32 0.5, %v3901_v11 }
 0xd31   :  { %9658 = vtanh.f32 %v3914_v17  ;;  %v3915_v36 = vmul.f32 0.5, %v3899_v51  ;;  %v3969_v7 = vpack.c.bf16 %v3957_v55, %v3956_v61 }
 0xd32   :  { %v9649_v41 = vpop.eup %9648  ;;  %9660 = vtanh.f32 %v3917_v23  ;;  %v3968_v60 = vpack.c.bf16 %v3955_v16, %v3954_v14 }
 0xd33   :  { %v9651_v6 = vpop.eup %9650  ;;  %v3944_v52 = vadd.f32 1.0, %v9649_v41  ;;  %9662 = vtanh.f32 %v3915_v36 }
 0xd34   :  { %v9653_v47 = vpop.eup %9652  ;;  %v3942_v42 = vadd.f32 1.0, %v9651_v6  ;;  %8577 = vmatprep.mubr.bf16.mxu0 %v3968_v60 }
 0xd35   :  { %v9655_v46 = vpop.eup %9654  ;;  %v3945_v34 = vadd.f32 1.0, %v9653_v47  ;;  %8578 = vmatmul.mubr.bf16.gmra.mrb[100].mxu0 %v3969_v7  ;;  %v3960_v22 = vmul.f32 %v3944_v52, %v3912_v13 }
 0xd36   :  { %v3943_v37 = vadd.f32 1.0, %v9655_v46  ;;  %v3958_v43 = vmul.f32 %v3942_v42, %v3910_v63  ;;  %v9912_v63 = vld [vmem:[#allocation7] sm:$0xff]  }
 0xd37   :  { %v3961_v58 = vmul.f32 %v3945_v34, %v3913_v4 }
 0xd38   :  { %v3959_v27 = vmul.f32 %v3943_v37, %v3911_v30  ;;  %v10845_v30 = vld [vmem:[%s11315_s6 + $0xa] ss:$0 sm:$0xff] }
 0xd39   :  { %v3971_v8 = vpack.c.bf16 %v3961_v58, %v3960_v22 }
 0xd3a   :  { %v9657_v3 = vpop.eup %9656  ;;  %v3970_v2 = vpack.c.bf16 %v3959_v27, %v3958_v43 }
 0xd3b   :  { %v9659_v12 = vpop.eup %9658  ;;  %v3948_v18 = vadd.f32 1.0, %v9657_v3 }
 0xd3c   :  { %v9661_v57 = vpop.eup %9660  ;;  %v3946_v50 = vadd.f32 1.0, %v9659_v12  ;;  %8581 = vmatprep.mubr.bf16.mxu0 %v3970_v2 }
 0xd3d   :  { %v9663_v20 = vpop.eup %9662  ;;  %v3949_v54 = vadd.f32 1.0, %v9661_v57  ;;  %8582 = vmatmul.mubr.bf16.gmra.mrb[104].mxu0 %v3971_v8  ;;  %v3964_v26 = vmul.f32 %v3948_v18, %v3916_v38 }
 0xd3e   :  { %v3947_v32 = vadd.f32 1.0, %v9663_v20  ;;  %v3962_v35 = vmul.f32 %v3946_v50, %v3914_v17 }
 0xd3f   :  { %v3965_v33 = vmul.f32 %v3949_v54, %v3917_v23 }
 0xd40   :  { %v3963_v10 = vmul.f32 %v3947_v32, %v3915_v36 }
 0xd41   :  { %v3973_v13 = vpack.c.bf16 %v3965_v33, %v3964_v26 }
 0xd42   :  { %v3972_v4 = vpack.c.bf16 %v3963_v10, %v3962_v35 }
 0xd44   :  { %8585 = vmatprep.mubr.bf16.mxu0 %v3972_v4 }
 0xd45   :  { %8586 = vmatmul.mubr.bf16.gmra.mrb[108].mxu0 %v3973_v13 }
 0xd46   :  { %8605 = vmatprep.mubr.bf16.mxu0 %v9912_v63 }
 0xe00   :  { %v8575_v0 = vpop.f32.mrb[96].mxu0 }
 0xe01   :  { %v4090_v49 = vadd.f32 %v8575_v0, %v10845_v30  ;;  %v4081_v59 = vpop.f32.mrb[97].mxu0 }
 0xe02   :  { %v4082_v45 = vadd.f32 %v10845_v30, %v4081_v59  ;;  %v8576_v25 = vpop.f32.mrb[98].mxu0 }
 0xe03   :  { %v4146_v38 = vmul.f32 0.5, %v4090_v49  ;;  %v4093_v11 = vadd.f32 %v8576_v25, %v10845_v30  ;;  %v4084_v44 = vpop.f32.mrb[99].mxu0 }
 0xe04   :  { %v4144_v61 = vmul.f32 0.5, %v4082_v45  ;;  %v4085_v55 = vadd.f32 %v10845_v30, %v4084_v44 }
 0xe05   :  { %9664 = vtanh.f32 %v4146_v38  ;;  %v4147_v17 = vmul.f32 0.5, %v4093_v11 }
 0xe06   :  { %9666 = vtanh.f32 %v4144_v61  ;;  %v4145_v51 = vmul.f32 0.5, %v4085_v55 }
 0xe07   :  { %9668 = vtanh.f32 %v4147_v17 }
 0xe08   :  { %9670 = vtanh.f32 %v4145_v51  ;;  %v8579_v14 = vpop.f32.mrb[100].mxu0 }
 0xe09   :  { %v4106_v16 = vadd.f32 %v8579_v14, %v10845_v30  ;;  %v4097_v23 = vpop.f32.mrb[101].mxu0 }
 0xe0a   :  { %v4098_v36 = vadd.f32 %v10845_v30, %v4097_v23  ;;  %v8580_v7 = vpop.f32.mrb[102].mxu0 }
 0xe0b   :  { %v4150_v41 = vmul.f32 0.5, %v4106_v16  ;;  %v4109_v60 = vadd.f32 %v8580_v7, %v10845_v30  ;;  %v4100_v6 = vpop.f32.mrb[103].mxu0 }
 0xe0c   :  { %v4148_v52 = vmul.f32 0.5, %v4098_v36  ;;  %v4101_v47 = vadd.f32 %v10845_v30, %v4100_v6 }
 0xe0d   :  { %9672 = vtanh.f32 %v4150_v41  ;;  %v4151_v42 = vmul.f32 0.5, %v4109_v60 }
 0xe0e   :  { %9674 = vtanh.f32 %v4148_v52  ;;  %v4149_v46 = vmul.f32 0.5, %v4101_v47 }
 0xe0f   :  { %v9665_v34 = vpop.eup %9664  ;;  %9676 = vtanh.f32 %v4151_v42 }
 0xe10   :  { %v9667_v37 = vpop.eup %9666  ;;  %v4178_v22 = vadd.f32 1.0, %v9665_v34  ;;  %9678 = vtanh.f32 %v4149_v46  ;;  %v8583_v58 = vpop.f32.mrb[104].mxu0 }
 0xe11   :  { %v9669_v43 = vpop.eup %9668  ;;  %v4176_v27 = vadd.f32 1.0, %v9667_v37  ;;  %v4122_v8 = vadd.f32 %v8583_v58, %v10845_v30  ;;  %v4113_v3 = vpop.f32.mrb[105].mxu0 }
 0xe12   :  { %v9671_v2 = vpop.eup %9670  ;;  %v4179_v12 = vadd.f32 1.0, %v9669_v43  ;;  %v4114_v18 = vadd.f32 %v10845_v30, %v4113_v3  ;;  %v8584_v57 = vpop.f32.mrb[106].mxu0  ;;  %v4194_v26 = vmul.f32 %v4178_v22, %v4146_v38 }
 0xe13   :  { %v4177_v50 = vadd.f32 1.0, %v9671_v2  ;;  %v4154_v20 = vmul.f32 0.5, %v4122_v8  ;;  %v4125_v54 = vadd.f32 %v8584_v57, %v10845_v30  ;;  %v4116_v32 = vpop.f32.mrb[107].mxu0  ;;  %v4192_v13 = vmul.f32 %v4176_v27, %v4144_v61 }
 0xe14   :  { %v4195_v33 = vmul.f32 %v4179_v12, %v4147_v17  ;;  %v4152_v35 = vmul.f32 0.5, %v4114_v18  ;;  %v4117_v10 = vadd.f32 %v10845_v30, %v4116_v32 }
 0xe15   :  { %v4193_v4 = vmul.f32 %v4177_v50, %v4145_v51  ;;  %9680 = vtanh.f32 %v4154_v20  ;;  %v4155_v63 = vmul.f32 0.5, %v4125_v54 }
 0xe16   :  { %9682 = vtanh.f32 %v4152_v35  ;;  %v4153_v0 = vmul.f32 0.5, %v4117_v10  ;;  %v10859_v49 = vpack.c.bf16 %v4195_v33, %v4194_v26 }
 0xe17   :  { %v9673_v59 = vpop.eup %9672  ;;  %9684 = vtanh.f32 %v4155_v63  ;;  %v10861_v45 = vpack.c.bf16 %v4193_v4, %v4192_v13 }
 0xe18   :  { %v9675_v25 = vpop.eup %9674  ;;  %v4182_v11 = vadd.f32 1.0, %v9673_v59  ;;  %9686 = vtanh.f32 %v4153_v0  ;;  %v8587_v38 = vpop.f32.mrb[108].mxu0 }
 0xe19   :  { %v9677_v44 = vpop.eup %9676  ;;  %v4180_v55 = vadd.f32 1.0, %v9675_v25  ;;  %v4138_v17 = vadd.f32 %v8587_v38, %v10845_v30  ;;  %v4129_v61 = vpop.f32.mrb[109].mxu0  ;;  %8589 = vmatprep.subr.bf16.mxu0 %v10861_v45 }
 0xe1a   :  { %v9679_v51 = vpop.eup %9678  ;;  %v4183_v14 = vadd.f32 1.0, %v9677_v44  ;;  %v4130_v16 = vadd.f32 %v10845_v30, %v4129_v61  ;;  %v8588_v23 = vpop.f32.mrb[110].mxu0  ;;  %8590 = vmatpush3.bf16.msra.mxu0 %v10861_v45  ;;  %v4198_v47 = vmul.f32 %v4182_v11, %v4150_v41 }
 0xe1b   :  { %v4181_v36 = vadd.f32 1.0, %v9679_v51  ;;  %v4158_v7 = vmul.f32 0.5, %v4138_v17  ;;  %v4141_v60 = vadd.f32 %v8588_v23, %v10845_v30  ;;  %v4132_v6 = vpop.f32.mrb[111].mxu0  ;;  %8591 = vmatprep.subr.bf16.mxu0 %v10859_v49  ;;  %v4196_v58 = vmul.f32 %v4180_v55, %v4148_v52  ;;  %v9352_v51 = vld [vmem:[#allocation11 + $0x3c0] sm:$0xff]   ;;  %v9914_v23 = vld [vmem:[#allocation7 + $0x10] sm:$0xff]  }
 0xe1c   :  { %v4199_v34 = vmul.f32 %v4183_v14, %v4151_v42  ;;  %v4156_v37 = vmul.f32 0.5, %v4130_v16  ;;  %v4133_v22 = vadd.f32 %v10845_v30, %v4132_v6  ;;  %v9353_v14 = vld [vmem:[#allocation11 + $0x3c8] sm:$0xff]   ;;  %v9916_v6 = vld [vmem:[#allocation7 + $0x20] sm:$0xff]  }
 0xe1d   :  { %v4197_v43 = vmul.f32 %v4181_v36, %v4149_v46  ;;  %9688 = vtanh.f32 %v4158_v7  ;;  %v4159_v27 = vmul.f32 0.5, %v4141_v60  ;;  %v9913_v16 = vld [vmem:[#allocation7 + $0x8] sm:$0xff]   ;;  %v9354_v36 = vld [vmem:[#allocation11 + $0x3d0] sm:$0xff]   ;;  %v9915_v60 = vld [vmem:[#allocation7 + $0x18] sm:$0xff]  }
 0xe1e   :  { %9690 = vtanh.f32 %v4156_v37  ;;  %v4157_v8 = vmul.f32 0.5, %v4133_v22  ;;  %8592 = vmatpush3.bf16.msra.mxu0 %v10859_v49  ;;  %v10871_v3 = vpack.c.bf16 %v4199_v34, %v4198_v47  ;;  %v9356_v47 = vld [vmem:[#allocation11 + $0x3e0] sm:$0xff]   ;;  %v9357_v34 = vld [vmem:[#allocation11 + $0x3e8] sm:$0xff]   ;;  %v9918_v22 = vld [vmem:[#allocation7 + $0x30] sm:$0xff]  }
 0xe1f   :  { %v9681_v2 = vpop.eup %9680  ;;  %9692 = vtanh.f32 %v4159_v27  ;;  %v10873_v12 = vpack.c.bf16 %v4197_v43, %v4196_v58  ;;  %v9919_v58 = vld [vmem:[#allocation7 + $0x38] sm:$0xff]   ;;  %v9358_v43 = vld [vmem:[#allocation11 + $0x3f0] sm:$0xff]  }
 0xe20   :  { %v9683_v18 = vpop.eup %9682  ;;  %v4186_v41 = vadd.f32 1.0, %v9681_v2  ;;  %9694 = vtanh.f32 %v4157_v8  ;;  %v9361_v2 = vld [vmem:[#allocation11 + $0x408] sm:$0xff]  }
 0xe21   :  { %v9685_v42 = vpop.eup %9684  ;;  %v4184_v57 = vadd.f32 1.0, %v9683_v18  ;;  %8593 = vmatprep.subr.bf16.mxu0 %v10873_v12 }
 0xe22   :  { %v9687_v30 = vpop.eup %9686  ;;  %v4187_v52 = vadd.f32 1.0, %v9685_v42  ;;  %8594 = vmatpush3.bf16.msra.mxu0 %v10873_v12  ;;  %v4202_v50 = vmul.f32 %v4186_v41, %v4154_v20 }
 0xe23   :  { %v4185_v46 = vadd.f32 1.0, %v9687_v30  ;;  %8595 = vmatprep.subr.bf16.mxu0 %v10871_v3  ;;  %v4200_v32 = vmul.f32 %v4184_v57, %v4152_v35 }
 0xe24   :  { %v4203_v54 = vmul.f32 %v4187_v52, %v4155_v63 }
 0xe25   :  { %v4201_v26 = vmul.f32 %v4185_v46, %v4153_v0 }
 0xe26   :  { %8596 = vmatpush3.bf16.msra.mxu0 %v10871_v3  ;;  %v10879_v33 = vpack.c.bf16 %v4203_v54, %v4202_v50 }
 0xe27   :  { %v9689_v10 = vpop.eup %9688  ;;  %v10881_v13 = vpack.c.bf16 %v4201_v26, %v4200_v32 }
 0xe28   :  { %v9691_v4 = vpop.eup %9690  ;;  %v4190_v59 = vadd.f32 1.0, %v9689_v10 }
 0xe29   :  { %v9693_v25 = vpop.eup %9692  ;;  %v4188_v11 = vadd.f32 1.0, %v9691_v4  ;;  %8597 = vmatprep.subr.bf16.mxu0 %v10881_v13 }
 0xe2a   :  { %v9695_v38 = vpop.eup %9694  ;;  %v4191_v44 = vadd.f32 1.0, %v9693_v25  ;;  %8598 = vmatpush3.bf16.msra.mxu0 %v10881_v13  ;;  %v4206_v35 = vmul.f32 %v4190_v59, %v4158_v7  ;;  %v9355_v7 = vld [vmem:[#allocation11 + $0x3d8] sm:$0xff]  }
 0xe2b   :  { %v4189_v20 = vadd.f32 1.0, %v9695_v38  ;;  %8599 = vmatprep.subr.bf16.mxu0 %v10879_v33  ;;  %v4204_v0 = vmul.f32 %v4188_v11, %v4156_v37  ;;  %v9917_v37 = vld [vmem:[#allocation7 + $0x28] sm:$0xff]  }
 0xe2c   :  { %v4207_v63 = vmul.f32 %v4191_v44, %v4159_v27  ;;  %v9359_v27 = vld [vmem:[#allocation11 + $0x3f8] sm:$0xff]  }
 0xe2d   :  { %v4205_v55 = vmul.f32 %v4189_v20, %v4157_v8  ;;  %v9360_v8 = vld [vmem:[#allocation11 + $0x400] sm:$0xff]  }
 0xe2e   :  { %8600 = vmatpush3.bf16.msra.mxu0 %v10879_v33  ;;  %v10887_v17 = vpack.c.bf16 %v4207_v63, %v4206_v35  ;;  %8653 = vmatprep.subr.bf16.mxu1 %v9360_v8 }
 0xe2f   :  { %v10889_v61 = vpack.c.bf16 %v4205_v55, %v4204_v0  ;;  %8654 = vmatpush3.bf16.msra.mxu1 %v9360_v8 }
 0xe30   :  { %8655 = vmatprep.subr.bf16.mxu1 %v9361_v2 }
 0xe31   :  { %8601 = vmatprep.subr.bf16.mxu0 %v10889_v61 }
 0xe32   :  { %8602 = vmatpush3.bf16.msra.mxu0 %v10889_v61 }
 0xe33   :  { %8603 = vmatprep.subr.bf16.mxu0 %v10887_v17  ;;  %8656 = vmatpush3.bf16.msra.mxu1 %v9361_v2 }
 0xe36   :  { %8604 = vmatpush3.bf16.msra.mxu0 %v10887_v17 }
 0xe37   :  { %8621 = vmatprep.subr.bf16.mxu0 %v9352_v51 }
 0xe39   :  { %8606 = vmatmul.mubr.bf16.vlgmr.msra.gmra.mrb[112].mxu0 %v9913_v16 }
 0xe3a   :  { %8609 = vmatprep.mubr.bf16.mxu0 %v9914_v23  ;;  %8622 = vmatpush3.bf16.msra.mxu0 %v9352_v51 }
 0xe3b   :  { %8623 = vmatprep.subr.bf16.mxu0 %v9353_v14 }
 0xe3e   :  { %8624 = vmatpush3.bf16.msra.mxu0 %v9353_v14 }
 0xe3f   :  { %8625 = vmatprep.subr.bf16.mxu0 %v9354_v36 }
 0xe41   :  { %8610 = vmatmul.mubr.bf16.gmra.mrb[116].mxu0 %v9915_v60  ;;  %v9366_v60 = vld [vmem:[#allocation11 + $0x430] sm:$0xff]  }
 0xe42   :  { %8613 = vmatprep.mubr.bf16.mxu0 %v9916_v6  ;;  %8626 = vmatpush3.bf16.msra.mxu0 %v9354_v36  ;;  %v9367_v6 = vld [vmem:[#allocation11 + $0x438] sm:$0xff]  }
 0xe43   :  { %8627 = vmatprep.subr.bf16.mxu0 %v9355_v7 }
 0xe46   :  { %8628 = vmatpush3.bf16.msra.mxu0 %v9355_v7  ;;  %v9362_v7 = vld [vmem:[#allocation11 + $0x410] sm:$0xff]  }
 0xe47   :  { %8629 = vmatprep.subr.bf16.mxu0 %v9356_v47  ;;  %8657 = vmatprep.subr.bf16.mxu1 %v9362_v7 }
 0xe48   :  { %8658 = vmatpush3.bf16.msra.mxu1 %v9362_v7 }
 0xe49   :  { %8614 = vmatmul.mubr.bf16.gmra.mrb[120].mxu0 %v9917_v37 }
 0xe4a   :  { %8617 = vmatprep.mubr.bf16.mxu0 %v9918_v22  ;;  %8630 = vmatpush3.bf16.msra.mxu0 %v9356_v47  ;;  %v10962_v47 = vld [vmem:[%s11315_s6 + $0xb] ss:$0 sm:$0xff] }
 0xe4b   :  { %8631 = vmatprep.subr.bf16.mxu0 %v9357_v34 }
 0xe4e   :  { %8632 = vmatpush3.bf16.msra.mxu0 %v9357_v34 }
 0xe4f   :  { %8633 = vmatprep.subr.bf16.mxu0 %v9358_v43 }
 0xe51   :  { %8618 = vmatmul.mubr.bf16.gmra.mrb[124].mxu0 %v9919_v58 }
 0xe52   :  { %8634 = vmatpush3.bf16.msra.mxu0 %v9358_v43 }
 0xe53   :  { %8635 = vmatprep.subr.bf16.mxu0 %v9359_v27 }
 0xe56   :  { %8636 = vmatpush3.bf16.msra.mxu0 %v9359_v27 }
 0xf0c   :  { %v8607_v18 = vpop.f32.mrb[112].mxu0 }
 0xf0d   :  { %v4250_v41 = vpop.f32.mrb[113].mxu0  ;;  %v10905_v50 = vadd.f32 %v8607_v18, %v10717_v9 }
 0xf0e   :  { %v8608_v42 = vpop.f32.mrb[114].mxu0  ;;  %v10899_v52 = vadd.f32 %v4250_v41, %v10708_v15 }
 0xf0f   :  { %v10896_v57 = vadd.f32 %v8608_v42, %v10711_v21  ;;  %v4253_v30 = vpop.f32.mrb[115].mxu0 }
 0xf10   :  { %v10902_v46 = vadd.f32 %v4253_v30, %v10714_v1 }
 0xf11   :  { %v4330_v32 = vpack.c.bf16 %v10896_v57, %v10905_v50 }
 0xf12   :  { %v4329_v54 = vpack.c.bf16 %v10902_v46, %v10899_v52 }
 0xf14   :  { %v8611_v26 = vpop.f32.mrb[116].mxu0  ;;  %8637 = vmatprep.mubr.bf16.mxu0 %v4329_v54 }
 0xf15   :  { %v4266_v21 = vpop.f32.mrb[117].mxu0  ;;  %8638 = vmatmul.mubr.bf16.vlgmr.msra.gmra.mrb[128].mxu0 %v4330_v32  ;;  %v10921_v59 = vadd.f32 %v8611_v26, %v10737_v5 }
 0xf16   :  { %v8612_v10 = vpop.f32.mrb[118].mxu0  ;;  %v10915_v1 = vadd.f32 %v4266_v21, %v10728_v62 }
 0xf17   :  { %v10912_v15 = vadd.f32 %v8612_v10, %v10731_v24  ;;  %v4269_v4 = vpop.f32.mrb[119].mxu0 }
 0xf18   :  { %v10918_v9 = vadd.f32 %v4269_v4, %v10734_v40 }
 0xf19   :  { %v4332_v11 = vpack.c.bf16 %v10912_v15, %v10921_v59 }
 0xf1a   :  { %v4331_v25 = vpack.c.bf16 %v10918_v9, %v10915_v1 }
 0xf1c   :  { %v8615_v38 = vpop.f32.mrb[120].mxu0  ;;  %8641 = vmatprep.mubr.bf16.mxu0 %v4331_v25 }
 0xf1d   :  { %v4282_v24 = vpop.f32.mrb[121].mxu0  ;;  %8642 = vmatmul.mubr.bf16.gmra.mrb[132].mxu0 %v4332_v11  ;;  %v10937_v35 = vadd.f32 %v8615_v38, %v10757_v39 }
 0xf1e   :  { %v8616_v44 = vpop.f32.mrb[122].mxu0  ;;  %v10931_v40 = vadd.f32 %v4282_v24, %v10748_v19 }
 0xf1f   :  { %v10928_v62 = vadd.f32 %v8616_v44, %v10751_v31  ;;  %v4285_v20 = vpop.f32.mrb[123].mxu0 }
 0xf20   :  { %v10934_v5 = vadd.f32 %v4285_v20, %v10754_v53 }
 0xf21   :  { %v4334_v0 = vpack.c.bf16 %v10928_v62, %v10937_v35 }
 0xf22   :  { %v4333_v63 = vpack.c.bf16 %v10934_v5, %v10931_v40 }
 0xf24   :  { %v8619_v55 = vpop.f32.mrb[124].mxu0  ;;  %8645 = vmatprep.mubr.bf16.mxu0 %v4333_v63 }
 0xf25   :  { %v4298_v31 = vpop.f32.mrb[125].mxu0  ;;  %8646 = vmatmul.mubr.bf16.gmra.mrb[136].mxu0 %v4334_v0  ;;  %v10953_v16 = vadd.f32 %v8619_v55, %v10777_v29  ;;  %v9365_v29 = vld [vmem:[#allocation11 + $0x428] sm:$0xff]  }
 0xf26   :  { %v8620_v51 = vpop.f32.mrb[126].mxu0  ;;  %v10947_v53 = vadd.f32 %v4298_v31, %v10768_v48  ;;  %v9363_v48 = vld [vmem:[#allocation11 + $0x418] sm:$0xff]  }
 0xf27   :  { %v10944_v19 = vadd.f32 %v8620_v51, %v10771_v28  ;;  %v4301_v14 = vpop.f32.mrb[127].mxu0  ;;  %v9920_v28 = vld [vmem:[#allocation2] sm:$0xff]   ;;  %8659 = vmatprep.subr.bf16.mxu1 %v9363_v48 }
 0xf28   :  { %v10950_v39 = vadd.f32 %v4301_v14, %v10774_v56  ;;  %8660 = vmatpush3.bf16.msra.mxu1 %v9363_v48  ;;  %v9364_v56 = vld [vmem:[#allocation11 + $0x420] sm:$0xff]  }
 0xf29   :  { %v4336_v36 = vpack.c.bf16 %v10944_v19, %v10953_v16  ;;  %8661 = vmatprep.subr.bf16.mxu1 %v9364_v56 }
 0xf2a   :  { %v4335_v23 = vpack.c.bf16 %v10950_v39, %v10947_v53 }
 0xf2c   :  { %8649 = vmatprep.mubr.bf16.mxu0 %v4335_v23  ;;  %8662 = vmatpush3.bf16.msra.mxu1 %v9364_v56 }
 0xf2d   :  { %8650 = vmatmul.mubr.bf16.gmra.mrb[140].mxu0 %v4336_v36  ;;  %8663 = vmatprep.subr.bf16.mxu1 %v9365_v29 }
 0xf2e   :  { %8701 = vmatprep.mubr.bf16.mxu0 %v9920_v28 }
 0xf30   :  { %8664 = vmatpush3.bf16.msra.mxu1 %v9365_v29 }
 0xf31   :  { %8665 = vmatprep.subr.bf16.mxu1 %v9366_v60 }
 0xf34   :  { %8666 = vmatpush3.bf16.msra.mxu1 %v9366_v60 }
 0xf35   :  { %8667 = vmatprep.subr.bf16.mxu1 %v9367_v6 }
 0xf38   :  { %8668 = vmatpush3.bf16.msra.mxu1 %v9367_v6 }
 0xfe8   :  { %v8639_v34 = vpop.f32.mrb[128].mxu0 }
 0xfe9   :  { %v4453_v37 = vadd.f32 %v8639_v34, %v10962_v47  ;;  %v4444_v22 = vpop.f32.mrb[129].mxu0 }
 0xfea   :  { %v4445_v58 = vadd.f32 %v10962_v47, %v4444_v22  ;;  %v8640_v43 = vpop.f32.mrb[130].mxu0 }
 0xfeb   :  { %v4509_v27 = vmul.f32 0.5, %v4453_v37  ;;  %v4456_v8 = vadd.f32 %v8640_v43, %v10962_v47  ;;  %v4447_v2 = vpop.f32.mrb[131].mxu0 }
 0xfec   :  { %v4507_v18 = vmul.f32 0.5, %v4445_v58  ;;  %v4448_v41 = vadd.f32 %v10962_v47, %v4447_v2 }
 0xfed   :  { %9696 = vtanh.f32 %v4509_v27  ;;  %v4510_v42 = vmul.f32 0.5, %v4456_v8 }
 0xfee   :  { %9698 = vtanh.f32 %v4507_v18  ;;  %v4508_v30 = vmul.f32 0.5, %v4448_v41 }
 0xfef   :  { %9700 = vtanh.f32 %v4510_v42 }
 0xff0   :  { %9702 = vtanh.f32 %v4508_v30  ;;  %v8643_v54 = vpop.f32.mrb[132].mxu0 }
 0xff1   :  { %v4469_v32 = vadd.f32 %v8643_v54, %v10962_v47  ;;  %v4460_v26 = vpop.f32.mrb[133].mxu0 }
 0xff2   :  { %v4461_v21 = vadd.f32 %v10962_v47, %v4460_v26  ;;  %v8644_v10 = vpop.f32.mrb[134].mxu0 }
 0xff3   :  { %v4513_v4 = vmul.f32 0.5, %v4469_v32  ;;  %v4472_v25 = vadd.f32 %v8644_v10, %v10962_v47  ;;  %v4463_v11 = vpop.f32.mrb[135].mxu0 }
 0xff4   :  { %v4511_v38 = vmul.f32 0.5, %v4461_v21  ;;  %v4464_v24 = vadd.f32 %v10962_v47, %v4463_v11 }
 0xff5   :  { %9704 = vtanh.f32 %v4513_v4  ;;  %v4514_v44 = vmul.f32 0.5, %v4472_v25 }
 0xff6   :  { %9706 = vtanh.f32 %v4511_v38  ;;  %v4512_v20 = vmul.f32 0.5, %v4464_v24 }
 0xff7   :  { %v9697_v63 = vpop.eup %9696  ;;  %9708 = vtanh.f32 %v4514_v44 }
 0xff8   :  { %v9699_v0 = vpop.eup %9698  ;;  %v4541_v55 = vadd.f32 1.0, %v9697_v63  ;;  %9710 = vtanh.f32 %v4512_v20  ;;  %v8647_v31 = vpop.f32.mrb[136].mxu0 }
 0xff9   :  { %v9701_v51 = vpop.eup %9700  ;;  %v4539_v14 = vadd.f32 1.0, %v9699_v0  ;;  %v4485_v23 = vadd.f32 %v8647_v31, %v10962_v47  ;;  %v4476_v36 = vpop.f32.mrb[137].mxu0 }
 0xffa   :  { %v9703_v28 = vpop.eup %9702  ;;  %v4542_v7 = vadd.f32 1.0, %v9701_v51  ;;  %v4477_v48 = vadd.f32 %v10962_v47, %v4476_v36  ;;  %v8648_v56 = vpop.f32.mrb[138].mxu0  ;;  %v4557_v37 = vmul.f32 %v4541_v55, %v4509_v27 }
 0xffb   :  { %v4540_v29 = vadd.f32 1.0, %v9703_v28  ;;  %v4517_v60 = vmul.f32 0.5, %v4485_v23  ;;  %v4488_v6 = vadd.f32 %v8648_v56, %v10962_v47  ;;  %v4479_v34 = vpop.f32.mrb[139].mxu0  ;;  %v4555_v8 = vmul.f32 %v4539_v14, %v4507_v18 }
 0xffc   :  { %v4558_v22 = vmul.f32 %v4542_v7, %v4510_v42  ;;  %v4515_v58 = vmul.f32 0.5, %v4477_v48  ;;  %v4480_v43 = vadd.f32 %v10962_v47, %v4479_v34 }
 0xffd   :  { %v4556_v2 = vmul.f32 %v4540_v29, %v4508_v30  ;;  %9712 = vtanh.f32 %v4517_v60  ;;  %v4518_v41 = vmul.f32 0.5, %v4488_v6 }
 0xffe   :  { %v4572_v54 = vpack.c.bf16 %v4558_v22, %v4557_v37  ;;  %9714 = vtanh.f32 %v4515_v58  ;;  %v4516_v32 = vmul.f32 0.5, %v4480_v43 }
 0xfff   :  { %v9705_v26 = vpop.eup %9704  ;;  %9716 = vtanh.f32 %v4518_v41  ;;  %v4571_v21 = vpack.c.bf16 %v4556_v2, %v4555_v8 }
0x1000   :  { %v9707_v10 = vpop.eup %9706  ;;  %v4545_v25 = vadd.f32 1.0, %v9705_v26  ;;  %9718 = vtanh.f32 %v4516_v32  ;;  %v8651_v11 = vpop.f32.mrb[140].mxu0 }
0x1001   :  { %v9709_v24 = vpop.eup %9708  ;;  %v4543_v27 = vadd.f32 1.0, %v9707_v10  ;;  %v4501_v42 = vadd.f32 %v8651_v11, %v10962_v47  ;;  %v4492_v63 = vpop.f32.mrb[141].mxu0  ;;  %8669 = vmatprep.mubr.bf16.mxu1 %v4571_v21 }
0x1002   :  { %v9711_v18 = vpop.eup %9710  ;;  %v4546_v30 = vadd.f32 1.0, %v9709_v24  ;;  %v4493_v0 = vadd.f32 %v10962_v47, %v4492_v63  ;;  %v8652_v55 = vpop.f32.mrb[142].mxu0  ;;  %8670 = vmatmul.mubr.bf16.vlgmr.msra.gmra.mrb[144].mxu1 %v4572_v54  ;;  %v4561_v36 = vmul.f32 %v4545_v25, %v4513_v4 }
0x1003   :  { %v4544_v31 = vadd.f32 1.0, %v9711_v18  ;;  %v4521_v51 = vmul.f32 0.5, %v4501_v42  ;;  %v4504_v14 = vadd.f32 %v8652_v55, %v10962_v47  ;;  %v4495_v23 = vpop.f32.mrb[143].mxu0  ;;  %v4559_v56 = vmul.f32 %v4543_v27, %v4511_v38 }
0x1004   :  { %v4562_v28 = vmul.f32 %v4546_v30, %v4514_v44  ;;  %v4519_v7 = vmul.f32 0.5, %v4493_v0  ;;  %v4496_v48 = vadd.f32 %v10962_v47, %v4495_v23 }
0x1005   :  { %v4560_v29 = vmul.f32 %v4544_v31, %v4512_v20  ;;  %9720 = vtanh.f32 %v4521_v51  ;;  %v4522_v6 = vmul.f32 0.5, %v4504_v14 }
0x1006   :  { %9722 = vtanh.f32 %v4519_v7  ;;  %v4520_v34 = vmul.f32 0.5, %v4496_v48  ;;  %v4574_v37 = vpack.c.bf16 %v4562_v28, %v4561_v36 }
0x1007   :  { %v9713_v22 = vpop.eup %9712  ;;  %9724 = vtanh.f32 %v4522_v6  ;;  %v4573_v43 = vpack.c.bf16 %v4560_v29, %v4559_v56 }
0x1008   :  { %v9715_v8 = vpop.eup %9714  ;;  %v4549_v2 = vadd.f32 1.0, %v9713_v22  ;;  %9726 = vtanh.f32 %v4520_v34 }
0x1009   :  { %v9717_v54 = vpop.eup %9716  ;;  %v4547_v26 = vadd.f32 1.0, %v9715_v8  ;;  %8673 = vmatprep.mubr.bf16.mxu1 %v4573_v43 }
0x100a   :  { %v9719_v4 = vpop.eup %9718  ;;  %v4550_v44 = vadd.f32 1.0, %v9717_v54  ;;  %8674 = vmatmul.mubr.bf16.gmra.mrb[148].mxu1 %v4574_v37  ;;  %v4565_v38 = vmul.f32 %v4549_v2, %v4517_v60 }
0x100b   :  { %v4548_v47 = vadd.f32 1.0, %v9719_v4  ;;  %v4563_v21 = vmul.f32 %v4547_v26, %v4515_v58  ;;  %v9921_v58 = vld [vmem:[#allocation5] sm:$0xff]  }
0x100c   :  { %v4566_v20 = vmul.f32 %v4550_v44, %v4518_v41 }
0x100d   :  { %v4564_v10 = vmul.f32 %v4548_v47, %v4516_v32  ;;  %v10983_v32 = vld [vmem:[%s11315_s6 + $0xc] ss:$0 sm:$0xff] }
0x100e   :  { %v4576_v25 = vpack.c.bf16 %v4566_v20, %v4565_v38 }
0x100f   :  { %v9721_v11 = vpop.eup %9720  ;;  %v4575_v24 = vpack.c.bf16 %v4564_v10, %v4563_v21 }
0x1010   :  { %v9723_v27 = vpop.eup %9722  ;;  %v4553_v42 = vadd.f32 1.0, %v9721_v11 }
0x1011   :  { %v9725_v63 = vpop.eup %9724  ;;  %v4551_v18 = vadd.f32 1.0, %v9723_v27  ;;  %8677 = vmatprep.mubr.bf16.mxu1 %v4575_v24 }
0x1012   :  { %v9727_v30 = vpop.eup %9726  ;;  %v4554_v0 = vadd.f32 1.0, %v9725_v63  ;;  %8678 = vmatmul.mubr.bf16.gmra.mrb[152].mxu1 %v4576_v25  ;;  %v4569_v31 = vmul.f32 %v4553_v42, %v4521_v51 }
0x1013   :  { %v4552_v55 = vadd.f32 1.0, %v9727_v30  ;;  %v4567_v23 = vmul.f32 %v4551_v18, %v4519_v7 }
0x1014   :  { %v4570_v14 = vmul.f32 %v4554_v0, %v4522_v6 }
0x1015   :  { %v4568_v36 = vmul.f32 %v4552_v55, %v4520_v34 }
0x1016   :  { %v4578_v60 = vpack.c.bf16 %v4570_v14, %v4569_v31 }
0x1017   :  { %v4577_v41 = vpack.c.bf16 %v4568_v36, %v4567_v23 }
0x1019   :  { %8681 = vmatprep.mubr.bf16.mxu1 %v4577_v41 }
0x101a   :  { %8682 = vmatmul.mubr.bf16.gmra.mrb[156].mxu1 %v4578_v60 }
0x101b   :  { %8733 = vmatprep.mubr.bf16.mxu1 %v9921_v58 }
0x10d5   :  { %v8671_v28 = vpop.f32.mrb[144].mxu1 }
0x10d6   :  { %v4686_v48 = vpop.f32.mrb[145].mxu1  ;;  %v4695_v6 = vadd.f32 %v8671_v28, %v10983_v32 }
0x10d7   :  { %v4687_v56 = vadd.f32 %v10983_v32, %v4686_v48  ;;  %v8672_v29 = vpop.f32.mrb[146].mxu1 }
0x10d8   :  { %v4698_v51 = vadd.f32 %v8672_v29, %v10983_v32  ;;  %v4689_v7 = vpop.f32.mrb[147].mxu1  ;;  %v10999_v8 = vadd.f32 %v4695_v6, %v10905_v50  ;;  %v9370_v6 = vld [vmem:[#allocation11 + $0x490] sm:$0xff]  }
0x10d9   :  { %v4690_v34 = vadd.f32 %v10983_v32, %v4689_v7  ;;  %v10990_v37 = vadd.f32 %v4687_v56, %v10899_v52  ;;  %v9925_v7 = vld [vmem:[#allocation2 + $0x10] sm:$0xff]  }
0x10da   :  { %v10993_v22 = vadd.f32 %v4698_v51, %v10896_v57  ;;  %v9924_v51 = vld [vmem:[#allocation5 + $0x10] sm:$0xff]  }
0x10db   :  { %v10996_v43 = vadd.f32 %v4690_v34, %v10902_v46  ;;  %v9371_v34 = vld [vmem:[#allocation11 + $0x498] sm:$0xff]  }
0x10dc   :  { %v4766_v4 = vpack.c.bf16 %v10993_v22, %v10999_v8 }
0x10dd   :  { %v4765_v2 = vpack.c.bf16 %v10996_v43, %v10990_v37  ;;  %v8675_v54 = vpop.f32.mrb[148].mxu1 }
0x10de   :  { %v4702_v26 = vpop.f32.mrb[149].mxu1  ;;  %v4711_v50 = vadd.f32 %v8675_v54, %v10983_v32  ;;  %v9927_v54 = vld [vmem:[#allocation2 + $0x18] sm:$0xff]  }
0x10df   :  { %v4703_v52 = vadd.f32 %v10983_v32, %v4702_v26  ;;  %v8676_v44 = vpop.f32.mrb[150].mxu1  ;;  %8685 = vmatprep.subr.bf16.mxu0 %v4765_v2  ;;  %8717 = vmatprep.subr.bf16.mxu1 %v4765_v2  ;;  %v9928_v26 = vld [vmem:[#allocation5 + $0x20] sm:$0xff]  }
0x10e0   :  { %v4714_v57 = vadd.f32 %v8676_v44, %v10983_v32  ;;  %v4705_v46 = vpop.f32.mrb[151].mxu1  ;;  %8686 = vmatpush3.bf16.msra.mxu0 %v4765_v2  ;;  %8718 = vmatpush3.bf16.msra.mxu1 %v4765_v2  ;;  %v11019_v10 = vadd.f32 %v4711_v50, %v10921_v59  ;;  %v9926_v2 = vld [vmem:[#allocation5 + $0x18] sm:$0xff]   ;;  %v9373_v44 = vld [vmem:[#allocation11 + $0x4a8] sm:$0xff]   ;;  %v9932_v50 = vld [vmem:[#allocation5 + $0x30] sm:$0xff]  }
0x10e1   :  { %v4706_v47 = vadd.f32 %v10983_v32, %v4705_v46  ;;  %8687 = vmatprep.subr.bf16.mxu0 %v4766_v4  ;;  %8719 = vmatprep.subr.bf16.mxu1 %v4766_v4  ;;  %v11010_v38 = vadd.f32 %v4703_v52, %v10915_v1  ;;  %v9372_v52 = vld [vmem:[#allocation11 + $0x4a0] sm:$0xff]   ;;  %v9931_v46 = vld [vmem:[#allocation2 + $0x28] sm:$0xff]  }
0x10e2   :  { %v11013_v20 = vadd.f32 %v4714_v57, %v10912_v15  ;;  %v9930_v57 = vld [vmem:[#allocation5 + $0x28] sm:$0xff]  }
0x10e3   :  { %v11016_v21 = vadd.f32 %v4706_v47, %v10918_v9  ;;  %v9933_v47 = vld [vmem:[#allocation2 + $0x30] sm:$0xff]  }
0x10e4   :  { %8688 = vmatpush3.bf16.msra.mxu0 %v4766_v4  ;;  %8720 = vmatpush3.bf16.msra.mxu1 %v4766_v4  ;;  %v4768_v1 = vpack.c.bf16 %v11013_v20, %v11019_v10  ;;  %v9929_v4 = vld [vmem:[#allocation2 + $0x20] sm:$0xff]  }
0x10e5   :  { %v4767_v25 = vpack.c.bf16 %v11016_v21, %v11010_v38  ;;  %v8679_v11 = vpop.f32.mrb[152].mxu1 }
0x10e6   :  { %v4718_v24 = vpop.f32.mrb[153].mxu1  ;;  %v4727_v59 = vadd.f32 %v8679_v11, %v10983_v32  ;;  %v9934_v11 = vld [vmem:[#allocation5 + $0x38] sm:$0xff]  }
0x10e7   :  { %v4719_v27 = vadd.f32 %v10983_v32, %v4718_v24  ;;  %v8680_v15 = vpop.f32.mrb[154].mxu1  ;;  %8689 = vmatprep.subr.bf16.mxu0 %v4767_v25  ;;  %8721 = vmatprep.subr.bf16.mxu1 %v4767_v25  ;;  %v9935_v24 = vld [vmem:[#allocation2 + $0x38] sm:$0xff]  }
0x10e8   :  { %v4730_v9 = vadd.f32 %v8680_v15, %v10983_v32  ;;  %v4721_v42 = vpop.f32.mrb[155].mxu1  ;;  %8690 = vmatpush3.bf16.msra.mxu0 %v4767_v25  ;;  %8722 = vmatpush3.bf16.msra.mxu1 %v4767_v25  ;;  %v11039_v55 = vadd.f32 %v4727_v59, %v10937_v35  ;;  %v9374_v25 = vld [vmem:[#allocation11 + $0x4b0] sm:$0xff]   ;;  %v9392_v15 = vld [vmem:[#allocation11 + $0x500] sm:$0xff]  }
0x10e9   :  { %v4722_v63 = vadd.f32 %v10983_v32, %v4721_v42  ;;  %8691 = vmatprep.subr.bf16.mxu0 %v4768_v1  ;;  %8723 = vmatprep.subr.bf16.mxu1 %v4768_v1  ;;  %v11030_v18 = vadd.f32 %v4719_v27, %v10931_v40  ;;  %v9376_v27 = vld [vmem:[#allocation11 + $0x440] sm:$0xff]  }
0x10ea   :  { %v11033_v30 = vadd.f32 %v4730_v9, %v10928_v62  ;;  %v9393_v9 = vld [vmem:[#allocation11 + $0x508] sm:$0xff]  }
0x10eb   :  { %v11036_v0 = vadd.f32 %v4722_v63, %v10934_v5 }
0x10ec   :  { %8692 = vmatpush3.bf16.msra.mxu0 %v4768_v1  ;;  %8724 = vmatpush3.bf16.msra.mxu1 %v4768_v1  ;;  %v4770_v40 = vpack.c.bf16 %v11033_v30, %v11039_v55  ;;  %v9375_v1 = vld [vmem:[#allocation11 + $0x4b8] sm:$0xff]  }
0x10ed   :  { %v4769_v31 = vpack.c.bf16 %v11036_v0, %v11030_v18  ;;  %v8683_v14 = vpop.f32.mrb[156].mxu1 }
0x10ee   :  { %v4734_v23 = vpop.f32.mrb[157].mxu1  ;;  %v4743_v35 = vadd.f32 %v8683_v14, %v10983_v32 }
0x10ef   :  { %v4735_v36 = vadd.f32 %v10983_v32, %v4734_v23  ;;  %v8684_v62 = vpop.f32.mrb[158].mxu1  ;;  %8693 = vmatprep.subr.bf16.mxu0 %v4769_v31  ;;  %8725 = vmatprep.subr.bf16.mxu1 %v4769_v31 }
0x10f0   :  { %v4746_v5 = vadd.f32 %v8684_v62, %v10983_v32  ;;  %v4737_v60 = vpop.f32.mrb[159].mxu1  ;;  %8694 = vmatpush3.bf16.msra.mxu0 %v4769_v31  ;;  %8726 = vmatpush3.bf16.msra.mxu1 %v4769_v31  ;;  %v11059_v56 = vadd.f32 %v4743_v35, %v10953_v16  ;;  %v9923_v16 = vld [vmem:[#allocation2 + $0x8] sm:$0xff]  }
0x10f1   :  { %v4738_v41 = vadd.f32 %v10983_v32, %v4737_v60  ;;  %8695 = vmatprep.subr.bf16.mxu0 %v4770_v40  ;;  %8727 = vmatprep.subr.bf16.mxu1 %v4770_v40  ;;  %v11050_v58 = vadd.f32 %v4735_v36, %v10947_v53  ;;  %v9369_v53 = vld [vmem:[#allocation11 + $0x488] sm:$0xff]  }
0x10f2   :  { %v11053_v28 = vadd.f32 %v4746_v5, %v10944_v19  ;;  %v9368_v19 = vld [vmem:[#allocation11 + $0x480] sm:$0xff]  }
0x10f3   :  { %v11056_v48 = vadd.f32 %v4738_v41, %v10950_v39  ;;  %v9922_v39 = vld [vmem:[#allocation5 + $0x8] sm:$0xff]  }
0x10f4   :  { %8696 = vmatpush3.bf16.msra.mxu0 %v4770_v40  ;;  %8728 = vmatpush3.bf16.msra.mxu1 %v4770_v40  ;;  %v4772_v32 = vpack.c.bf16 %v11053_v28, %v11059_v56  ;;  %v9377_v41 = vld [vmem:[#allocation11 + $0x448] sm:$0xff]  }
0x10f5   :  { %v4771_v29 = vpack.c.bf16 %v11056_v48, %v11050_v58 }
0x10f7   :  { %8697 = vmatprep.subr.bf16.mxu0 %v4771_v29  ;;  %8729 = vmatprep.subr.bf16.mxu1 %v4771_v29 }
0x10f8   :  { %8698 = vmatpush3.bf16.msra.mxu0 %v4771_v29  ;;  %8730 = vmatpush3.bf16.msra.mxu1 %v4771_v29 }
0x10f9   :  { %8699 = vmatprep.subr.bf16.mxu0 %v4772_v32  ;;  %8731 = vmatprep.subr.bf16.mxu1 %v4772_v32 }
0x10fc   :  { %8700 = vmatpush3.bf16.msra.mxu0 %v4772_v32  ;;  %8732 = vmatpush3.bf16.msra.mxu1 %v4772_v32 }
0x10fd   :  { %8749 = vmatprep.subr.bf16.mxu0 %v9368_v19  ;;  %8845 = vmatprep.subr.bf16.mxu1 %v9392_v15 }
0x10ff   :  { %8734 = vmatmul.mubr.bf16.vlgmr.msra.gmra.mrb[160].mxu1 %v9922_v39  ;;  %8702 = vmatmul.mubr.bf16.vlgmr.msra.gmra.mrb[144].mxu0 %v9923_v16 }
0x1100   :  { %8737 = vmatprep.mubr.bf16.mxu1 %v9924_v51  ;;  %8705 = vmatprep.mubr.bf16.mxu0 %v9925_v7 }
0x1101   :  { %8750 = vmatpush3.bf16.msra.mxu0 %v9368_v19  ;;  %8846 = vmatpush3.bf16.msra.mxu1 %v9392_v15 }
0x1102   :  { %8751 = vmatprep.subr.bf16.mxu0 %v9369_v53  ;;  %8847 = vmatprep.subr.bf16.mxu1 %v9393_v9 }
0x1105   :  { %8752 = vmatpush3.bf16.msra.mxu0 %v9369_v53  ;;  %8848 = vmatpush3.bf16.msra.mxu1 %v9393_v9  ;;  %v9378_v53 = vld [vmem:[#allocation11 + $0x450] sm:$0xff]  }
0x1106   :  { %8753 = vmatprep.subr.bf16.mxu0 %v9370_v6 }
0x1107   :  { %8738 = vmatmul.mubr.bf16.gmra.mrb[164].mxu1 %v9926_v2  ;;  %8706 = vmatmul.mubr.bf16.gmra.mrb[148].mxu0 %v9927_v54 }
0x1108   :  { %8741 = vmatprep.mubr.bf16.mxu1 %v9928_v26  ;;  %8709 = vmatprep.mubr.bf16.mxu0 %v9929_v4  ;;  %v9379_v4 = vld [vmem:[#allocation11 + $0x458] sm:$0xff]  }
0x1109   :  { %8754 = vmatpush3.bf16.msra.mxu0 %v9370_v6 }
0x110a   :  { %8755 = vmatprep.subr.bf16.mxu0 %v9371_v34 }
0x110d   :  { %8756 = vmatpush3.bf16.msra.mxu0 %v9371_v34 }
0x110e   :  { %8757 = vmatprep.subr.bf16.mxu0 %v9372_v52 }
0x110f   :  { %8742 = vmatmul.mubr.bf16.gmra.mrb[168].mxu1 %v9930_v57  ;;  %8710 = vmatmul.mubr.bf16.gmra.mrb[152].mxu0 %v9931_v46  ;;  %v9380_v46 = vld [vmem:[#allocation11 + $0x460] sm:$0xff]  }
0x1110   :  { %8745 = vmatprep.mubr.bf16.mxu1 %v9932_v50  ;;  %8713 = vmatprep.mubr.bf16.mxu0 %v9933_v47 }
0x1111   :  { %8758 = vmatpush3.bf16.msra.mxu0 %v9372_v52 }
0x1112   :  { %8759 = vmatprep.subr.bf16.mxu0 %v9373_v44 }
0x1115   :  { %8760 = vmatpush3.bf16.msra.mxu0 %v9373_v44 }
0x1116   :  { %8761 = vmatprep.subr.bf16.mxu0 %v9374_v25 }
0x1117   :  { %8746 = vmatmul.mubr.bf16.gmra.mrb[172].mxu1 %v9934_v11  ;;  %8714 = vmatmul.mubr.bf16.gmra.mrb[156].mxu0 %v9935_v24 }
0x1119   :  { %8762 = vmatpush3.bf16.msra.mxu0 %v9374_v25 }
0x111a   :  { %8763 = vmatprep.subr.bf16.mxu0 %v9375_v1 }
0x111d   :  { %8764 = vmatpush3.bf16.msra.mxu0 %v9375_v1 }
0x111e   :  { %8781 = vmatprep.subr.bf16.mxu0 %v9376_v27 }
0x11d2   :  { %v8735_v42 = vpop.f32.mrb[160].mxu1  ;;  %v11065_v59 = vpop.f32.mrb[144].mxu0 }
0x11d3   :  { %v4912_v63 = vpop.f32.mrb[161].mxu1  ;;  %v11067_v31 = vpop.f32.mrb[145].mxu0 }
0x11d4   :  { %v8736_v14 = vpop.f32.mrb[162].mxu1  ;;  %v11069_v23 = vpop.f32.mrb[146].mxu0 }
0x11d5   :  { %v4976_v40 = vpack.c.bf16 %v8736_v14, %v8735_v42  ;;  %v4915_v36 = vpop.f32.mrb[163].mxu1  ;;  %v4871_v62 = vpack.c.bf16 %v11069_v23, %v11065_v59  ;;  %v11073_v5 = vpop.f32.mrb[147].mxu0  ;;  %v9381_v42 = vld [vmem:[#allocation11 + $0x468] sm:$0xff]   ;;  %v9390_v59 = vld [vmem:[#allocation11 + $0x4f0] sm:$0xff]   ;;  %v9391_v23 = vld [vmem:[#allocation11 + $0x4f8] sm:$0xff]  }
0x11d6   :  { %v4975_v60 = vpack.c.bf16 %v4915_v36, %v4912_v63  ;;  %v4870_v35 = vpack.c.bf16 %v11073_v5, %v11067_v31  ;;  %v9382_v36 = vld [vmem:[#allocation11 + $0x470] sm:$0xff]   ;;  %v9388_v31 = vld [vmem:[#allocation11 + $0x4e0] sm:$0xff]   ;;  %v9389_v5 = vld [vmem:[#allocation11 + $0x4e8] sm:$0xff]  }
0x11d8   :  { %8765 = vmatprep.mubr.bf16.mxu0 %v4975_v60 }
0x11d9   :  { %8766 = vmatmul.mubr.bf16.vlgmr.msra.gmra.mrb[160].mxu0 %v4976_v40 }
0x11da   :  { %v8739_v29 = vpop.f32.mrb[164].mxu1  ;;  %8782 = vmatpush3.bf16.msra.mxu0 %v9376_v27  ;;  %v11077_v32 = vpop.f32.mrb[148].mxu0 }
0x11db   :  { %v4928_v19 = vpop.f32.mrb[165].mxu1  ;;  %8783 = vmatprep.subr.bf16.mxu0 %v9377_v41  ;;  %v11079_v39 = vpop.f32.mrb[149].mxu0 }
0x11dc   :  { %v8740_v16 = vpop.f32.mrb[166].mxu1  ;;  %v11081_v51 = vpop.f32.mrb[150].mxu0 }
0x11dd   :  { %v4978_v7 = vpack.c.bf16 %v8740_v16, %v8739_v29  ;;  %v4931_v6 = vpop.f32.mrb[167].mxu1  ;;  %v4873_v34 = vpack.c.bf16 %v11081_v51, %v11077_v32  ;;  %v4826_v2 = vpop.f32.mrb[151].mxu0 }
0x11de   :  { %v4977_v54 = vpack.c.bf16 %v4931_v6, %v4928_v19  ;;  %8784 = vmatpush3.bf16.msra.mxu0 %v9377_v41  ;;  %v4872_v26 = vpack.c.bf16 %v4826_v2, %v11079_v39  ;;  %v9383_v2 = vld [vmem:[#allocation11 + $0x478] sm:$0xff]  }
0x11df   :  { %8785 = vmatprep.subr.bf16.mxu0 %v9378_v53 }
0x11e0   :  { %8769 = vmatprep.mubr.bf16.mxu0 %v4977_v54  ;;  %v9384_v54 = vld [vmem:[#allocation11 + $0x4c0] sm:$0xff]  }
0x11e1   :  { %8770 = vmatmul.mubr.bf16.gmra.mrb[164].mxu0 %v4978_v7 }
0x11e2   :  { %v8743_v52 = vpop.f32.mrb[168].mxu1  ;;  %8786 = vmatpush3.bf16.msra.mxu0 %v9378_v53  ;;  %v8711_v44 = vpop.f32.mrb[152].mxu0 }
0x11e3   :  { %v4944_v57 = vpop.f32.mrb[169].mxu1  ;;  %8787 = vmatprep.subr.bf16.mxu0 %v9379_v4  ;;  %v4839_v50 = vpop.f32.mrb[153].mxu0 }
0x11e4   :  { %v8744_v47 = vpop.f32.mrb[170].mxu1  ;;  %v8712_v25 = vpop.f32.mrb[154].mxu0 }
0x11e5   :  { %v4980_v11 = vpack.c.bf16 %v8744_v47, %v8743_v52  ;;  %v4947_v24 = vpop.f32.mrb[171].mxu1  ;;  %v4875_v1 = vpack.c.bf16 %v8712_v25, %v8711_v44  ;;  %v4842_v27 = vpop.f32.mrb[155].mxu0  ;;  %v9386_v52 = vld [vmem:[#allocation11 + $0x4d0] sm:$0xff]   ;;  %v9387_v44 = vld [vmem:[#allocation11 + $0x4d8] sm:$0xff]  }
0x11e6   :  { %v4979_v15 = vpack.c.bf16 %v4947_v24, %v4944_v57  ;;  %8788 = vmatpush3.bf16.msra.mxu0 %v9379_v4  ;;  %v4874_v9 = vpack.c.bf16 %v4842_v27, %v4839_v50  ;;  %v9385_v4 = vld [vmem:[#allocation11 + $0x4c8] sm:$0xff]  }
0x11e7   :  { %8789 = vmatprep.subr.bf16.mxu0 %v9380_v46 }
0x11e8   :  { %8773 = vmatprep.mubr.bf16.mxu0 %v4979_v15 }
0x11e9   :  { %8774 = vmatmul.mubr.bf16.gmra.mrb[168].mxu0 %v4980_v11 }
0x11ea   :  { %v8747_v63 = vpop.f32.mrb[172].mxu1  ;;  %8790 = vmatpush3.bf16.msra.mxu0 %v9380_v46  ;;  %v8715_v14 = vpop.f32.mrb[156].mxu0 }
0x11eb   :  { %v4960_v40 = vpop.f32.mrb[173].mxu1  ;;  %8791 = vmatprep.subr.bf16.mxu0 %v9381_v42  ;;  %v4855_v60 = vpop.f32.mrb[157].mxu0 }
0x11ec   :  { %v8748_v41 = vpop.f32.mrb[174].mxu1  ;;  %v8716_v29 = vpop.f32.mrb[158].mxu0 }
0x11ed   :  { %v4982_v19 = vpack.c.bf16 %v8748_v41, %v8747_v63  ;;  %v4963_v53 = vpop.f32.mrb[175].mxu1  ;;  %v4877_v39 = vpack.c.bf16 %v8716_v29, %v8715_v14  ;;  %v4858_v16 = vpop.f32.mrb[159].mxu0 }
0x11ee   :  { %v4981_v7 = vpack.c.bf16 %v4963_v53, %v4960_v40  ;;  %8792 = vmatpush3.bf16.msra.mxu0 %v9381_v42  ;;  %v4876_v6 = vpack.c.bf16 %v4858_v16, %v4855_v60 }
0x11ef   :  { %8793 = vmatprep.subr.bf16.mxu0 %v9382_v36 }
0x11f0   :  { %8777 = vmatprep.mubr.bf16.mxu0 %v4981_v7 }
0x11f1   :  { %8778 = vmatmul.mubr.bf16.gmra.mrb[172].mxu0 %v4982_v19 }
0x11f2   :  { %8794 = vmatpush3.bf16.msra.mxu0 %v9382_v36  ;;  %8797 = vmatprep.mubr.bf16.mxu0 %v4870_v35  ;;  %v9396_v35 = vld [vmem:[#allocation11 + $0x520] sm:$0xff]  }
0x11f3   :  { %8795 = vmatprep.subr.bf16.mxu0 %v9383_v2 }
0x11f6   :  { %8796 = vmatpush3.bf16.msra.mxu0 %v9383_v2 }
0x11f7   :  { %8813 = vmatprep.subr.bf16.mxu0 %v9384_v54 }
0x11f9   :  { %8798 = vmatmul.mubr.bf16.vlgmr.msra.gmra.mrb[160].mxu0 %v4871_v62  ;;  %v9394_v62 = vld [vmem:[#allocation11 + $0x510] sm:$0xff]  }
0x11fa   :  { %8814 = vmatpush3.bf16.msra.mxu0 %v9384_v54  ;;  %8801 = vmatprep.mubr.bf16.mxu0 %v4872_v26 }
0x11fb   :  { %8815 = vmatprep.subr.bf16.mxu0 %v9385_v4  ;;  %8849 = vmatprep.subr.bf16.mxu1 %v9394_v62 }
0x11fc   :  { %8850 = vmatpush3.bf16.msra.mxu1 %v9394_v62 }
0x11fe   :  { %8816 = vmatpush3.bf16.msra.mxu0 %v9385_v4 }
0x11ff   :  { %8817 = vmatprep.subr.bf16.mxu0 %v9386_v52 }
0x1201   :  { %8802 = vmatmul.mubr.bf16.gmra.mrb[164].mxu0 %v4873_v34 }
0x1202   :  { %8818 = vmatpush3.bf16.msra.mxu0 %v9386_v52  ;;  %8805 = vmatprep.mubr.bf16.mxu0 %v4874_v9 }
0x1203   :  { %8819 = vmatprep.subr.bf16.mxu0 %v9387_v44 }
0x1206   :  { %8820 = vmatpush3.bf16.msra.mxu0 %v9387_v44 }
0x1207   :  { %8821 = vmatprep.subr.bf16.mxu0 %v9388_v31 }
0x1209   :  { %8806 = vmatmul.mubr.bf16.gmra.mrb[168].mxu0 %v4875_v1 }
0x120a   :  { %8822 = vmatpush3.bf16.msra.mxu0 %v9388_v31  ;;  %8809 = vmatprep.mubr.bf16.mxu0 %v4876_v6 }
0x120b   :  { %8823 = vmatprep.subr.bf16.mxu0 %v9389_v5 }
0x120e   :  { %8824 = vmatpush3.bf16.msra.mxu0 %v9389_v5 }
0x120f   :  { %8825 = vmatprep.subr.bf16.mxu0 %v9390_v59 }
0x1211   :  { %8810 = vmatmul.mubr.bf16.gmra.mrb[172].mxu0 %v4877_v39 }
0x1212   :  { %8826 = vmatpush3.bf16.msra.mxu0 %v9390_v59  ;;  %8829 = vmatprep.mubr.bf16.mxu0 %v10861_v45  ;;  %v9395_v45 = vld [vmem:[#allocation11 + $0x518] sm:$0xff]  }
0x1213   :  { %8827 = vmatprep.subr.bf16.mxu0 %v9391_v23  ;;  %8851 = vmatprep.subr.bf16.mxu1 %v9395_v45 }
0x1214   :  { %8852 = vmatpush3.bf16.msra.mxu1 %v9395_v45 }
0x1215   :  { %8853 = vmatprep.subr.bf16.mxu1 %v9396_v35 }
0x1216   :  { %8828 = vmatpush3.bf16.msra.mxu0 %v9391_v23 }
0x1218   :  { %8854 = vmatpush3.bf16.msra.mxu1 %v9396_v35 }
0x1219   :  { %8830 = vmatmul.mubr.bf16.vlgmr.msra.gmra.mrb[160].mxu0 %v10859_v49  ;;  %v9397_v49 = vld [vmem:[#allocation11 + $0x528] sm:$0xff]  }
0x121a   :  { %8833 = vmatprep.mubr.bf16.mxu0 %v10873_v12  ;;  %8855 = vmatprep.subr.bf16.mxu1 %v9397_v49  ;;  %v9399_v12 = vld [vmem:[#allocation11 + $0x538] sm:$0xff]  }
0x121c   :  { %8856 = vmatpush3.bf16.msra.mxu1 %v9397_v49 }
0x1221   :  { %8834 = vmatmul.mubr.bf16.gmra.mrb[164].mxu0 %v10871_v3  ;;  %v9398_v3 = vld [vmem:[#allocation11 + $0x530] sm:$0xff]  }
0x1222   :  { %8837 = vmatprep.mubr.bf16.mxu0 %v10881_v13  ;;  %8857 = vmatprep.subr.bf16.mxu1 %v9398_v3 }
0x1223   :  { %8858 = vmatpush3.bf16.msra.mxu1 %v9398_v3 }
0x1224   :  { %8859 = vmatprep.subr.bf16.mxu1 %v9399_v12 }
0x1227   :  { %8860 = vmatpush3.bf16.msra.mxu1 %v9399_v12 }
0x1229   :  { %8838 = vmatmul.mubr.bf16.gmra.mrb[168].mxu0 %v10879_v33  ;;  %v11106_v33 = vld [vmem:[%s11315_s6 + $0xd] ss:$0 sm:$0xff] }
0x122a   :  { %8841 = vmatprep.mubr.bf16.mxu0 %v10889_v61 }
0x1231   :  { %8842 = vmatmul.mubr.bf16.gmra.mrb[172].mxu0 %v10887_v17 }
0x12ec   :  { %v8831_v13 = vpop.f32.mrb[160].mxu0 }
0x12ed   :  { %v5495_v17 = vadd.f32 %v8831_v13, %v11106_v33  ;;  %v5406_v61 = vpop.f32.mrb[161].mxu0 }
0x12ee   :  { %v5493_v32 = vadd.f32 %v11106_v33, %v5406_v61  ;;  %v8832_v51 = vpop.f32.mrb[162].mxu0 }
0x12ef   :  { %v5511_v34 = vmul.f32 0.5, %v5495_v17  ;;  %v5496_v26 = vadd.f32 %v8832_v51, %v11106_v33  ;;  %v5409_v57 = vpop.f32.mrb[163].mxu0 }
0x12f0   :  { %v5509_v46 = vmul.f32 0.5, %v5493_v32  ;;  %v5494_v50 = vadd.f32 %v11106_v33, %v5409_v57 }
0x12f1   :  { %9728 = vtanh.f32 %v5511_v34  ;;  %v5512_v47 = vmul.f32 0.5, %v5496_v26 }
0x12f2   :  { %9730 = vtanh.f32 %v5509_v46  ;;  %v5510_v25 = vmul.f32 0.5, %v5494_v50 }
0x12f3   :  { %9732 = vtanh.f32 %v5512_v47 }
0x12f4   :  { %9734 = vtanh.f32 %v5510_v25  ;;  %v8835_v11 = vpop.f32.mrb[164].mxu0 }
0x12f5   :  { %v5499_v24 = vadd.f32 %v8835_v11, %v11106_v33  ;;  %v5422_v1 = vpop.f32.mrb[165].mxu0 }
0x12f6   :  { %v5497_v27 = vadd.f32 %v11106_v33, %v5422_v1  ;;  %v8836_v15 = vpop.f32.mrb[166].mxu0 }
0x12f7   :  { %v5515_v9 = vmul.f32 0.5, %v5499_v24  ;;  %v5500_v42 = vadd.f32 %v8836_v15, %v11106_v33  ;;  %v5425_v63 = vpop.f32.mrb[167].mxu0 }
0x12f8   :  { %v5513_v14 = vmul.f32 0.5, %v5497_v27  ;;  %v5498_v40 = vadd.f32 %v11106_v33, %v5425_v63 }
0x12f9   :  { %9736 = vtanh.f32 %v5515_v9  ;;  %v5516_v36 = vmul.f32 0.5, %v5500_v42 }
0x12fa   :  { %9738 = vtanh.f32 %v5513_v14  ;;  %v5514_v60 = vmul.f32 0.5, %v5498_v40 }
0x12fb   :  { %v9729_v41 = vpop.eup %9728  ;;  %9740 = vtanh.f32 %v5516_v36 }
0x12fc   :  { %v9731_v29 = vpop.eup %9730  ;;  %v5543_v19 = vadd.f32 1.0, %v9729_v41  ;;  %9742 = vtanh.f32 %v5514_v60  ;;  %v8839_v53 = vpop.f32.mrb[168].mxu0 }
0x12fd   :  { %v9733_v39 = vpop.eup %9732  ;;  %v5541_v16 = vadd.f32 1.0, %v9731_v29  ;;  %v5503_v7 = vadd.f32 %v8839_v53, %v11106_v33  ;;  %v5438_v6 = vpop.f32.mrb[169].mxu0 }
0x12fe   :  { %v9735_v2 = vpop.eup %9734  ;;  %v5544_v54 = vadd.f32 1.0, %v9733_v39  ;;  %v5501_v4 = vadd.f32 %v11106_v33, %v5438_v6  ;;  %v8840_v52 = vpop.f32.mrb[170].mxu0  ;;  %v5559_v23 = vmul.f32 %v5543_v19, %v5511_v34 }
0x12ff   :  { %v5542_v44 = vadd.f32 1.0, %v9735_v2  ;;  %v5519_v31 = vmul.f32 0.5, %v5503_v7  ;;  %v5504_v5 = vadd.f32 %v8840_v52, %v11106_v33  ;;  %v5441_v59 = vpop.f32.mrb[171].mxu0  ;;  %v5557_v49 = vmul.f32 %v5541_v16, %v5509_v46 }
0x1300   :  { %v5560_v62 = vmul.f32 %v5544_v54, %v5512_v47  ;;  %v5517_v45 = vmul.f32 0.5, %v5501_v4  ;;  %v5502_v35 = vadd.f32 %v11106_v33, %v5441_v59 }
0x1301   :  { %v5558_v3 = vmul.f32 %v5542_v44, %v5510_v25  ;;  %9744 = vtanh.f32 %v5519_v31  ;;  %v5520_v12 = vmul.f32 0.5, %v5504_v5 }
0x1302   :  { %v5574_v13 = vpack.c.bf16 %v5560_v62, %v5559_v23  ;;  %9746 = vtanh.f32 %v5517_v45  ;;  %v5518_v17 = vmul.f32 0.5, %v5502_v35 }
0x1303   :  { %v9737_v61 = vpop.eup %9736  ;;  %9748 = vtanh.f32 %v5520_v12  ;;  %v5573_v32 = vpack.c.bf16 %v5558_v3, %v5557_v49 }
0x1304   :  { %v9739_v51 = vpop.eup %9738  ;;  %v5547_v26 = vadd.f32 1.0, %v9737_v61  ;;  %9750 = vtanh.f32 %v5518_v17  ;;  %v8843_v57 = vpop.f32.mrb[172].mxu0 }
0x1305   :  { %v9741_v50 = vpop.eup %9740  ;;  %v5545_v34 = vadd.f32 1.0, %v9739_v51  ;;  %v5507_v47 = vadd.f32 %v8843_v57, %v11106_v33  ;;  %v5454_v11 = vpop.f32.mrb[173].mxu0  ;;  %8861 = vmatprep.mubr.bf16.mxu1 %v5573_v32 }
0x1306   :  { %v9743_v46 = vpop.eup %9742  ;;  %v5548_v25 = vadd.f32 1.0, %v9741_v50  ;;  %v5505_v24 = vadd.f32 %v11106_v33, %v5454_v11  ;;  %v8844_v1 = vpop.f32.mrb[174].mxu0  ;;  %8862 = vmatmul.mubr.bf16.vlgmr.msra.gmra.mrb[176].mxu1 %v5574_v13  ;;  %v5563_v40 = vmul.f32 %v5547_v26, %v5515_v9 }
0x1307   :  { %v5546_v27 = vadd.f32 1.0, %v9743_v46  ;;  %v5523_v15 = vmul.f32 0.5, %v5507_v47  ;;  %v5508_v42 = vadd.f32 %v8844_v1, %v11106_v33  ;;  %v5457_v63 = vpop.f32.mrb[175].mxu0  ;;  %v5561_v53 = vmul.f32 %v5545_v34, %v5513_v14 }
0x1308   :  { %v5564_v41 = vmul.f32 %v5548_v25, %v5516_v36  ;;  %v5521_v29 = vmul.f32 0.5, %v5505_v24  ;;  %v5506_v19 = vadd.f32 %v11106_v33, %v5457_v63 }
0x1309   :  { %v5562_v39 = vmul.f32 %v5546_v27, %v5514_v60  ;;  %9752 = vtanh.f32 %v5523_v15  ;;  %v5524_v16 = vmul.f32 0.5, %v5508_v42 }
0x130a   :  { %9754 = vtanh.f32 %v5521_v29  ;;  %v5522_v7 = vmul.f32 0.5, %v5506_v19  ;;  %v5576_v6 = vpack.c.bf16 %v5564_v41, %v5563_v40 }
0x130b   :  { %v9745_v2 = vpop.eup %9744  ;;  %9756 = vtanh.f32 %v5524_v16  ;;  %v5575_v54 = vpack.c.bf16 %v5562_v39, %v5561_v53 }
0x130c   :  { %v9747_v4 = vpop.eup %9746  ;;  %v5551_v52 = vadd.f32 1.0, %v9745_v2  ;;  %9758 = vtanh.f32 %v5522_v7 }
0x130d   :  { %v9749_v44 = vpop.eup %9748  ;;  %v5549_v5 = vadd.f32 1.0, %v9747_v4  ;;  %8865 = vmatprep.mubr.bf16.mxu1 %v5575_v54 }
0x130e   :  { %v9751_v9 = vpop.eup %9750  ;;  %v5552_v36 = vadd.f32 1.0, %v9749_v44  ;;  %8866 = vmatmul.mubr.bf16.gmra.mrb[180].mxu1 %v5576_v6  ;;  %v5567_v14 = vmul.f32 %v5551_v52, %v5519_v31 }
0x130f   :  { %v5550_v33 = vadd.f32 1.0, %v9751_v9  ;;  %v5565_v59 = vmul.f32 %v5549_v5, %v5517_v45  ;;  %v9936_v45 = vld [vmem:[#allocation7] sm:$0xff]  }
0x1310   :  { %v5568_v60 = vmul.f32 %v5552_v36, %v5520_v12 }
0x1311   :  { %v5566_v23 = vmul.f32 %v5550_v33, %v5518_v17  ;;  %v11127_v17 = vld [vmem:[%s11315_s6 + $0xe] ss:$0 sm:$0xff] }
0x1312   :  { %v5578_v62 = vpack.c.bf16 %v5568_v60, %v5567_v14 }
0x1313   :  { %v9753_v35 = vpop.eup %9752  ;;  %v5577_v49 = vpack.c.bf16 %v5566_v23, %v5565_v59 }
0x1314   :  { %v9755_v3 = vpop.eup %9754  ;;  %v5555_v13 = vadd.f32 1.0, %v9753_v35 }
0x1315   :  { %v9757_v61 = vpop.eup %9756  ;;  %v5553_v32 = vadd.f32 1.0, %v9755_v3  ;;  %8869 = vmatprep.mubr.bf16.mxu1 %v5577_v49 }
0x1316   :  { %v9759_v51 = vpop.eup %9758  ;;  %v5556_v26 = vadd.f32 1.0, %v9757_v61  ;;  %8870 = vmatmul.mubr.bf16.gmra.mrb[184].mxu1 %v5578_v62  ;;  %v5571_v50 = vmul.f32 %v5555_v13, %v5523_v15 }
0x1317   :  { %v5554_v57 = vadd.f32 1.0, %v9759_v51  ;;  %v5569_v47 = vmul.f32 %v5553_v32, %v5521_v29 }
0x1318   :  { %v5572_v34 = vmul.f32 %v5556_v26, %v5524_v16 }
0x1319   :  { %v5570_v11 = vmul.f32 %v5554_v57, %v5522_v7 }
0x131a   :  { %v5580_v31 = vpack.c.bf16 %v5572_v34, %v5571_v50 }
0x131b   :  { %v5579_v12 = vpack.c.bf16 %v5570_v11, %v5569_v47 }
0x131d   :  { %8873 = vmatprep.mubr.bf16.mxu1 %v5579_v12 }
0x131e   :  { %8874 = vmatmul.mubr.bf16.gmra.mrb[188].mxu1 %v5580_v31 }
0x131f   :  { %8893 = vmatprep.mubr.bf16.mxu1 %v9936_v45 }
0x13d9   :  { %v8863_v46 = vpop.f32.mrb[176].mxu1 }
0x13da   :  { %v5697_v25 = vadd.f32 %v8863_v46, %v11127_v17  ;;  %v5688_v24 = vpop.f32.mrb[177].mxu1 }
0x13db   :  { %v5689_v1 = vadd.f32 %v11127_v17, %v5688_v24  ;;  %v8864_v27 = vpop.f32.mrb[178].mxu1 }
0x13dc   :  { %v5753_v15 = vmul.f32 0.5, %v5697_v25  ;;  %v5700_v42 = vadd.f32 %v8864_v27, %v11127_v17  ;;  %v5691_v63 = vpop.f32.mrb[179].mxu1 }
0x13dd   :  { %v5751_v40 = vmul.f32 0.5, %v5689_v1  ;;  %v5692_v41 = vadd.f32 %v11127_v17, %v5691_v63 }
0x13de   :  { %9760 = vtanh.f32 %v5753_v15  ;;  %v5754_v29 = vmul.f32 0.5, %v5700_v42 }
0x13df   :  { %9762 = vtanh.f32 %v5751_v40  ;;  %v5752_v19 = vmul.f32 0.5, %v5692_v41 }
0x13e0   :  { %9764 = vtanh.f32 %v5754_v29 }
0x13e1   :  { %9766 = vtanh.f32 %v5752_v19  ;;  %v8867_v53 = vpop.f32.mrb[180].mxu1 }
0x13e2   :  { %v5713_v39 = vadd.f32 %v8867_v53, %v11127_v17  ;;  %v5704_v16 = vpop.f32.mrb[181].mxu1 }
0x13e3   :  { %v5705_v7 = vadd.f32 %v11127_v17, %v5704_v16  ;;  %v8868_v6 = vpop.f32.mrb[182].mxu1 }
0x13e4   :  { %v5757_v2 = vmul.f32 0.5, %v5713_v39  ;;  %v5716_v54 = vadd.f32 %v8868_v6, %v11127_v17  ;;  %v5707_v4 = vpop.f32.mrb[183].mxu1 }
0x13e5   :  { %v5755_v52 = vmul.f32 0.5, %v5705_v7  ;;  %v5708_v44 = vadd.f32 %v11127_v17, %v5707_v4 }
0x13e6   :  { %9768 = vtanh.f32 %v5757_v2  ;;  %v5758_v5 = vmul.f32 0.5, %v5716_v54 }
0x13e7   :  { %9770 = vtanh.f32 %v5755_v52  ;;  %v5756_v9 = vmul.f32 0.5, %v5708_v44 }
0x13e8   :  { %v9761_v36 = vpop.eup %9760  ;;  %9772 = vtanh.f32 %v5758_v5 }
0x13e9   :  { %v9763_v33 = vpop.eup %9762  ;;  %v5785_v14 = vadd.f32 1.0, %v9761_v36  ;;  %9774 = vtanh.f32 %v5756_v9  ;;  %v8871_v60 = vpop.f32.mrb[184].mxu1 }
0x13ea   :  { %v9765_v59 = vpop.eup %9764  ;;  %v5783_v23 = vadd.f32 1.0, %v9763_v33  ;;  %v5729_v62 = vadd.f32 %v8871_v60, %v11127_v17  ;;  %v5720_v35 = vpop.f32.mrb[185].mxu1 }
0x13eb   :  { %v9767_v49 = vpop.eup %9766  ;;  %v5786_v3 = vadd.f32 1.0, %v9765_v59  ;;  %v5721_v13 = vadd.f32 %v11127_v17, %v5720_v35  ;;  %v8872_v61 = vpop.f32.mrb[186].mxu1  ;;  %v5801_v50 = vmul.f32 %v5785_v14, %v5753_v15 }
0x13ec   :  { %v5784_v32 = vadd.f32 1.0, %v9767_v49  ;;  %v5761_v51 = vmul.f32 0.5, %v5729_v62  ;;  %v5732_v26 = vadd.f32 %v8872_v61, %v11127_v17  ;;  %v5723_v57 = vpop.f32.mrb[187].mxu1  ;;  %v5799_v31 = vmul.f32 %v5783_v23, %v5751_v40 }
0x13ed   :  { %v5802_v34 = vmul.f32 %v5786_v3, %v5754_v29  ;;  %v5759_v47 = vmul.f32 0.5, %v5721_v13  ;;  %v5724_v11 = vadd.f32 %v11127_v17, %v5723_v57 }
0x13ee   :  { %v5800_v12 = vmul.f32 %v5784_v32, %v5752_v19  ;;  %9776 = vtanh.f32 %v5761_v51  ;;  %v5762_v45 = vmul.f32 0.5, %v5732_v26 }
0x13ef   :  { %9778 = vtanh.f32 %v5759_v47  ;;  %v5760_v46 = vmul.f32 0.5, %v5724_v11  ;;  %v5816_v25 = vpack.c.bf16 %v5802_v34, %v5801_v50 }
0x13f0   :  { %v9769_v24 = vpop.eup %9768  ;;  %9780 = vtanh.f32 %v5762_v45  ;;  %v5815_v1 = vpack.c.bf16 %v5800_v12, %v5799_v31 }
0x13f1   :  { %v9771_v27 = vpop.eup %9770  ;;  %v5789_v42 = vadd.f32 1.0, %v9769_v24  ;;  %9782 = vtanh.f32 %v5760_v46  ;;  %v8875_v63 = vpop.f32.mrb[188].mxu1 }
0x13f2   :  { %v9773_v41 = vpop.eup %9772  ;;  %v5787_v15 = vadd.f32 1.0, %v9771_v27  ;;  %v5745_v29 = vadd.f32 %v8875_v63, %v11127_v17  ;;  %v5736_v53 = vpop.f32.mrb[189].mxu1  ;;  %8877 = vmatprep.subr.bf16.mxu1 %v5815_v1 }
0x13f3   :  { %v9775_v40 = vpop.eup %9774  ;;  %v5790_v19 = vadd.f32 1.0, %v9773_v41  ;;  %v5737_v39 = vadd.f32 %v11127_v17, %v5736_v53  ;;  %v8876_v16 = vpop.f32.mrb[190].mxu1  ;;  %8878 = vmatpush3.bf16.msra.mxu1 %v5815_v1  ;;  %v5805_v44 = vmul.f32 %v5789_v42, %v5757_v2  ;;  %v9401_v53 = vld [vmem:[#allocation11 + $0x548] sm:$0xff]  }
0x13f4   :  { %v5788_v7 = vadd.f32 1.0, %v9775_v40  ;;  %v5765_v6 = vmul.f32 0.5, %v5745_v29  ;;  %v5748_v54 = vadd.f32 %v8876_v16, %v11127_v17  ;;  %v5739_v4 = vpop.f32.mrb[191].mxu1  ;;  %8879 = vmatprep.subr.bf16.mxu1 %v5816_v25  ;;  %v5803_v60 = vmul.f32 %v5787_v15, %v5755_v52  ;;  %v9400_v29 = vld [vmem:[#allocation11 + $0x540] sm:$0xff]   ;;  %v9937_v40 = vld [vmem:[#allocation7 + $0x8] sm:$0xff]   ;;  %v9403_v16 = vld [vmem:[#allocation11 + $0x558] sm:$0xff]  }
0x13f5   :  { %v5806_v36 = vmul.f32 %v5790_v19, %v5758_v5  ;;  %v5763_v33 = vmul.f32 0.5, %v5737_v39  ;;  %v5740_v14 = vadd.f32 %v11127_v17, %v5739_v4  ;;  %v9938_v19 = vld [vmem:[#allocation7 + $0x10] sm:$0xff]   ;;  %v9405_v4 = vld [vmem:[#allocation11 + $0x568] sm:$0xff]  }
0x13f6   :  { %v5804_v59 = vmul.f32 %v5788_v7, %v5756_v9  ;;  %9784 = vtanh.f32 %v5765_v6  ;;  %v5766_v23 = vmul.f32 0.5, %v5748_v54  ;;  %v9402_v39 = vld [vmem:[#allocation11 + $0x550] sm:$0xff]   ;;  %v9939_v7 = vld [vmem:[#allocation7 + $0x18] sm:$0xff]   ;;  %v9404_v54 = vld [vmem:[#allocation11 + $0x560] sm:$0xff]  }
0x13f7   :  { %9786 = vtanh.f32 %v5763_v33  ;;  %v5764_v62 = vmul.f32 0.5, %v5740_v14  ;;  %8880 = vmatpush3.bf16.msra.mxu1 %v5816_v25  ;;  %v5818_v35 = vpack.c.bf16 %v5806_v36, %v5805_v44  ;;  %v9941_v44 = vld [vmem:[#allocation7 + $0x28] sm:$0xff]   ;;  %v9942_v36 = vld [vmem:[#allocation7 + $0x30] sm:$0xff]  }
0x13f8   :  { %v9777_v49 = vpop.eup %9776  ;;  %9788 = vtanh.f32 %v5766_v23  ;;  %v5817_v3 = vpack.c.bf16 %v5804_v59, %v5803_v60  ;;  %v9406_v14 = vld [vmem:[#allocation11 + $0x570] sm:$0xff]   ;;  %v9407_v60 = vld [vmem:[#allocation11 + $0x578] sm:$0xff]   ;;  %v9408_v59 = vld [vmem:[#allocation11 + $0x580] sm:$0xff]  }
0x13f9   :  { %v9779_v13 = vpop.eup %9778  ;;  %v5793_v61 = vadd.f32 1.0, %v9777_v49  ;;  %9790 = vtanh.f32 %v5764_v62  ;;  %8941 = vmatprep.subr.bf16.mxu0 %v9408_v59 }
0x13fa   :  { %v9781_v32 = vpop.eup %9780  ;;  %v5791_v2 = vadd.f32 1.0, %v9779_v13  ;;  %8881 = vmatprep.subr.bf16.mxu1 %v5817_v3  ;;  %8942 = vmatpush3.bf16.msra.mxu0 %v9408_v59 }
0x13fb   :  { %v9783_v5 = vpop.eup %9782  ;;  %v5794_v26 = vadd.f32 1.0, %v9781_v32  ;;  %8882 = vmatpush3.bf16.msra.mxu1 %v5817_v3  ;;  %v5809_v52 = vmul.f32 %v5793_v61, %v5761_v51 }
0x13fc   :  { %v5792_v17 = vadd.f32 1.0, %v9783_v5  ;;  %8883 = vmatprep.subr.bf16.mxu1 %v5818_v35  ;;  %v5807_v57 = vmul.f32 %v5791_v2, %v5759_v47 }
0x13fd   :  { %v5810_v9 = vmul.f32 %v5794_v26, %v5762_v45 }
0x13fe   :  { %v5808_v50 = vmul.f32 %v5792_v17, %v5760_v46 }
0x13ff   :  { %8884 = vmatpush3.bf16.msra.mxu1 %v5818_v35  ;;  %v5820_v34 = vpack.c.bf16 %v5810_v9, %v5809_v52 }
0x1400   :  { %v9785_v11 = vpop.eup %9784  ;;  %v5819_v31 = vpack.c.bf16 %v5808_v50, %v5807_v57 }
0x1401   :  { %v9787_v12 = vpop.eup %9786  ;;  %v5797_v25 = vadd.f32 1.0, %v9785_v11 }
0x1402   :  { %v9789_v24 = vpop.eup %9788  ;;  %v5795_v1 = vadd.f32 1.0, %v9787_v12  ;;  %8885 = vmatprep.subr.bf16.mxu1 %v5819_v31 }
0x1403   :  { %v9791_v27 = vpop.eup %9790  ;;  %v5798_v42 = vadd.f32 1.0, %v9789_v24  ;;  %8886 = vmatpush3.bf16.msra.mxu1 %v5819_v31  ;;  %v5813_v41 = vmul.f32 %v5797_v25, %v5765_v6  ;;  %v9940_v6 = vld [vmem:[#allocation7 + $0x20] sm:$0xff]  }
0x1404   :  { %v5796_v63 = vadd.f32 1.0, %v9791_v27  ;;  %8887 = vmatprep.subr.bf16.mxu1 %v5820_v34  ;;  %v5811_v51 = vmul.f32 %v5795_v1, %v5763_v33  ;;  %v9943_v33 = vld [vmem:[#allocation7 + $0x38] sm:$0xff]  }
0x1405   :  { %v5814_v15 = vmul.f32 %v5798_v42, %v5766_v23  ;;  %v9409_v23 = vld [vmem:[#allocation11 + $0x588] sm:$0xff]  }
0x1406   :  { %v5812_v45 = vmul.f32 %v5796_v63, %v5764_v62  ;;  %8943 = vmatprep.subr.bf16.mxu0 %v9409_v23 }
0x1407   :  { %8888 = vmatpush3.bf16.msra.mxu1 %v5820_v34  ;;  %v5822_v47 = vpack.c.bf16 %v5814_v15, %v5813_v41  ;;  %8944 = vmatpush3.bf16.msra.mxu0 %v9409_v23 }
0x1408   :  { %v5821_v46 = vpack.c.bf16 %v5812_v45, %v5811_v51  ;;  %v9411_v45 = vld [vmem:[#allocation11 + $0x598] sm:$0xff]  }
0x140a   :  { %8889 = vmatprep.subr.bf16.mxu1 %v5821_v46 }
0x140b   :  { %8890 = vmatpush3.bf16.msra.mxu1 %v5821_v46  ;;  %v9416_v46 = vld [vmem:[#allocation11 + $0x5c0] sm:$0xff]  }
0x140c   :  { %8891 = vmatprep.subr.bf16.mxu1 %v5822_v47 }
0x140f   :  { %8892 = vmatpush3.bf16.msra.mxu1 %v5822_v47  ;;  %v9415_v47 = vld [vmem:[#allocation11 + $0x5b8] sm:$0xff]  }
0x1410   :  { %8909 = vmatprep.subr.bf16.mxu1 %v9400_v29 }
0x1412   :  { %8894 = vmatmul.mubr.bf16.vlgmr.msra.gmra.mrb[192].mxu1 %v9937_v40  ;;  %v9419_v40 = vld [vmem:[#allocation11 + $0x5d8] sm:$0xff]  }
0x1413   :  { %8897 = vmatprep.mubr.bf16.mxu1 %v9938_v19  ;;  %8910 = vmatpush3.bf16.msra.mxu1 %v9400_v29  ;;  %v9417_v29 = vld [vmem:[#allocation11 + $0x5c8] sm:$0xff]   ;;  %v9420_v19 = vld [vmem:[#allocation11 + $0x5e0] sm:$0xff]  }
0x1414   :  { %8911 = vmatprep.subr.bf16.mxu1 %v9401_v53 }
0x1417   :  { %8912 = vmatpush3.bf16.msra.mxu1 %v9401_v53  ;;  %v9418_v53 = vld [vmem:[#allocation11 + $0x5d0] sm:$0xff]  }
0x1418   :  { %8913 = vmatprep.subr.bf16.mxu1 %v9402_v39 }
0x141a   :  { %8898 = vmatmul.mubr.bf16.gmra.mrb[196].mxu1 %v9939_v7 }
0x141b   :  { %8901 = vmatprep.mubr.bf16.mxu1 %v9940_v6  ;;  %8914 = vmatpush3.bf16.msra.mxu1 %v9402_v39  ;;  %v9421_v39 = vld [vmem:[#allocation11 + $0x5e8] sm:$0xff]  }
0x141c   :  { %8915 = vmatprep.subr.bf16.mxu1 %v9403_v16 }
0x141f   :  { %8916 = vmatpush3.bf16.msra.mxu1 %v9403_v16  ;;  %v11212_v16 = vld [vmem:[%s11315_s6 + $0xf] ss:$0 sm:$0xff] }
0x1420   :  { %8917 = vmatprep.subr.bf16.mxu1 %v9404_v54 }
0x1422   :  { %8902 = vmatmul.mubr.bf16.gmra.mrb[200].mxu1 %v9941_v44 }
0x1423   :  { %8905 = vmatprep.mubr.bf16.mxu1 %v9942_v36  ;;  %8918 = vmatpush3.bf16.msra.mxu1 %v9404_v54 }
0x1424   :  { %8919 = vmatprep.subr.bf16.mxu1 %v9405_v4 }
0x1427   :  { %8920 = vmatpush3.bf16.msra.mxu1 %v9405_v4 }
0x1428   :  { %8921 = vmatprep.subr.bf16.mxu1 %v9406_v14 }
0x142a   :  { %8906 = vmatmul.mubr.bf16.gmra.mrb[204].mxu1 %v9943_v33 }
0x142b   :  { %8922 = vmatpush3.bf16.msra.mxu1 %v9406_v14 }
0x142c   :  { %8923 = vmatprep.subr.bf16.mxu1 %v9407_v60 }
0x142f   :  { %8924 = vmatpush3.bf16.msra.mxu1 %v9407_v60 }
0x1430   :  { %8973 = vmatprep.subr.bf16.mxu1 %v9416_v46 }
0x14e5   :  { %v8895_v62 = vpop.f32.mrb[192].mxu1 }
0x14e6   :  { %v5857_v35 = vpop.f32.mrb[193].mxu1  ;;  %v11155_v2 = vadd.f32 %v8895_v62, %v10999_v8 }
0x14e7   :  { %v8896_v49 = vpop.f32.mrb[194].mxu1  ;;  %v11149_v61 = vadd.f32 %v5857_v35, %v10990_v37 }
0x14e8   :  { %v11146_v3 = vadd.f32 %v8896_v49, %v10993_v22  ;;  %v5860_v13 = vpop.f32.mrb[195].mxu1 }
0x14e9   :  { %v11152_v32 = vadd.f32 %v5860_v13, %v10996_v43 }
0x14ea   :  { %v5937_v26 = vpack.c.bf16 %v11146_v3, %v11155_v2 }
0x14eb   :  { %v5936_v5 = vpack.c.bf16 %v11152_v32, %v11149_v61 }
0x14ed   :  { %v8899_v17 = vpop.f32.mrb[196].mxu1  ;;  %8925 = vmatprep.mubr.bf16.mxu1 %v5936_v5 }
0x14ee   :  { %v5873_v22 = vpop.f32.mrb[197].mxu1  ;;  %8926 = vmatmul.mubr.bf16.vlgmr.msra.gmra.mrb[208].mxu1 %v5937_v26  ;;  %v11171_v57 = vadd.f32 %v8899_v17, %v11019_v10 }
0x14ef   :  { %v8900_v52 = vpop.f32.mrb[198].mxu1  ;;  %v11165_v43 = vadd.f32 %v5873_v22, %v11010_v38  ;;  %8974 = vmatpush3.bf16.msra.mxu1 %v9416_v46 }
0x14f0   :  { %v11162_v37 = vadd.f32 %v8900_v52, %v11013_v20  ;;  %v5876_v9 = vpop.f32.mrb[199].mxu1  ;;  %8975 = vmatprep.subr.bf16.mxu1 %v9417_v29 }
0x14f1   :  { %v11168_v8 = vadd.f32 %v5876_v9, %v11016_v21 }
0x14f2   :  { %v5939_v34 = vpack.c.bf16 %v11162_v37, %v11171_v57 }
0x14f3   :  { %v5938_v50 = vpack.c.bf16 %v11168_v8, %v11165_v43  ;;  %8976 = vmatpush3.bf16.msra.mxu1 %v9417_v29 }
0x14f4   :  { %8977 = vmatprep.subr.bf16.mxu1 %v9418_v53 }
0x14f5   :  { %v8903_v11 = vpop.f32.mrb[200].mxu1  ;;  %8929 = vmatprep.mubr.bf16.mxu1 %v5938_v50 }
0x14f6   :  { %v5889_v20 = vpop.f32.mrb[201].mxu1  ;;  %8930 = vmatmul.mubr.bf16.gmra.mrb[212].mxu1 %v5939_v34  ;;  %v11187_v25 = vadd.f32 %v8903_v11, %v11039_v55 }
0x14f7   :  { %v8904_v31 = vpop.f32.mrb[202].mxu1  ;;  %v11181_v21 = vadd.f32 %v5889_v20, %v11030_v18  ;;  %8978 = vmatpush3.bf16.msra.mxu1 %v9418_v53 }
0x14f8   :  { %v11178_v38 = vadd.f32 %v8904_v31, %v11033_v30  ;;  %v5892_v12 = vpop.f32.mrb[203].mxu1  ;;  %8979 = vmatprep.subr.bf16.mxu1 %v9419_v40 }
0x14f9   :  { %v11184_v10 = vadd.f32 %v5892_v12, %v11036_v0 }
0x14fa   :  { %v5941_v1 = vpack.c.bf16 %v11178_v38, %v11187_v25 }
0x14fb   :  { %v5940_v24 = vpack.c.bf16 %v11184_v10, %v11181_v21  ;;  %8980 = vmatpush3.bf16.msra.mxu1 %v9419_v40 }
0x14fc   :  { %8981 = vmatprep.subr.bf16.mxu1 %v9420_v19 }
0x14fd   :  { %v8907_v27 = vpop.f32.mrb[204].mxu1  ;;  %8933 = vmatprep.mubr.bf16.mxu1 %v5940_v24 }
0x14fe   :  { %v5905_v30 = vpop.f32.mrb[205].mxu1  ;;  %8934 = vmatmul.mubr.bf16.gmra.mrb[216].mxu1 %v5941_v1  ;;  %v11203_v41 = vadd.f32 %v8907_v27, %v11059_v56  ;;  %v9414_v56 = vld [vmem:[#allocation11 + $0x5b0] sm:$0xff]  }
0x14ff   :  { %v8908_v42 = vpop.f32.mrb[206].mxu1  ;;  %v11197_v0 = vadd.f32 %v5905_v30, %v11050_v58  ;;  %v9412_v58 = vld [vmem:[#allocation11 + $0x5a0] sm:$0xff]   ;;  %8982 = vmatpush3.bf16.msra.mxu1 %v9420_v19 }
0x1500   :  { %v11194_v18 = vadd.f32 %v8908_v42, %v11053_v28  ;;  %v5908_v63 = vpop.f32.mrb[207].mxu1  ;;  %v9410_v28 = vld [vmem:[#allocation11 + $0x590] sm:$0xff]   ;;  %8983 = vmatprep.subr.bf16.mxu1 %v9421_v39 }
0x1501   :  { %v11200_v55 = vadd.f32 %v5908_v63, %v11056_v48  ;;  %8945 = vmatprep.subr.bf16.mxu0 %v9410_v28  ;;  %v9413_v48 = vld [vmem:[#allocation11 + $0x5a8] sm:$0xff]  }
0x1502   :  { %v5943_v51 = vpack.c.bf16 %v11194_v18, %v11203_v41  ;;  %8946 = vmatpush3.bf16.msra.mxu0 %v9410_v28 }
0x1503   :  { %v5942_v15 = vpack.c.bf16 %v11200_v55, %v11197_v0  ;;  %8947 = vmatprep.subr.bf16.mxu0 %v9411_v45  ;;  %8984 = vmatpush3.bf16.msra.mxu1 %v9421_v39 }
0x1505   :  { %8937 = vmatprep.mubr.bf16.mxu1 %v5942_v15 }
0x1506   :  { %8938 = vmatmul.mubr.bf16.gmra.mrb[220].mxu1 %v5943_v51  ;;  %8948 = vmatpush3.bf16.msra.mxu0 %v9411_v45 }
0x1507   :  { %8949 = vmatprep.subr.bf16.mxu0 %v9412_v58 }
0x150a   :  { %8950 = vmatpush3.bf16.msra.mxu0 %v9412_v58 }
0x150b   :  { %8951 = vmatprep.subr.bf16.mxu0 %v9413_v48 }
0x150e   :  { %8952 = vmatpush3.bf16.msra.mxu0 %v9413_v48 }
0x150f   :  { %8953 = vmatprep.subr.bf16.mxu0 %v9414_v56 }
0x1512   :  { %8954 = vmatpush3.bf16.msra.mxu0 %v9414_v56 }
0x1513   :  { %8955 = vmatprep.subr.bf16.mxu0 %v9415_v47 }
0x1516   :  { %8956 = vmatpush3.bf16.msra.mxu0 %v9415_v47 }
0x15c1   :  { %v8927_v7 = vpop.f32.mrb[208].mxu1 }
0x15c2   :  { %v6060_v6 = vadd.f32 %v8927_v7, %v11212_v16  ;;  %v6051_v54 = vpop.f32.mrb[209].mxu1 }
0x15c3   :  { %v6052_v4 = vadd.f32 %v11212_v16, %v6051_v54  ;;  %v8928_v44 = vpop.f32.mrb[210].mxu1 }
0x15c4   :  { %v6116_v36 = vmul.f32 0.5, %v6060_v6  ;;  %v6063_v33 = vadd.f32 %v8928_v44, %v11212_v16  ;;  %v6054_v14 = vpop.f32.mrb[211].mxu1 }
0x15c5   :  { %v6114_v60 = vmul.f32 0.5, %v6052_v4  ;;  %v6055_v59 = vadd.f32 %v11212_v16, %v6054_v14 }
0x15c6   :  { %9792 = vtanh.f32 %v6116_v36  ;;  %v6117_v23 = vmul.f32 0.5, %v6063_v33 }
0x15c7   :  { %9794 = vtanh.f32 %v6114_v60  ;;  %v6115_v62 = vmul.f32 0.5, %v6055_v59 }
0x15c8   :  { %9796 = vtanh.f32 %v6117_v23 }
0x15c9   :  { %9798 = vtanh.f32 %v6115_v62  ;;  %v8931_v35 = vpop.f32.mrb[212].mxu1 }
0x15ca   :  { %v6076_v49 = vadd.f32 %v8931_v35, %v11212_v16  ;;  %v6067_v13 = vpop.f32.mrb[213].mxu1 }
0x15cb   :  { %v6068_v5 = vadd.f32 %v11212_v16, %v6067_v13  ;;  %v8932_v26 = vpop.f32.mrb[214].mxu1 }
0x15cc   :  { %v6120_v17 = vmul.f32 0.5, %v6076_v49  ;;  %v6079_v22 = vadd.f32 %v8932_v26, %v11212_v16  ;;  %v6070_v52 = vpop.f32.mrb[215].mxu1 }
0x15cd   :  { %v6118_v9 = vmul.f32 0.5, %v6068_v5  ;;  %v6071_v50 = vadd.f32 %v11212_v16, %v6070_v52 }
0x15ce   :  { %9800 = vtanh.f32 %v6120_v17  ;;  %v6121_v34 = vmul.f32 0.5, %v6079_v22 }
0x15cf   :  { %9802 = vtanh.f32 %v6118_v9  ;;  %v6119_v11 = vmul.f32 0.5, %v6071_v50 }
0x15d0   :  { %v9793_v20 = vpop.eup %9792  ;;  %9804 = vtanh.f32 %v6121_v34 }
0x15d1   :  { %v9795_v31 = vpop.eup %9794  ;;  %v6148_v12 = vadd.f32 1.0, %v9793_v20  ;;  %9806 = vtanh.f32 %v6119_v11  ;;  %v8935_v24 = vpop.f32.mrb[216].mxu1 }
0x15d2   :  { %v9797_v1 = vpop.eup %9796  ;;  %v6146_v27 = vadd.f32 1.0, %v9795_v31  ;;  %v6092_v30 = vadd.f32 %v8935_v24, %v11212_v16  ;;  %v6083_v42 = vpop.f32.mrb[217].mxu1 }
0x15d3   :  { %v9799_v63 = vpop.eup %9798  ;;  %v6149_v15 = vadd.f32 1.0, %v9797_v1  ;;  %v6084_v51 = vadd.f32 %v11212_v16, %v6083_v42  ;;  %v8936_v28 = vpop.f32.mrb[218].mxu1  ;;  %v6164_v47 = vmul.f32 %v6148_v12, %v6116_v36 }
0x15d4   :  { %v6147_v45 = vadd.f32 1.0, %v9799_v63  ;;  %v6124_v58 = vmul.f32 0.5, %v6092_v30  ;;  %v6095_v48 = vadd.f32 %v8936_v28, %v11212_v16  ;;  %v6086_v56 = vpop.f32.mrb[219].mxu1  ;;  %v6162_v40 = vmul.f32 %v6146_v27, %v6114_v60 }
0x15d5   :  { %v6165_v46 = vmul.f32 %v6149_v15, %v6117_v23  ;;  %v6122_v29 = vmul.f32 0.5, %v6084_v51  ;;  %v6087_v53 = vadd.f32 %v11212_v16, %v6086_v56 }
0x15d6   :  { %v6163_v19 = vmul.f32 %v6147_v45, %v6115_v62  ;;  %9808 = vtanh.f32 %v6124_v58  ;;  %v6125_v39 = vmul.f32 0.5, %v6095_v48 }
0x15d7   :  { %v6179_v7 = vpack.c.bf16 %v6165_v46, %v6164_v47  ;;  %9810 = vtanh.f32 %v6122_v29  ;;  %v6123_v6 = vmul.f32 0.5, %v6087_v53 }
0x15d8   :  { %v9801_v54 = vpop.eup %9800  ;;  %9812 = vtanh.f32 %v6125_v39  ;;  %v6178_v4 = vpack.c.bf16 %v6163_v19, %v6162_v40 }
0x15d9   :  { %v9803_v44 = vpop.eup %9802  ;;  %v6152_v33 = vadd.f32 1.0, %v9801_v54  ;;  %9814 = vtanh.f32 %v6123_v6  ;;  %v8939_v14 = vpop.f32.mrb[220].mxu1 }
0x15da   :  { %v9805_v59 = vpop.eup %9804  ;;  %v6150_v36 = vadd.f32 1.0, %v9803_v44  ;;  %v6108_v23 = vadd.f32 %v8939_v14, %v11212_v16  ;;  %v6099_v35 = vpop.f32.mrb[221].mxu1  ;;  %8957 = vmatprep.mubr.bf16.mxu0 %v6178_v4 }
0x15db   :  { %v9807_v60 = vpop.eup %9806  ;;  %v6153_v62 = vadd.f32 1.0, %v9805_v59  ;;  %v6100_v49 = vadd.f32 %v11212_v16, %v6099_v35  ;;  %v8940_v13 = vpop.f32.mrb[222].mxu1  ;;  %8958 = vmatmul.mubr.bf16.vlgmr.msra.gmra.mrb[176].mxu0 %v6179_v7  ;;  %v6168_v50 = vmul.f32 %v6152_v33, %v6120_v17 }
0x15dc   :  { %v6151_v5 = vadd.f32 1.0, %v9807_v60  ;;  %v6128_v26 = vmul.f32 0.5, %v6108_v23  ;;  %v6111_v22 = vadd.f32 %v8940_v13, %v11212_v16  ;;  %v6102_v52 = vpop.f32.mrb[223].mxu1  ;;  %v6166_v24 = vmul.f32 %v6150_v36, %v6118_v9  ;;  %v9424_v60 = vld [vmem:[#allocation11 + $0x600] sm:$0xff]  }
0x15dd   :  { %v6169_v20 = vmul.f32 %v6153_v62, %v6121_v34  ;;  %v6126_v31 = vmul.f32 0.5, %v6100_v49  ;;  %v6103_v12 = vadd.f32 %v11212_v16, %v6102_v52  ;;  %v9425_v62 = vld [vmem:[#allocation11 + $0x608] sm:$0xff]   ;;  %9005 = vmatprep.subr.bf16.mxu0 %v9424_v60  ;;  %v7302_v49 = vld [vmem:[%s11315_s6 + $0x10] ss:$0 sm:$0xff] }
0x15de   :  { %v6167_v1 = vmul.f32 %v6151_v5, %v6119_v11  ;;  %9816 = vtanh.f32 %v6128_v26  ;;  %v6129_v27 = vmul.f32 0.5, %v6111_v22  ;;  %9006 = vmatpush3.bf16.msra.mxu0 %v9424_v60  ;;  %v9427_v60 = vld [vmem:[#allocation11 + $0x618] sm:$0xff]  }
0x15df   :  { %9818 = vtanh.f32 %v6126_v31  ;;  %v6127_v30 = vmul.f32 0.5, %v6103_v12  ;;  %v6181_v42 = vpack.c.bf16 %v6169_v20, %v6168_v50  ;;  %9007 = vmatprep.subr.bf16.mxu0 %v9425_v62 }
0x15e0   :  { %v9809_v63 = vpop.eup %9808  ;;  %9820 = vtanh.f32 %v6129_v27  ;;  %v6180_v15 = vpack.c.bf16 %v6167_v1, %v6166_v24 }
0x15e1   :  { %v9811_v51 = vpop.eup %9810  ;;  %v6156_v28 = vadd.f32 1.0, %v9809_v63  ;;  %9822 = vtanh.f32 %v6127_v30 }
0x15e2   :  { %v9813_v45 = vpop.eup %9812  ;;  %v6154_v48 = vadd.f32 1.0, %v9811_v51  ;;  %8961 = vmatprep.mubr.bf16.mxu0 %v6180_v15  ;;  %9008 = vmatpush3.bf16.msra.mxu0 %v9425_v62  ;;  %v9428_v62 = vld [vmem:[#allocation11 + $0x620] sm:$0xff]  }
0x15e3   :  { %v9815_v17 = vpop.eup %9814  ;;  %v6157_v34 = vadd.f32 1.0, %v9813_v45  ;;  %8962 = vmatmul.mubr.bf16.gmra.mrb[180].mxu0 %v6181_v42  ;;  %v6172_v9 = vmul.f32 %v6156_v28, %v6124_v58 }
0x15e4   :  { %v6155_v16 = vadd.f32 1.0, %v9815_v17  ;;  %v6170_v56 = vmul.f32 %v6154_v48, %v6122_v29  ;;  %v9422_v29 = vld [vmem:[#allocation11 + $0x5f0] sm:$0xff]  }
0x15e5   :  { %v6173_v11 = vmul.f32 %v6157_v34, %v6125_v39  ;;  %8985 = vmatprep.subr.bf16.mxu1 %v9422_v29 }
0x15e6   :  { %v6171_v47 = vmul.f32 %v6155_v16, %v6123_v6  ;;  %8986 = vmatpush3.bf16.msra.mxu1 %v9422_v29  ;;  %v9423_v6 = vld [vmem:[#allocation11 + $0x5f8] sm:$0xff]  }
0x15e7   :  { %v6183_v46 = vpack.c.bf16 %v6173_v11, %v6172_v9  ;;  %8987 = vmatprep.subr.bf16.mxu1 %v9423_v6 }
0x15e8   :  { %v9817_v53 = vpop.eup %9816  ;;  %v6182_v40 = vpack.c.bf16 %v6171_v47, %v6170_v56 }
0x15e9   :  { %v9819_v19 = vpop.eup %9818  ;;  %v6160_v7 = vadd.f32 1.0, %v9817_v53 }
0x15ea   :  { %v9821_v54 = vpop.eup %9820  ;;  %v6158_v4 = vadd.f32 1.0, %v9819_v19  ;;  %8965 = vmatprep.mubr.bf16.mxu0 %v6182_v40  ;;  %8988 = vmatpush3.bf16.msra.mxu1 %v9423_v6  ;;  %v9426_v6 = vld [vmem:[#allocation11 + $0x610] sm:$0xff]  }
0x15eb   :  { %v9823_v44 = vpop.eup %9822  ;;  %v6161_v33 = vadd.f32 1.0, %v9821_v54  ;;  %8966 = vmatmul.mubr.bf16.gmra.mrb[184].mxu0 %v6183_v46  ;;  %v6176_v59 = vmul.f32 %v6160_v7, %v6128_v26  ;;  %9009 = vmatprep.subr.bf16.mxu0 %v9426_v6 }
0x15ec   :  { %v6159_v14 = vadd.f32 1.0, %v9823_v44  ;;  %v6174_v23 = vmul.f32 %v6158_v4, %v6126_v31  ;;  %9010 = vmatpush3.bf16.msra.mxu0 %v9426_v6 }
0x15ed   :  { %v6177_v36 = vmul.f32 %v6161_v33, %v6129_v27  ;;  %9011 = vmatprep.subr.bf16.mxu0 %v9427_v60 }
0x15ee   :  { %v6175_v35 = vmul.f32 %v6159_v14, %v6127_v30 }
0x15ef   :  { %v6185_v58 = vpack.c.bf16 %v6177_v36, %v6176_v59 }
0x15f0   :  { %v6184_v39 = vpack.c.bf16 %v6175_v35, %v6174_v23  ;;  %9012 = vmatpush3.bf16.msra.mxu0 %v9427_v60 }
0x15f1   :  { %9013 = vmatprep.subr.bf16.mxu0 %v9428_v62 }
0x15f2   :  { %8969 = vmatprep.mubr.bf16.mxu0 %v6184_v39 }
0x15f3   :  { %8970 = vmatmul.mubr.bf16.gmra.mrb[188].mxu0 %v6185_v58 }
0x15f4   :  { %9014 = vmatpush3.bf16.msra.mxu0 %v9428_v62 }
0x16ae   :  { %v8959_v13 = vpop.f32.mrb[176].mxu0 }
0x16af   :  { %v6302_v5 = vadd.f32 %v8959_v13, %v7302_v49  ;;  %v6293_v26 = vpop.f32.mrb[177].mxu0  ;;  %v11252_v13 = vld [vmem:[%s11315_s6 + $0x11] ss:$0 sm:$0xff] }
0x16b0   :  { %v6294_v22 = vadd.f32 %v7302_v49, %v6293_v26  ;;  %v8960_v52 = vpop.f32.mrb[178].mxu0 }
0x16b1   :  { %v6305_v50 = vadd.f32 %v8960_v52, %v7302_v49  ;;  %v6296_v20 = vpop.f32.mrb[179].mxu0  ;;  %v6358_v12 = vadd.f32 %v6302_v5, %v11155_v2 }
0x16b2   :  { %v6297_v31 = vadd.f32 %v7302_v49, %v6296_v20  ;;  %v6356_v1 = vadd.f32 %v6294_v22, %v11149_v61 }
0x16b3   :  { %v6359_v24 = vadd.f32 %v6305_v50, %v11146_v3 }
0x16b4   :  { %v6357_v27 = vadd.f32 %v6297_v31, %v11152_v32 }
0x16b5   :  { %v6373_v30 = vpack.c.bf16 %v6359_v24, %v6358_v12 }
0x16b6   :  { %v8963_v42 = vpop.f32.mrb[180].mxu0  ;;  %v6372_v63 = vpack.c.bf16 %v6357_v27, %v6356_v1 }
0x16b7   :  { %v6318_v15 = vadd.f32 %v8963_v42, %v7302_v49  ;;  %v6309_v51 = vpop.f32.mrb[181].mxu0 }
0x16b8   :  { %v6310_v28 = vadd.f32 %v7302_v49, %v6309_v51  ;;  %v8964_v45 = vpop.f32.mrb[182].mxu0  ;;  %8989 = vmatprep.mubr.bf16.mxu1 %v6372_v63 }
0x16b9   :  { %v6321_v48 = vadd.f32 %v8964_v45, %v7302_v49  ;;  %v6312_v17 = vpop.f32.mrb[183].mxu0  ;;  %8990 = vmatmul.mubr.bf16.vlgmr.msra.gmra.mrb[224].mxu1 %v6373_v30  ;;  %v6362_v2 = vadd.f32 %v6318_v15, %v11171_v57 }
0x16ba   :  { %v6313_v34 = vadd.f32 %v7302_v49, %v6312_v17  ;;  %v6360_v61 = vadd.f32 %v6310_v28, %v11165_v43 }
0x16bb   :  { %v6363_v3 = vadd.f32 %v6321_v48, %v11162_v37 }
0x16bc   :  { %v6361_v32 = vadd.f32 %v6313_v34, %v11168_v8 }
0x16bd   :  { %v6375_v16 = vpack.c.bf16 %v6363_v3, %v6362_v2 }
0x16be   :  { %v8967_v9 = vpop.f32.mrb[184].mxu0  ;;  %v6374_v11 = vpack.c.bf16 %v6361_v32, %v6360_v61 }
0x16bf   :  { %v6334_v56 = vadd.f32 %v8967_v9, %v7302_v49  ;;  %v6325_v47 = vpop.f32.mrb[185].mxu0 }
0x16c0   :  { %v6326_v46 = vadd.f32 %v7302_v49, %v6325_v47  ;;  %v8968_v53 = vpop.f32.mrb[186].mxu0  ;;  %8993 = vmatprep.mubr.bf16.mxu1 %v6374_v11 }
0x16c1   :  { %v6337_v40 = vadd.f32 %v8968_v53, %v7302_v49  ;;  %v6328_v19 = vpop.f32.mrb[187].mxu0  ;;  %8994 = vmatmul.mubr.bf16.gmra.mrb[228].mxu1 %v6375_v16  ;;  %v6366_v57 = vadd.f32 %v6334_v56, %v11187_v25 }
0x16c2   :  { %v6329_v7 = vadd.f32 %v7302_v49, %v6328_v19  ;;  %v6364_v43 = vadd.f32 %v6326_v46, %v11181_v21 }
0x16c3   :  { %v6367_v37 = vadd.f32 %v6337_v40, %v11178_v38 }
0x16c4   :  { %v6365_v8 = vadd.f32 %v6329_v7, %v11184_v10 }
0x16c5   :  { %v6377_v54 = vpack.c.bf16 %v6367_v37, %v6366_v57 }
0x16c6   :  { %v8971_v4 = vpop.f32.mrb[188].mxu0  ;;  %v6376_v44 = vpack.c.bf16 %v6365_v8, %v6364_v43 }
0x16c7   :  { %v6350_v33 = vadd.f32 %v8971_v4, %v7302_v49  ;;  %v6341_v14 = vpop.f32.mrb[189].mxu0 }
0x16c8   :  { %v6342_v59 = vadd.f32 %v7302_v49, %v6341_v14  ;;  %v8972_v36 = vpop.f32.mrb[190].mxu0  ;;  %8997 = vmatprep.mubr.bf16.mxu1 %v6376_v44 }
0x16c9   :  { %v6353_v23 = vadd.f32 %v8972_v36, %v7302_v49  ;;  %v6344_v35 = vpop.f32.mrb[191].mxu0  ;;  %8998 = vmatmul.mubr.bf16.gmra.mrb[232].mxu1 %v6377_v54  ;;  %v6370_v25 = vadd.f32 %v6350_v33, %v11203_v41  ;;  %v9429_v41 = vld [vmem:[#allocation11 + $0x628] sm:$0xff]  }
0x16ca   :  { %v6345_v58 = vadd.f32 %v7302_v49, %v6344_v35  ;;  %v6368_v21 = vadd.f32 %v6342_v59, %v11197_v0  ;;  %9015 = vmatprep.subr.bf16.mxu0 %v9429_v41  ;;  %v9431_v0 = vld [vmem:[#allocation11 + $0x638] sm:$0xff]   ;;  %v9433_v49 = vld [vmem:[#allocation11 + $0x648] sm:$0xff]  }
0x16cb   :  { %v6371_v38 = vadd.f32 %v6353_v23, %v11194_v18  ;;  %9016 = vmatpush3.bf16.msra.mxu0 %v9429_v41  ;;  %v9430_v18 = vld [vmem:[#allocation11 + $0x630] sm:$0xff]  }
0x16cc   :  { %v6369_v10 = vadd.f32 %v6345_v58, %v11200_v55  ;;  %9017 = vmatprep.subr.bf16.mxu0 %v9430_v18  ;;  %v9432_v55 = vld [vmem:[#allocation11 + $0x640] sm:$0xff]  }
0x16cd   :  { %v6379_v39 = vpack.c.bf16 %v6371_v38, %v6370_v25  ;;  %9037 = vmatprep.subr.bf16.mxu1 %v9432_v55 }
0x16ce   :  { %v6378_v29 = vpack.c.bf16 %v6369_v10, %v6368_v21  ;;  %9038 = vmatpush3.bf16.msra.mxu1 %v9432_v55 }
0x16cf   :  { %9018 = vmatpush3.bf16.msra.mxu0 %v9430_v18  ;;  %9039 = vmatprep.subr.bf16.mxu1 %v9433_v49 }
0x16d0   :  { %9001 = vmatprep.mubr.bf16.mxu1 %v6378_v29  ;;  %9019 = vmatprep.subr.bf16.mxu0 %v9431_v0 }
0x16d1   :  { %9002 = vmatmul.mubr.bf16.gmra.mrb[236].mxu1 %v6379_v39 }
0x16d2   :  { %9040 = vmatpush3.bf16.msra.mxu1 %v9433_v49 }
0x16d3   :  { %9020 = vmatpush3.bf16.msra.mxu0 %v9431_v0 }
0x178c   :  { %v8991_v5 = vpop.f32.mrb[224].mxu1 }
0x178d   :  { %v6496_v26 = vadd.f32 %v8991_v5, %v11252_v13  ;;  %v6487_v22 = vpop.f32.mrb[225].mxu1 }
0x178e   :  { %v6488_v52 = vadd.f32 %v11252_v13, %v6487_v22  ;;  %v8992_v50 = vpop.f32.mrb[226].mxu1 }
0x178f   :  { %v6552_v20 = vmul.f32 0.5, %v6496_v26  ;;  %v6499_v31 = vadd.f32 %v8992_v50, %v11252_v13  ;;  %v6490_v12 = vpop.f32.mrb[227].mxu1 }
0x1790   :  { %v6550_v24 = vmul.f32 0.5, %v6488_v52  ;;  %v6491_v1 = vadd.f32 %v11252_v13, %v6490_v12 }
0x1791   :  { %9824 = vtanh.f32 %v6552_v20  ;;  %v6553_v27 = vmul.f32 0.5, %v6499_v31 }
0x1792   :  { %9826 = vtanh.f32 %v6550_v24  ;;  %v6551_v30 = vmul.f32 0.5, %v6491_v1 }
0x1793   :  { %9828 = vtanh.f32 %v6553_v27 }
0x1794   :  { %9830 = vtanh.f32 %v6551_v30  ;;  %v8995_v42 = vpop.f32.mrb[228].mxu1 }
0x1795   :  { %v6512_v63 = vadd.f32 %v8995_v42, %v11252_v13  ;;  %v6503_v15 = vpop.f32.mrb[229].mxu1 }
0x1796   :  { %v6504_v51 = vadd.f32 %v11252_v13, %v6503_v15  ;;  %v8996_v28 = vpop.f32.mrb[230].mxu1 }
0x1797   :  { %v6556_v45 = vmul.f32 0.5, %v6512_v63  ;;  %v6515_v48 = vadd.f32 %v8996_v28, %v11252_v13  ;;  %v6506_v17 = vpop.f32.mrb[231].mxu1 }
0x1798   :  { %v6554_v34 = vmul.f32 0.5, %v6504_v51  ;;  %v6507_v2 = vadd.f32 %v11252_v13, %v6506_v17 }
0x1799   :  { %9832 = vtanh.f32 %v6556_v45  ;;  %v6557_v3 = vmul.f32 0.5, %v6515_v48 }
0x179a   :  { %9834 = vtanh.f32 %v6554_v34  ;;  %v6555_v61 = vmul.f32 0.5, %v6507_v2 }
0x179b   :  { %v9825_v32 = vpop.eup %9824  ;;  %9836 = vtanh.f32 %v6557_v3 }
0x179c   :  { %v9827_v16 = vpop.eup %9826  ;;  %v6584_v9 = vadd.f32 1.0, %v9825_v32  ;;  %9838 = vtanh.f32 %v6555_v61  ;;  %v8999_v11 = vpop.f32.mrb[232].mxu1 }
0x179d   :  { %v9829_v56 = vpop.eup %9828  ;;  %v6582_v47 = vadd.f32 1.0, %v9827_v16  ;;  %v6528_v46 = vadd.f32 %v8999_v11, %v11252_v13  ;;  %v6519_v53 = vpop.f32.mrb[233].mxu1 }
0x179e   :  { %v9831_v40 = vpop.eup %9830  ;;  %v6585_v19 = vadd.f32 1.0, %v9829_v56  ;;  %v6520_v7 = vadd.f32 %v11252_v13, %v6519_v53  ;;  %v9000_v57 = vpop.f32.mrb[234].mxu1  ;;  %v6600_v4 = vmul.f32 %v6584_v9, %v6552_v20 }
0x179f   :  { %v6583_v37 = vadd.f32 1.0, %v9831_v40  ;;  %v6560_v43 = vmul.f32 0.5, %v6528_v46  ;;  %v6531_v8 = vadd.f32 %v9000_v57, %v11252_v13  ;;  %v6522_v54 = vpop.f32.mrb[235].mxu1  ;;  %v6598_v59 = vmul.f32 %v6582_v47, %v6550_v24 }
0x17a0   :  { %v6601_v44 = vmul.f32 %v6585_v19, %v6553_v27  ;;  %v6558_v33 = vmul.f32 0.5, %v6520_v7  ;;  %v6523_v14 = vadd.f32 %v11252_v13, %v6522_v54 }
0x17a1   :  { %v6599_v36 = vmul.f32 %v6583_v37, %v6551_v30  ;;  %9840 = vtanh.f32 %v6560_v43  ;;  %v6561_v23 = vmul.f32 0.5, %v6531_v8 }
0x17a2   :  { %v6615_v35 = vpack.c.bf16 %v6601_v44, %v6600_v4  ;;  %9842 = vtanh.f32 %v6558_v33  ;;  %v6559_v58 = vmul.f32 0.5, %v6523_v14  ;;  %v9434_v4 = vld [vmem:[#allocation11 + $0x650] sm:$0xff]   ;;  %v9435_v44 = vld [vmem:[#allocation11 + $0x658] sm:$0xff]   ;;  %v9437_v14 = vld [vmem:[#allocation11 + $0x668] sm:$0xff]  }
0x17a3   :  { %v9833_v25 = vpop.eup %9832  ;;  %9844 = vtanh.f32 %v6561_v23  ;;  %v6614_v38 = vpack.c.bf16 %v6599_v36, %v6598_v59  ;;  %9041 = vmatprep.subr.bf16.mxu1 %v9434_v4  ;;  %v9438_v59 = vld [vmem:[#allocation11 + $0x670] sm:$0xff]   ;;  %v9439_v36 = vld [vmem:[#allocation11 + $0x678] sm:$0xff]  }
0x17a4   :  { %v9835_v21 = vpop.eup %9834  ;;  %v6588_v10 = vadd.f32 1.0, %v9833_v25  ;;  %9846 = vtanh.f32 %v6559_v58  ;;  %v9003_v39 = vpop.f32.mrb[236].mxu1  ;;  %9042 = vmatpush3.bf16.msra.mxu1 %v9434_v4 }
0x17a5   :  { %v9837_v29 = vpop.eup %9836  ;;  %v6586_v6 = vadd.f32 1.0, %v9835_v21  ;;  %v6544_v60 = vadd.f32 %v9003_v39, %v11252_v13  ;;  %v6535_v62 = vpop.f32.mrb[237].mxu1  ;;  %9021 = vmatprep.mubr.bf16.mxu0 %v6614_v38  ;;  %9043 = vmatprep.subr.bf16.mxu1 %v9435_v44 }
0x17a6   :  { %v9839_v41 = vpop.eup %9838  ;;  %v6589_v18 = vadd.f32 1.0, %v9837_v29  ;;  %v6536_v0 = vadd.f32 %v11252_v13, %v6535_v62  ;;  %v9004_v55 = vpop.f32.mrb[238].mxu1  ;;  %9022 = vmatmul.mubr.bf16.vlgmr.msra.gmra.mrb[192].mxu0 %v6615_v35  ;;  %v6604_v52 = vmul.f32 %v6588_v10, %v6556_v45 }
0x17a7   :  { %v6587_v49 = vadd.f32 1.0, %v9839_v41  ;;  %v6564_v5 = vmul.f32 0.5, %v6544_v60  ;;  %v6547_v26 = vadd.f32 %v9004_v55, %v11252_v13  ;;  %v6538_v22 = vpop.f32.mrb[239].mxu1  ;;  %v6602_v12 = vmul.f32 %v6586_v6, %v6554_v34 }
0x17a8   :  { %v6605_v50 = vmul.f32 %v6589_v18, %v6557_v3  ;;  %v6562_v20 = vmul.f32 0.5, %v6536_v0  ;;  %v6539_v31 = vadd.f32 %v11252_v13, %v6538_v22  ;;  %9044 = vmatpush3.bf16.msra.mxu1 %v9435_v44 }
0x17a9   :  { %v6603_v24 = vmul.f32 %v6587_v49, %v6555_v61  ;;  %9848 = vtanh.f32 %v6564_v5  ;;  %v6565_v1 = vmul.f32 0.5, %v6547_v26 }
0x17aa   :  { %9850 = vtanh.f32 %v6562_v20  ;;  %v6563_v27 = vmul.f32 0.5, %v6539_v31  ;;  %v6617_v30 = vpack.c.bf16 %v6605_v50, %v6604_v52 }
0x17ab   :  { %v9841_v42 = vpop.eup %9840  ;;  %9852 = vtanh.f32 %v6565_v1  ;;  %v6616_v63 = vpack.c.bf16 %v6603_v24, %v6602_v12 }
0x17ac   :  { %v9843_v15 = vpop.eup %9842  ;;  %v6592_v51 = vadd.f32 1.0, %v9841_v42  ;;  %9854 = vtanh.f32 %v6563_v27 }
0x17ad   :  { %v9845_v28 = vpop.eup %9844  ;;  %v6590_v48 = vadd.f32 1.0, %v9843_v15  ;;  %9025 = vmatprep.mubr.bf16.mxu0 %v6616_v63 }
0x17ae   :  { %v9847_v45 = vpop.eup %9846  ;;  %v6593_v17 = vadd.f32 1.0, %v9845_v28  ;;  %9026 = vmatmul.mubr.bf16.gmra.mrb[196].mxu0 %v6617_v30  ;;  %v6608_v34 = vmul.f32 %v6592_v51, %v6560_v43 }
0x17af   :  { %v6591_v13 = vadd.f32 1.0, %v9847_v45  ;;  %v6606_v3 = vmul.f32 %v6590_v48, %v6558_v33  ;;  %v9436_v33 = vld [vmem:[#allocation11 + $0x660] sm:$0xff]  }
0x17b0   :  { %v6609_v2 = vmul.f32 %v6593_v17, %v6561_v23  ;;  %9045 = vmatprep.subr.bf16.mxu1 %v9436_v33  ;;  %v11273_v23 = vld [vmem:[%s11315_s6 + $0x12] ss:$0 sm:$0xff] }
0x17b1   :  { %v6607_v61 = vmul.f32 %v6591_v13, %v6559_v58  ;;  %9046 = vmatpush3.bf16.msra.mxu1 %v9436_v33 }
0x17b2   :  { %v6619_v32 = vpack.c.bf16 %v6609_v2, %v6608_v34  ;;  %9047 = vmatprep.subr.bf16.mxu1 %v9437_v14 }
0x17b3   :  { %v9849_v16 = vpop.eup %9848  ;;  %v6618_v9 = vpack.c.bf16 %v6607_v61, %v6606_v3 }
0x17b4   :  { %v9851_v11 = vpop.eup %9850  ;;  %v6596_v56 = vadd.f32 1.0, %v9849_v16 }
0x17b5   :  { %v9853_v47 = vpop.eup %9852  ;;  %v6594_v46 = vadd.f32 1.0, %v9851_v11  ;;  %9029 = vmatprep.mubr.bf16.mxu0 %v6618_v9  ;;  %9048 = vmatpush3.bf16.msra.mxu1 %v9437_v14 }
0x17b6   :  { %v9855_v53 = vpop.eup %9854  ;;  %v6597_v40 = vadd.f32 1.0, %v9853_v47  ;;  %9030 = vmatmul.mubr.bf16.gmra.mrb[200].mxu0 %v6619_v32  ;;  %v6612_v7 = vmul.f32 %v6596_v56, %v6564_v5  ;;  %9049 = vmatprep.subr.bf16.mxu1 %v9438_v59 }
0x17b7   :  { %v6595_v19 = vadd.f32 1.0, %v9855_v53  ;;  %v6610_v37 = vmul.f32 %v6594_v46, %v6562_v20 }
0x17b8   :  { %v6613_v57 = vmul.f32 %v6597_v40, %v6565_v1 }
0x17b9   :  { %v6611_v8 = vmul.f32 %v6595_v19, %v6563_v27  ;;  %9050 = vmatpush3.bf16.msra.mxu1 %v9438_v59 }
0x17ba   :  { %v6621_v43 = vpack.c.bf16 %v6613_v57, %v6612_v7  ;;  %9051 = vmatprep.subr.bf16.mxu1 %v9439_v36 }
0x17bb   :  { %v6620_v54 = vpack.c.bf16 %v6611_v8, %v6610_v37 }
0x17bd   :  { %9033 = vmatprep.mubr.bf16.mxu0 %v6620_v54  ;;  %9052 = vmatpush3.bf16.msra.mxu1 %v9439_v36 }
0x17be   :  { %9034 = vmatmul.mubr.bf16.gmra.mrb[204].mxu0 %v6621_v43 }
0x1879   :  { %v9023_v35 = vpop.f32.mrb[192].mxu0 }
0x187a   :  { %v6738_v58 = vadd.f32 %v9023_v35, %v11273_v23  ;;  %v6729_v25 = vpop.f32.mrb[193].mxu0 }
0x187b   :  { %v6730_v38 = vadd.f32 %v11273_v23, %v6729_v25  ;;  %v9024_v21 = vpop.f32.mrb[194].mxu0 }
0x187c   :  { %v6794_v10 = vmul.f32 0.5, %v6738_v58  ;;  %v6741_v39 = vadd.f32 %v9024_v21, %v11273_v23  ;;  %v6732_v29 = vpop.f32.mrb[195].mxu0 }
0x187d   :  { %v6792_v6 = vmul.f32 0.5, %v6730_v38  ;;  %v6733_v60 = vadd.f32 %v11273_v23, %v6732_v29 }
0x187e   :  { %9856 = vtanh.f32 %v6794_v10  ;;  %v6795_v62 = vmul.f32 0.5, %v6741_v39 }
0x187f   :  { %9858 = vtanh.f32 %v6792_v6  ;;  %v6793_v41 = vmul.f32 0.5, %v6733_v60 }
0x1880   :  { %9860 = vtanh.f32 %v6795_v62 }
0x1881   :  { %9862 = vtanh.f32 %v6793_v41  ;;  %v9027_v18 = vpop.f32.mrb[196].mxu0 }
0x1882   :  { %v6754_v0 = vadd.f32 %v9027_v18, %v11273_v23  ;;  %v6745_v55 = vpop.f32.mrb[197].mxu0 }
0x1883   :  { %v6746_v49 = vadd.f32 %v11273_v23, %v6745_v55  ;;  %v9028_v5 = vpop.f32.mrb[198].mxu0 }
0x1884   :  { %v6798_v26 = vmul.f32 0.5, %v6754_v0  ;;  %v6757_v22 = vadd.f32 %v9028_v5, %v11273_v23  ;;  %v6748_v52 = vpop.f32.mrb[199].mxu0 }
0x1885   :  { %v6796_v50 = vmul.f32 0.5, %v6746_v49  ;;  %v6749_v20 = vadd.f32 %v11273_v23, %v6748_v52 }
0x1886   :  { %9864 = vtanh.f32 %v6798_v26  ;;  %v6799_v31 = vmul.f32 0.5, %v6757_v22 }
0x1887   :  { %9866 = vtanh.f32 %v6796_v50  ;;  %v6797_v12 = vmul.f32 0.5, %v6749_v20 }
0x1888   :  { %v9857_v24 = vpop.eup %9856  ;;  %9868 = vtanh.f32 %v6799_v31 }
0x1889   :  { %v9859_v1 = vpop.eup %9858  ;;  %v6826_v27 = vadd.f32 1.0, %v9857_v24  ;;  %9870 = vtanh.f32 %v6797_v12  ;;  %v9031_v30 = vpop.f32.mrb[200].mxu0 }
0x188a   :  { %v9861_v42 = vpop.eup %9860  ;;  %v6824_v63 = vadd.f32 1.0, %v9859_v1  ;;  %v6770_v15 = vadd.f32 %v9031_v30, %v11273_v23  ;;  %v6761_v51 = vpop.f32.mrb[201].mxu0 }
0x188b   :  { %v9863_v28 = vpop.eup %9862  ;;  %v6827_v48 = vadd.f32 1.0, %v9861_v42  ;;  %v6762_v45 = vadd.f32 %v11273_v23, %v6761_v51  ;;  %v9032_v17 = vpop.f32.mrb[202].mxu0  ;;  %v6842_v61 = vmul.f32 %v6826_v27, %v6794_v10 }
0x188c   :  { %v6825_v13 = vadd.f32 1.0, %v9863_v28  ;;  %v6802_v34 = vmul.f32 0.5, %v6770_v15  ;;  %v6773_v2 = vadd.f32 %v9032_v17, %v11273_v23  ;;  %v6764_v3 = vpop.f32.mrb[203].mxu0  ;;  %v6840_v11 = vmul.f32 %v6824_v63, %v6792_v6 }
0x188d   :  { %v6843_v32 = vmul.f32 %v6827_v48, %v6795_v62  ;;  %v6800_v16 = vmul.f32 0.5, %v6762_v45  ;;  %v6765_v9 = vadd.f32 %v11273_v23, %v6764_v3 }
0x188e   :  { %v6841_v56 = vmul.f32 %v6825_v13, %v6793_v41  ;;  %9872 = vtanh.f32 %v6802_v34  ;;  %v6803_v47 = vmul.f32 0.5, %v6773_v2 }
0x188f   :  { %v6857_v46 = vpack.c.bf16 %v6843_v32, %v6842_v61  ;;  %9874 = vtanh.f32 %v6800_v16  ;;  %v6801_v53 = vmul.f32 0.5, %v6765_v9  ;;  %v7332_v61 = vld [vmem:[%s11315_s6 + $0x13] ss:$0 sm:$0xff]  ;;  %s10118_s6 = smov [#allocation13]  }
0x1890   :  { %v9865_v40 = vpop.eup %9864  ;;  %9876 = vtanh.f32 %v6803_v47  ;;  %v6856_v19 = vpack.c.bf16 %v6841_v56, %v6840_v11  ;;  %s7055_s19 = sshll.u32 %s10118_s6, 4  ;;  %s7056_s19 = int_to_ptr.vmem [resolvable:$true] %s7055_s19 }
0x1891   :  { %v9867_v7 = vpop.eup %9866  ;;  %v6830_v57 = vadd.f32 1.0, %v9865_v40  ;;  %9878 = vtanh.f32 %v6801_v53  ;;  %v9035_v37 = vpop.f32.mrb[204].mxu0  ;;  %s10076_s2 = scalar_lea.vmem %s7056_s19, 2048  ;;  %p10081_p7 = scmp.lt.s32.totalorder %s7056_s19, %s7056_s19 }
0x1892   :  { %v9869_v8 = vpop.eup %9868  ;;  %v6828_v43 = vadd.f32 1.0, %v9867_v7  ;;  %v6786_v54 = vadd.f32 %v9035_v37, %v11273_v23  ;;  %v6777_v4 = vpop.f32.mrb[205].mxu0  ;;  %9053 = vmatprep.mubr.bf16.mxu1 %v6856_v19  ;;  %p10077_p6 = scmp.ne.s32.totalorder %s7056_s19, %s10076_s2  ;;  %p10082_p8 = scmp.lt.s32.totalorder %s10076_s2, %s10076_s2 }
0x1893   :  { %v9871_v44 = vpop.eup %9870  ;;  %v6831_v33 = vadd.f32 1.0, %v9869_v8  ;;  %v6778_v14 = vadd.f32 %v11273_v23, %v6777_v4  ;;  %v9036_v59 = vpop.f32.mrb[206].mxu0  ;;  %9054 = vmatmul.mubr.bf16.vlgmr.msra.gmra.mrb[240].mxu1 %v6857_v46  ;;  %v6846_v38 = vmul.f32 %v6830_v57, %v6798_v26 }
0x1894   :  { %v6829_v36 = vadd.f32 1.0, %v9871_v44  ;;  %v6806_v35 = vmul.f32 0.5, %v6786_v54  ;;  %v6789_v58 = vadd.f32 %v9036_v59, %v11273_v23  ;;  %v6780_v25 = vpop.f32.mrb[207].mxu0  ;;  %v6844_v29 = vmul.f32 %v6828_v43, %v6796_v50  ;;  %p10083_p9 = por %p10082_p8, %p10081_p7 }
0x1895   :  { %v6847_v21 = vmul.f32 %v6831_v33, %v6799_v31  ;;  %v6804_v10 = vmul.f32 0.5, %v6778_v14  ;;  %v6781_v39 = vadd.f32 %v11273_v23, %v6780_v25 }
0x1896   :  { %v6845_v6 = vmul.f32 %v6829_v36, %v6797_v12  ;;  %9880 = vtanh.f32 %v6806_v35  ;;  %v6807_v60 = vmul.f32 0.5, %v6789_v58  ;;  %p10084_p10 = pnand %p10083_p9, %p10077_p6 }
0x1897   :  { %9882 = vtanh.f32 %v6804_v10  ;;  %v6805_v62 = vmul.f32 0.5, %v6781_v39  ;;  %v6859_v41 = vpack.c.bf16 %v6847_v21, %v6846_v38 }
0x1898   :  { %v9873_v18 = vpop.eup %9872  ;;  %9884 = vtanh.f32 %v6807_v60  ;;  %v6858_v0 = vpack.c.bf16 %v6845_v6, %v6844_v29 }
0x1899   :  { %v9875_v55 = vpop.eup %9874  ;;  %v6834_v49 = vadd.f32 1.0, %v9873_v18  ;;  %9886 = vtanh.f32 %v6805_v62 }
0x189a   :  { %v9877_v5 = vpop.eup %9876  ;;  %v6832_v22 = vadd.f32 1.0, %v9875_v55  ;;  %9057 = vmatprep.mubr.bf16.mxu1 %v6858_v0 }
0x189b   :  { %v9879_v26 = vpop.eup %9878  ;;  %v6835_v52 = vadd.f32 1.0, %v9877_v5  ;;  %9058 = vmatmul.mubr.bf16.gmra.mrb[244].mxu1 %v6859_v41  ;;  %v6850_v50 = vmul.f32 %v6834_v49, %v6802_v34 }
0x189c   :  { %v6833_v23 = vadd.f32 1.0, %v9879_v26  ;;  %v6848_v31 = vmul.f32 %v6832_v22, %v6800_v16 }
0x189d   :  { %v6851_v20 = vmul.f32 %v6835_v52, %v6803_v47 }
0x189e   :  { %v6849_v12 = vmul.f32 %v6833_v23, %v6801_v53 }
0x189f   :  { %v6861_v24 = vpack.c.bf16 %v6851_v20, %v6850_v50 }
0x18a0   :  { %v9881_v1 = vpop.eup %9880  ;;  %v6860_v27 = vpack.c.bf16 %v6849_v12, %v6848_v31 }
0x18a1   :  { %v9883_v30 = vpop.eup %9882  ;;  %v6838_v42 = vadd.f32 1.0, %v9881_v1 }
0x18a2   :  { %v9885_v63 = vpop.eup %9884  ;;  %v6836_v15 = vadd.f32 1.0, %v9883_v30  ;;  %9061 = vmatprep.mubr.bf16.mxu1 %v6860_v27 }
0x18a3   :  { %v9887_v51 = vpop.eup %9886  ;;  %v6839_v28 = vadd.f32 1.0, %v9885_v63  ;;  %9062 = vmatmul.mubr.bf16.gmra.mrb[248].mxu1 %v6861_v24  ;;  %v6854_v45 = vmul.f32 %v6838_v42, %v6806_v35 }
0x18a4   :  { %v6837_v48 = vadd.f32 1.0, %v9887_v51  ;;  %v6852_v13 = vmul.f32 %v6836_v15, %v6804_v10 }
0x18a5   :  { %v6855_v17 = vmul.f32 %v6839_v28, %v6807_v60 }
0x18a6   :  { %v6853_v2 = vmul.f32 %v6837_v48, %v6805_v62 }
0x18a7   :  { %v6863_v34 = vpack.c.bf16 %v6855_v17, %v6854_v45 }
0x18a8   :  { %v6862_v3 = vpack.c.bf16 %v6853_v2, %v6852_v13 }
0x18aa   :  { %9065 = vmatprep.mubr.bf16.mxu1 %v6862_v3 }
0x18ab   :  { %9066 = vmatmul.mubr.bf16.gmra.mrb[252].mxu1 %v6863_v34 }
0x1966   :  { %v9055_v32 = vpop.f32.mrb[240].mxu1 }
0x1967   :  { %v6980_v16 = vadd.f32 %v9055_v32, %v7332_v61  ;;  %v6971_v9 = vpop.f32.mrb[241].mxu1 }
0x1968   :  { %v6972_v11 = vadd.f32 %v7332_v61, %v6971_v9  ;;  %v9056_v56 = vpop.f32.mrb[242].mxu1 }
0x1969   :  { %7036 = vst [vmem:[#allocation13 + $0x10] sm:$0xff] %v6980_v16  ;;  %v6983_v47 = vadd.f32 %v9056_v56, %v7332_v61  ;;  %v6974_v46 = vpop.f32.mrb[243].mxu1 }
0x196a   :  { %7034 = vst [vmem:[#allocation13] sm:$0xff] %v6972_v11  ;;  %v6975_v53 = vadd.f32 %v7332_v61, %v6974_v46 }
0x196b   :  { %7037 = vst [vmem:[#allocation13 + $0x18] sm:$0xff] %v6983_v47 }
0x196c   :  { %7035 = vst [vmem:[#allocation13 + $0x8] sm:$0xff] %v6975_v53 }
0x196e   :  { %v9059_v40 = vpop.f32.mrb[244].mxu1 }
0x196f   :  { %v6996_v19 = vadd.f32 %v9059_v40, %v7332_v61  ;;  %v6987_v7 = vpop.f32.mrb[245].mxu1 }
0x1970   :  { %v6988_v57 = vadd.f32 %v7332_v61, %v6987_v7  ;;  %v9060_v37 = vpop.f32.mrb[246].mxu1 }
0x1971   :  { %7040 = vst [vmem:[#allocation13 + $0x30] sm:$0xff] %v6996_v19  ;;  %v6999_v8 = vadd.f32 %v9060_v37, %v7332_v61  ;;  %v6990_v43 = vpop.f32.mrb[247].mxu1 }
0x1972   :  { %7038 = vst [vmem:[#allocation13 + $0x20] sm:$0xff] %v6988_v57  ;;  %v6991_v54 = vadd.f32 %v7332_v61, %v6990_v43 }
0x1973   :  { %7041 = vst [vmem:[#allocation13 + $0x38] sm:$0xff] %v6999_v8 }
0x1974   :  { %7039 = vst [vmem:[#allocation13 + $0x28] sm:$0xff] %v6991_v54 }
0x1976   :  { %v9063_v4 = vpop.f32.mrb[248].mxu1 }
0x1977   :  { %v7012_v44 = vadd.f32 %v9063_v4, %v7332_v61  ;;  %v7003_v33 = vpop.f32.mrb[249].mxu1 }
0x1978   :  { %v7004_v14 = vadd.f32 %v7332_v61, %v7003_v33  ;;  %v9064_v59 = vpop.f32.mrb[250].mxu1 }
0x1979   :  { %7044 = vst [vmem:[#allocation13 + $0x50] sm:$0xff] %v7012_v44  ;;  %v7015_v36 = vadd.f32 %v9064_v59, %v7332_v61  ;;  %v7006_v35 = vpop.f32.mrb[251].mxu1 }
0x197a   :  { %7042 = vst [vmem:[#allocation13 + $0x40] sm:$0xff] %v7004_v14  ;;  %v7007_v58 = vadd.f32 %v7332_v61, %v7006_v35 }
0x197b   :  { %7045 = vst [vmem:[#allocation13 + $0x58] sm:$0xff] %v7015_v36 }
0x197c   :  { %7043 = vst [vmem:[#allocation13 + $0x48] sm:$0xff] %v7007_v58 }
0x197e   :  { %v9067_v25 = vpop.f32.mrb[252].mxu1 }
0x197f   :  { %v7028_v38 = vadd.f32 %v9067_v25, %v7332_v61  ;;  %v7019_v21 = vpop.f32.mrb[253].mxu1 }
0x1980   :  { %v7020_v10 = vadd.f32 %v7332_v61, %v7019_v21  ;;  %v9068_v39 = vpop.f32.mrb[254].mxu1 }
0x1981   :  { %7048 = vst [vmem:[#allocation13 + $0x70] sm:$0xff] %v7028_v38  ;;  %v7031_v29 = vadd.f32 %v9068_v39, %v7332_v61  ;;  %v7022_v6 = vpop.f32.mrb[255].mxu1 }
0x1982   :  { %7046 = vst [vmem:[#allocation13 + $0x60] sm:$0xff] %v7020_v10  ;;  %v7023_v60 = vadd.f32 %v7332_v61, %v7022_v6 }
0x1983   :  { %7049 = vst [vmem:[#allocation13 + $0x78] sm:$0xff] %v7031_v29 }
0x1984   :  { %7047 = vst [vmem:[#allocation13 + $0x68] sm:$0xff] %v7023_v60 }
0x1985   :  { %10087 = shalt.err (!%p10084_p10)
}
0x1986   :  { %s10088_s21 = scalar_lea.hbm %s11316_s7, 2048 }
0x1987   :  { %p10089_p11 = scmp.ne.s32.totalorder %s11316_s7, %s10088_s21  ;;  %p10092_p12 = scmp.lt.u32.totalorder %s10088_s21, %s11316_s7 }
0x1989   :  { %p10094_p13 = pnand %p10092_p12, %p10089_p11 }
0x198b   :  { %10097 = shalt.err (!%p10094_p13)
}
0x198c   :  { %7061 = dma.vmem_to_hbm [thread:$0]  %s7056_s19, 2048, %s11316_s7, [#allocation4], %s10112_s1, %s10112_s1, %s10113_s25  }
0x198d   :  { %10106 = dma.done.wait [#allocation4], 2048  }
0x198e   :  { %10107 = vsyncadd [#allocation4], 4294965248 }
0x198f   :  { %7065 = vsyncpa [#allocation3], 1 }
0x1990   :  { %7066 = vsyncpa [#allocation6], 1 }
0x1991   :  { %7067 = vsyncpa [#allocation9], 1 }
0x1992   :  { %7068 = vsyncpa [#allocation12], 1 }
0x1993   :  { %7069 = vsyncpa [#allocation4], 1 }

</bundles_post_ra>
